<compile_context>
chip_gen: v5e
topology: v5e:2x2
jax: 0.10.0
libtpu: 0.0.40
codegen_flags: <defaults>
</compile_context>

<pallas_src>
import functools

import jax
import jax.numpy as jnp
from jax.experimental import pallas as pl
from jax.experimental.pallas import tpu as pltpu


# --------------------------------------------------------------------------- #
# Kernel
# --------------------------------------------------------------------------- #
def attn_decoder_kernel(emb_ref, hid_ref, enc_ref,
                        wih_ref, whh_ref, bih_ref, bhh_ref,
                        wout_ref, bout_ref,
                        out_ref, newh_ref, attnw_ref,
                        *, hidden_size, seq_len):
    H = hidden_size
    f32, bf16 = jnp.float32, jnp.bfloat16

    hid = hid_ref[...]                                           # (1, H) f32
    emb = emb_ref[...]                                           # (1, H) f32 (dropout applied)
    enc = enc_ref[...]                                           # (S_pad, H) bf16

    # ---- dot attention: scores = hidden @ enc^T, contracting on H (no enc^T copy)
    scores = jax.lax.dot_general(hid.astype(bf16), enc,
                                 (((1,), (1,)), ((), ())),
                                 preferred_element_type=f32)     # (1, S_pad)
    s_pad = scores.shape[-1]
    if seq_len < s_pad:   # static: mask zero-padded key positions
        lane = jax.lax.broadcasted_iota(jnp.int32, scores.shape, 1)
        scores = jnp.where(lane < seq_len, scores, -jnp.inf)
    m = jnp.max(scores, axis=-1, keepdims=True)
    e = jnp.exp(scores - m)
    attn_w = e / jnp.sum(e, axis=-1, keepdims=True)              # softmax (exact)
    attnw_ref[...] = attn_w

    # ---- context = attn_weights @ encoder_outputs ----
    context = jnp.dot(attn_w.astype(bf16), enc,
                      preferred_element_type=f32)                # (1, H)

    # ---- GRU cell on [embedded, context] — single merged K=2H contraction ----
    x = jnp.concatenate([emb, context], axis=-1).astype(bf16)    # (1, 2H)
    gi = jnp.dot(x, wih_ref[...], preferred_element_type=f32) + bih_ref[...]
    gh = (jnp.dot(hid.astype(bf16), whh_ref[...], preferred_element_type=f32)
          + bhh_ref[...])                                        # (1, 3H)
    # Gate order r, z, n (PyTorch). Slices are lane-aligned for H % 128 == 0.
    r = jax.nn.sigmoid(gi[:, 0:H] + gh[:, 0:H])
    z = jax.nn.sigmoid(gi[:, H:2 * H] + gh[:, H:2 * H])
    n = jnp.tanh(gi[:, 2 * H:3 * H] + r * gh[:, 2 * H:3 * H])
    h_new = (1.0 - z) * n + z * hid                              # (1, H)
    newh_ref[...] = h_new

    # ---- output = Linear([gru_output, context]) on this vocab tile ----
    hc = jnp.concatenate([h_new, context], axis=-1).astype(bf16)  # (1, 2H)
    out_ref[...] = (jnp.dot(hc, wout_ref[...], preferred_element_type=f32)
                    + bout_ref[...])


# --------------------------------------------------------------------------- #
# One-time parameter / encoder packing (hoisted out of the per-step path)
# --------------------------------------------------------------------------- #
def init_params(key, hidden_size, output_size):
    H, O = hidden_size, output_size
    ks = jax.random.split(key, 7)
    scale = 0.1
    return {
        "hidden_size": H,
        "output_size": O,
        "embedding": scale * jax.random.normal(ks[0], (O, H), jnp.float32),
        "w_ih": scale * jax.random.normal(ks[1], (3 * H, 2 * H), jnp.float32),
        "w_hh": scale * jax.random.normal(ks[2], (3 * H, H), jnp.float32),
        "b_ih": scale * jax.random.normal(ks[3], (3 * H,), jnp.float32),
        "b_hh": scale * jax.random.normal(ks[4], (3 * H,), jnp.float32),
        "w_out": scale * jax.random.normal(ks[5], (O, 2 * H), jnp.float32),
        "b_out": scale * jax.random.normal(ks[6], (O,), jnp.float32),
    }


def pack_decoder_params(params):
    """One-time prep: transposes / bf16 casts / bias reshapes. Call once, reuse
    the result for every decode step (the packed arrays live in HBM)."""
    H, O = params["hidden_size"], params["output_size"]
    f32, bf16 = jnp.float32, jnp.bfloat16
    packed = {
        "hidden_size": H,
        "output_size": O,
        "embedding": params["embedding"].astype(f32),            # (O, H)
        "w_ih_t": jnp.asarray(params["w_ih"].T, bf16),           # (2H, 3H)
        "w_hh_t": jnp.asarray(params["w_hh"].T, bf16),           # (H, 3H)
        "b_ih": params["b_ih"].reshape(1, 3 * H).astype(f32),
        "b_hh": params["b_hh"].reshape(1, 3 * H).astype(f32),
        "w_out_t": jnp.asarray(params["w_out"].T, bf16),         # (2H, O)
        "b_out": params["b_out"].reshape(1, O).astype(f32),
    }
    return jax.block_until_ready(packed)


def pack_encoder_outputs(encoder_outputs):
    """One-time prep per source sequence: (S,1,H) -> zero-padded (S_pad,H) bf16,
    S_pad a multiple of 128 so the attention lane axis is dense."""
    S = encoder_outputs.shape[0]
    H = encoder_outputs.shape[-1]
    S_pad = max(128, -(-S // 128) * 128)
    enc = encoder_outputs.reshape(S, H)
    if S_pad != S:
        enc = jnp.pad(enc, ((0, S_pad - S), (0, 0)))
    return jax.block_until_ready(enc.astype(jnp.bfloat16)), S


def _choose_tile_o(H, O, vmem_budget_bytes=8 << 20):
    """Largest vocab tile whose double-buffered W_out stream fits the budget.
    For O=256 this returns O (grid collapses to a single step)."""
    per_col = 2 * (2 * H) * 2          # 2 buffers x (2H rows) x 2 B (bf16)
    cap = max(128, vmem_budget_bytes // per_col)
    if O <= cap:
        return O
    t = (cap // 128) * 128
    while t >= 128:
        if O % t == 0:
            return t
        t -= 128
    return O


def _vmem_bytes_estimate(H, S_pad, tile_o):
    bf = 2
    enc = 2 * S_pad * H * bf
    w_ih = 2 * (2 * H) * (3 * H) * bf
    w_hh = 2 * H * (3 * H) * bf
    w_out = 2 * (2 * H) * tile_o * bf
    misc = 16 * H * 4 + 4 * tile_o * 4 + 4 * S_pad * 4 + (1 << 16)
    return enc + w_ih + w_hh + w_out + misc


# --------------------------------------------------------------------------- #
# Per-step wrapper
# --------------------------------------------------------------------------- #
def attn_decoder_step(packed, enc_bf, seq_len, input_idx, hidden, *,
                      dropout_p=0.1, training=True, rng_key=None, tile_o=None):
    """One decoder step.

    packed: output of pack_decoder_params; enc_bf, seq_len: pack_encoder_outputs.
    input_idx: (1,1) int32; hidden: (1,1,H).
    Returns (output (1,O), hidden (1,1,H), attn_weights (1,1,S)) like PyTorch
    (raw linear output — the spec applies no log_softmax)."""
    H, O = packed["hidden_size"], packed["output_size"]
    S_pad = enc_bf.shape[0]
    f32 = jnp.float32

    # ---- per-step glue: embedding row gather + inverted dropout --------------
    embedded = packed["embedding"][input_idx.reshape(())].reshape(1, H)
    # TODO(synk): dropout uses JAX's PRNG (same Bernoulli / 1/(1-p) semantics as
    # F.dropout, different random stream than torch).
    if training and dropout_p > 0.0:
        if dropout_p >= 1.0:
            embedded = jnp.zeros_like(embedded)
        else:
            if rng_key is None:
                raise ValueError("rng_key is required when training with dropout")
            keep = jax.random.bernoulli(rng_key, 1.0 - dropout_p, embedded.shape)
            embedded = jnp.where(keep, embedded / (1.0 - dropout_p), 0.0)
    embedded = embedded.astype(f32)
    hid2 = hidden.reshape(1, H).astype(f32)

    # ---- vocab-axis tiling (collapses to grid=(1,) for O=256) ----------------
    tile_o = tile_o or _choose_tile_o(H, O)
    tile_o = min(tile_o, O)
    assert O % tile_o == 0, "output_size must be a multiple of tile_o"
    grid = (O // tile_o,)

    vmem_est = _vmem_bytes_estimate(H, S_pad, tile_o)
    vmem_limit = None
    if vmem_est > 12 * 1024 * 1024:          # only override when the default
        vmem_limit = min(2 * vmem_est, 96 * 1024 * 1024)  # scoped limit is tight

    flops = 2 * (H * S_pad + S_pad * H + (2 * H) * (3 * H)
                 + H * (3 * H) + (2 * H) * O)
    bytes_accessed = (S_pad * H * 2 + (2 * H) * (3 * H) * 2 + H * (3 * H) * 2
                      + (2 * H) * O * 2 + (6 * H + O) * 4
                      + (4 * H + O + S_pad) * 4)
    cost = pl.CostEstimate(flops=int(flops),
                           transcendentals=int(S_pad + 3 * H),
                           bytes_accessed=int(bytes_accessed))

    kernel = functools.partial(attn_decoder_kernel,
                               hidden_size=H, seq_len=seq_len)

    resident = lambda shape: pl.BlockSpec(shape, lambda j: (0, 0))

    out, new_h, attn_w = pl.pallas_call(
        kernel,
        grid=grid,
        in_specs=[
            resident((1, H)),                               # embedded (dropout applied)
            resident((1, H)),                               # hidden
            resident((S_pad, H)),                           # encoder_outputs (bf16)
            resident((2 * H, 3 * H)),                       # W_ih^T (merged)
            resident((H, 3 * H)),                           # W_hh^T
            resident((1, 3 * H)),                           # b_ih
            resident((1, 3 * H)),                           # b_hh
            pl.BlockSpec((2 * H, tile_o), lambda j: (0, j)),  # W_out^T tile (merged)
            pl.BlockSpec((1, tile_o), lambda j: (0, j)),      # b_out tile
        ],
        out_specs=(
            pl.BlockSpec((1, tile_o), lambda j: (0, j)),      # logits tile
            resident((1, H)),                                 # new hidden
            resident((1, S_pad)),                             # attn weights
        ),
        out_shape=(jax.ShapeDtypeStruct((1, O), jnp.float32),
                   jax.ShapeDtypeStruct((1, H), jnp.float32),
                   jax.ShapeDtypeStruct((1, S_pad), jnp.float32)),
        compiler_params=pltpu.CompilerParams(
            dimension_semantics=("parallel",),   # state recomputed per tile -> safe
            vmem_limit_bytes=vmem_limit),
        cost_estimate=cost,
    )(embedded, hid2, enc_bf,
      packed["w_ih_t"], packed["w_hh_t"], packed["b_ih"], packed["b_hh"],
      packed["w_out_t"], packed["b_out"])

    # Match PyTorch return shapes: (1,O), (1,1,H), (1,1,S)
    return out, new_h.reshape(1, 1, H), attn_w[:, :seq_len].reshape(1, 1, seq_len)


# --------------------------------------------------------------------------- #
# Pure-JAX reference (same bf16 weight casts / dropout mask as the kernel)
# --------------------------------------------------------------------------- #
def _reference(params, input_idx, hidden, encoder_outputs, dropout_p, rng_key):
    H = params["hidden_size"]
    O = params["output_size"]
    S = encoder_outputs.shape[0]
    bf16, f32 = jnp.bfloat16, jnp.float32

    emb = params["embedding"][input_idx.reshape(())].reshape(1, H).astype(f32)
    keep = jax.random.bernoulli(rng_key, 1.0 - dropout_p, emb.shape)
    emb = jnp.where(keep, emb / (1.0 - dropout_p), 0.0)

    hid = hidden.reshape(1, H).astype(f32)
    enc = encoder_outputs.reshape(S, H).astype(bf16)

    scores = jnp.dot(hid.astype(bf16), enc.T, preferred_element_type=f32)
    attn = jax.nn.softmax(scores, axis=-1)
    ctx = jnp.dot(attn.astype(bf16), enc, preferred_element_type=f32)

    x = jnp.concatenate([emb, ctx], axis=-1).astype(bf16)
    gi = (jnp.dot(x, params["w_ih"].T.astype(bf16), preferred_element_type=f32)
          + params["b_ih"].reshape(1, -1))
    gh = (jnp.dot(hid.astype(bf16), params["w_hh"].T.astype(bf16),
                  preferred_element_type=f32)
          + params["b_hh"].reshape(1, -1))
    r = jax.nn.sigmoid(gi[:, 0:H] + gh[:, 0:H])
    z = jax.nn.sigmoid(gi[:, H:2 * H] + gh[:, H:2 * H])
    n = jnp.tanh(gi[:, 2 * H:3 * H] + r * gh[:, 2 * H:3 * H])
    h_new = (1.0 - z) * n + z * hid

    hc = jnp.concatenate([h_new, ctx], axis=-1).astype(bf16)
    out = (jnp.dot(hc, params["w_out"].T.astype(bf16), preferred_element_type=f32)
           + params["b_out"].reshape(1, O))
    return out, h_new.reshape(1, 1, H), attn.reshape(1, 1, S)


# --------------------------------------------------------------------------- #
if __name__ == "__main__":
    hidden_size = 256      # spec: hidden_size = 256
    output_size = 256      # spec: output_size = 256
    seq_len = 9            # spec: encoder ran over a 9-token input sequence

    key = jax.random.PRNGKey(0)
    kp, kh, ke = jax.random.split(key, 3)

    params = init_params(kp, hidden_size, output_size)

    input_idx = jnp.array([[3]], dtype=jnp.int32)                        # (1,1)
    hidden = jax.random.normal(kh, (1, 1, hidden_size), jnp.float32)     # (1,1,H)
    encoder_outputs = jax.random.normal(ke, (seq_len, 1, hidden_size),
                                        jnp.float32)                     # (S,1,H)
    drop_key = jax.random.PRNGKey(42)

    # One-time packing (hoisted out of the per-step path).
    packed = pack_decoder_params(params)
    enc_bf, S = pack_encoder_outputs(encoder_outputs)

    output, new_hidden, attn_weights = attn_decoder_step(
        packed, enc_bf, S, input_idx, hidden,
        dropout_p=0.1, training=True, rng_key=drop_key)
    jax.block_until_ready((output, new_hidden, attn_weights))

    assert output.shape == (1, output_size)
    assert new_hidden.shape == (1, 1, hidden_size)
    assert attn_weights.shape == (1, 1, seq_len)

    ref_out, ref_h, ref_attn = _reference(params, input_idx, hidden,
                                          encoder_outputs, 0.1, drop_key)
    assert float(jnp.max(jnp.abs(output - ref_out))) < 2e-3
    assert float(jnp.max(jnp.abs(new_hidden - ref_h))) < 2e-3
    assert float(jnp.max(jnp.abs(attn_weights - ref_attn))) < 2e-3

    print("KERNEL_OK")
</pallas_src>

<mosaic_0001>
module attributes {stable_mosaic.version = 11 : i64} {
  func.func @attn_decoder_kernel(%arg0: i32, %arg1: memref<1x256xf32, #tpu.memory_space<vmem>>, %arg2: memref<1x256xf32, #tpu.memory_space<vmem>>, %arg3: memref<128x256xbf16, #tpu.memory_space<vmem>>, %arg4: memref<512x768xbf16, #tpu.memory_space<vmem>>, %arg5: memref<256x768xbf16, #tpu.memory_space<vmem>>, %arg6: memref<1x768xf32, #tpu.memory_space<vmem>>, %arg7: memref<1x768xf32, #tpu.memory_space<vmem>>, %arg8: memref<512x256xbf16, #tpu.memory_space<vmem>>, %arg9: memref<1x256xf32, #tpu.memory_space<vmem>>, %arg10: memref<1x256xf32, #tpu.memory_space<vmem>>, %arg11: memref<1x256xf32, #tpu.memory_space<vmem>>, %arg12: memref<1x128xf32, #tpu.memory_space<vmem>>) attributes {dimension_semantics = [#tpu.dimension_semantics<parallel>], iteration_bounds = array<i64: 1>, scalar_prefetch = 0 : i64, scratch_operands = 0 : i64, tpu.core_type = #tpu.core_type<tc>, window_params = [{pipeline_mode = #tpu.pipeline_mode<synchronous>, transform_indices = @transform_0, window_bounds = array<i64: 1, 256>}, {pipeline_mode = #tpu.pipeline_mode<synchronous>, transform_indices = @transform_1, window_bounds = array<i64: 1, 256>}, {pipeline_mode = #tpu.pipeline_mode<synchronous>, transform_indices = @transform_2, window_bounds = array<i64: 128, 256>}, {pipeline_mode = #tpu.pipeline_mode<synchronous>, transform_indices = @transform_3, window_bounds = array<i64: 512, 768>}, {pipeline_mode = #tpu.pipeline_mode<synchronous>, transform_indices = @transform_4, window_bounds = array<i64: 256, 768>}, {pipeline_mode = #tpu.pipeline_mode<synchronous>, transform_indices = @transform_5, window_bounds = array<i64: 1, 768>}, {pipeline_mode = #tpu.pipeline_mode<synchronous>, transform_indices = @transform_6, window_bounds = array<i64: 1, 768>}, {transform_indices = @transform_7, window_bounds = array<i64: 512, 256>}, {transform_indices = @transform_8, window_bounds = array<i64: 1, 256>}, {transform_indices = @transform_9, window_bounds = array<i64: 1, 256>}, {pipeline_mode = #tpu.pipeline_mode<synchronous>, transform_indices = @transform_10, window_bounds = array<i64: 1, 256>}, {pipeline_mode = #tpu.pipeline_mode<synchronous>, transform_indices = @transform_11, window_bounds = array<i64: 1, 128>}]} {
    %c0 = arith.constant 0 : index
    %c0_0 = arith.constant 0 : index
    %0 = vector.load %arg2[%c0, %c0_0] : memref<1x256xf32, #tpu.memory_space<vmem>>, vector<1x256xf32>
    %c0_1 = arith.constant 0 : index
    %c0_2 = arith.constant 0 : index
    %1 = vector.load %arg1[%c0_1, %c0_2] : memref<1x256xf32, #tpu.memory_space<vmem>>, vector<1x256xf32>
    %c0_3 = arith.constant 0 : index
    %c0_4 = arith.constant 0 : index
    %2 = vector.load %arg3[%c0_3, %c0_4] : memref<128x256xbf16, #tpu.memory_space<vmem>>, vector<128x256xbf16>
    %3 = arith.truncf %0 : vector<1x256xf32> to vector<1x256xbf16>
    %cst = arith.constant dense<0.000000e+00> : vector<1x128xf32>
    %4 = tpu.matmul %3, %2, %cst {dimension_numbers = #tpu.dot_dimension_numbers<[1], [1], [0], [0], [0, 0, 1, 0], [], []>} : vector<1x256xbf16>, vector<128x256xbf16>, vector<1x128xf32> -> vector<1x128xf32>
    %5 = tpu.iota {dimensions = array<i32: 1>} : vector<1x128xi32>
    %c9_i32 = arith.constant 9 : i32
    %6 = vector.broadcast %c9_i32 : i32 to vector<1x128xi32>
    %7 = arith.cmpi slt, %5, %6 : vector<1x128xi32>
    %cst_5 = arith.constant 0xFF800000 : f32
    %8 = vector.broadcast %cst_5 : f32 to vector<1x128xf32>
    %9 = arith.select %7, %4, %8 : vector<1x128xi1>, vector<1x128xf32>
    %cst_6 = arith.constant dense<0xFF800000> : vector<1xf32>
    %10 = vector.multi_reduction <maximumf>, %9, %cst_6 [1] : vector<1x128xf32> to vector<1xf32>
    %11 = vector.shape_cast %10 : vector<1xf32> to vector<1x1xf32>
    %12 = vector.broadcast %11 : vector<1x1xf32> to vector<1x128xf32>
    %13 = arith.subf %9, %12 : vector<1x128xf32>
    %14 = math.exp %13 : vector<1x128xf32>
    %cst_7 = arith.constant dense<0.000000e+00> : vector<1xf32>
    %15 = vector.multi_reduction <add>, %14, %cst_7 [1] : vector<1x128xf32> to vector<1xf32>
    %16 = vector.shape_cast %15 : vector<1xf32> to vector<1x1xf32>
    %17 = vector.broadcast %16 : vector<1x1xf32> to vector<1x128xf32>
    %18 = arith.divf %14, %17 : vector<1x128xf32>
    %c0_8 = arith.constant 0 : index
    %c0_9 = arith.constant 0 : index
    %19 = vector.load %arg12[%c0_8, %c0_9] : memref<1x128xf32, #tpu.memory_space<vmem>>, vector<1x128xf32>
    tpu.vector_store %arg12[%c0_8, %c0_9], %18 {strides = array<i32>} : memref<1x128xf32, #tpu.memory_space<vmem>>, vector<1x128xf32>,
    %20 = arith.truncf %18 : vector<1x128xf32> to vector<1x128xbf16>
    %cst_10 = arith.constant dense<0.000000e+00> : vector<1x256xf32>
    %21 = tpu.matmul %20, %2, %cst_10 {dimension_numbers = #tpu.dot_dimension_numbers<[1], [0], [0], [1], [0, 0, 1, 1], [], []>} : vector<1x128xbf16>, vector<128x256xbf16>, vector<1x256xf32> -> vector<1x256xf32>
    %22 = tpu.concatenate %1, %21 in 1 : vector<1x256xf32>, vector<1x256xf32> -> vector<1x512xf32>
    %23 = arith.truncf %22 : vector<1x512xf32> to vector<1x512xbf16>
    %c0_11 = arith.constant 0 : index
    %c0_12 = arith.constant 0 : index
    %24 = vector.load %arg4[%c0_11, %c0_12] : memref<512x768xbf16, #tpu.memory_space<vmem>>, vector<512x768xbf16>
    %cst_13 = arith.constant dense<0.000000e+00> : vector<1x768xf32>
    %25 = tpu.matmul %23, %24, %cst_13 {dimension_numbers = #tpu.dot_dimension_numbers<[1], [0], [0], [1], [0, 0, 1, 1], [], []>} : vector<1x512xbf16>, vector<512x768xbf16>, vector<1x768xf32> -> vector<1x768xf32>
    %c0_14 = arith.constant 0 : index
    %c0_15 = arith.constant 0 : index
    %26 = vector.load %arg6[%c0_14, %c0_15] : memref<1x768xf32, #tpu.memory_space<vmem>>, vector<1x768xf32>
    %27 = arith.addf %25, %26 : vector<1x768xf32>
    %28 = arith.truncf %0 : vector<1x256xf32> to vector<1x256xbf16>
    %c0_16 = arith.constant 0 : index
    %c0_17 = arith.constant 0 : index
    %29 = vector.load %arg5[%c0_16, %c0_17] : memref<256x768xbf16, #tpu.memory_space<vmem>>, vector<256x768xbf16>
    %cst_18 = arith.constant dense<0.000000e+00> : vector<1x768xf32>
    %30 = tpu.matmul %28, %29, %cst_18 {dimension_numbers = #tpu.dot_dimension_numbers<[1], [0], [0], [1], [0, 0, 1, 1], [], []>} : vector<1x256xbf16>, vector<256x768xbf16>, vector<1x768xf32> -> vector<1x768xf32>
    %c0_19 = arith.constant 0 : index
    %c0_20 = arith.constant 0 : index
    %31 = vector.load %arg7[%c0_19, %c0_20] : memref<1x768xf32, #tpu.memory_space<vmem>>, vector<1x768xf32>
    %32 = arith.addf %30, %31 : vector<1x768xf32>
    %33 = vector.extract_strided_slice %27 {offsets = [0, 0], sizes = [1, 256], strides = [1, 1]} : vector<1x768xf32> to vector<1x256xf32>
    %34 = vector.extract_strided_slice %32 {offsets = [0, 0], sizes = [1, 256], strides = [1, 1]} : vector<1x768xf32> to vector<1x256xf32>
    %35 = arith.addf %33, %34 : vector<1x256xf32>
    %36 = arith.negf %35 : vector<1x256xf32>
    %37 = math.exp %36 : vector<1x256xf32>
    %cst_21 = arith.constant 1.000000e+00 : f32
    %38 = vector.broadcast %cst_21 : f32 to vector<1x256xf32>
    %39 = arith.addf %38, %37 : vector<1x256xf32>
    %40 = arith.divf %38, %39 : vector<1x256xf32>
    %41 = vector.extract_strided_slice %27 {offsets = [0, 256], sizes = [1, 256], strides = [1, 1]} : vector<1x768xf32> to vector<1x256xf32>
    %42 = vector.extract_strided_slice %32 {offsets = [0, 256], sizes = [1, 256], strides = [1, 1]} : vector<1x768xf32> to vector<1x256xf32>
    %43 = arith.addf %41, %42 : vector<1x256xf32>
    %44 = arith.negf %43 : vector<1x256xf32>
    %45 = math.exp %44 : vector<1x256xf32>
    %cst_22 = arith.constant 1.000000e+00 : f32
    %46 = vector.broadcast %cst_22 : f32 to vector<1x256xf32>
    %47 = arith.addf %46, %45 : vector<1x256xf32>
    %48 = arith.divf %46, %47 : vector<1x256xf32>
    %49 = vector.extract_strided_slice %27 {offsets = [0, 512], sizes = [1, 256], strides = [1, 1]} : vector<1x768xf32> to vector<1x256xf32>
    %50 = vector.extract_strided_slice %32 {offsets = [0, 512], sizes = [1, 256], strides = [1, 1]} : vector<1x768xf32> to vector<1x256xf32>
    %51 = arith.mulf %40, %50 : vector<1x256xf32>
    %52 = arith.addf %49, %51 : vector<1x256xf32>
    %53 = math.tanh %52 : vector<1x256xf32>
    %cst_23 = arith.constant 1.000000e+00 : f32
    %54 = vector.broadcast %cst_23 : f32 to vector<1x256xf32>
    %55 = arith.subf %54, %48 : vector<1x256xf32>
    %56 = arith.mulf %55, %53 : vector<1x256xf32>
    %57 = arith.mulf %48, %0 : vector<1x256xf32>
    %58 = arith.addf %56, %57 : vector<1x256xf32>
    %c0_24 = arith.constant 0 : index
    %c0_25 = arith.constant 0 : index
    %59 = vector.load %arg11[%c0_24, %c0_25] : memref<1x256xf32, #tpu.memory_space<vmem>>, vector<1x256xf32>
    tpu.vector_store %arg11[%c0_24, %c0_25], %58 {strides = array<i32>} : memref<1x256xf32, #tpu.memory_space<vmem>>, vector<1x256xf32>,
    %60 = tpu.concatenate %58, %21 in 1 : vector<1x256xf32>, vector<1x256xf32> -> vector<1x512xf32>
    %61 = arith.truncf %60 : vector<1x512xf32> to vector<1x512xbf16>
    %c0_26 = arith.constant 0 : index
    %c0_27 = arith.constant 0 : index
    %62 = vector.load %arg8[%c0_26, %c0_27] : memref<512x256xbf16, #tpu.memory_space<vmem>>, vector<512x256xbf16>
    %cst_28 = arith.constant dense<0.000000e+00> : vector<1x256xf32>
    %63 = tpu.matmul %61, %62, %cst_28 {dimension_numbers = #tpu.dot_dimension_numbers<[1], [0], [0], [1], [0, 0, 1, 1], [], []>} : vector<1x512xbf16>, vector<512x256xbf16>, vector<1x256xf32> -> vector<1x256xf32>
    %c0_29 = arith.constant 0 : index
    %c0_30 = arith.constant 0 : index
    %64 = vector.load %arg9[%c0_29, %c0_30] : memref<1x256xf32, #tpu.memory_space<vmem>>, vector<1x256xf32>
    %65 = arith.addf %63, %64 : vector<1x256xf32>
    %c0_31 = arith.constant 0 : index
    %c0_32 = arith.constant 0 : index
    %66 = vector.load %arg10[%c0_31, %c0_32] : memref<1x256xf32, #tpu.memory_space<vmem>>, vector<1x256xf32>
    tpu.vector_store %arg10[%c0_31, %c0_32], %65 {strides = array<i32>} : memref<1x256xf32, #tpu.memory_space<vmem>>, vector<1x256xf32>,
    return
  }
  func.func @transform_0(%arg0: i32) -> (i32, i32) {
    %c0_i32 = arith.constant 0 : i32
    %c0_i32_0 = arith.constant 0 : i32
    %c0_i32_1 = arith.constant 0 : i32
    return %c0_i32, %c0_i32_0 : i32, i32
  }
  func.func @transform_1(%arg0: i32) -> (i32, i32) {
    %c0_i32 = arith.constant 0 : i32
    %c0_i32_0 = arith.constant 0 : i32
    %c0_i32_1 = arith.constant 0 : i32
    return %c0_i32, %c0_i32_0 : i32, i32
  }
  func.func @transform_2(%arg0: i32) -> (i32, i32) {
    %c0_i32 = arith.constant 0 : i32
    %c0_i32_0 = arith.constant 0 : i32
    %c0_i32_1 = arith.constant 0 : i32
    return %c0_i32, %c0_i32_0 : i32, i32
  }
  func.func @transform_3(%arg0: i32) -> (i32, i32) {
    %c0_i32 = arith.constant 0 : i32
    %c0_i32_0 = arith.constant 0 : i32
    %c0_i32_1 = arith.constant 0 : i32
    return %c0_i32, %c0_i32_0 : i32, i32
  }
  func.func @transform_4(%arg0: i32) -> (i32, i32) {
    %c0_i32 = arith.constant 0 : i32
    %c0_i32_0 = arith.constant 0 : i32
    %c0_i32_1 = arith.constant 0 : i32
    return %c0_i32, %c0_i32_0 : i32, i32
  }
  func.func @transform_5(%arg0: i32) -> (i32, i32) {
    %c0_i32 = arith.constant 0 : i32
    %c0_i32_0 = arith.constant 0 : i32
    %c0_i32_1 = arith.constant 0 : i32
    return %c0_i32, %c0_i32_0 : i32, i32
  }
  func.func @transform_6(%arg0: i32) -> (i32, i32) {
    %c0_i32 = arith.constant 0 : i32
    %c0_i32_0 = arith.constant 0 : i32
    %c0_i32_1 = arith.constant 0 : i32
    return %c0_i32, %c0_i32_0 : i32, i32
  }
  func.func @transform_7(%arg0: i32) -> (i32, i32) {
    %c0_i32 = arith.constant 0 : i32
    %c0_i32_0 = arith.constant 0 : i32
    return %c0_i32, %arg0 : i32, i32
  }
  func.func @transform_8(%arg0: i32) -> (i32, i32) {
    %c0_i32 = arith.constant 0 : i32
    %c0_i32_0 = arith.constant 0 : i32
    return %c0_i32, %arg0 : i32, i32
  }
  func.func @transform_9(%arg0: i32) -> (i32, i32) {
    %c0_i32 = arith.constant 0 : i32
    %c0_i32_0 = arith.constant 0 : i32
    return %c0_i32, %arg0 : i32, i32
  }
  func.func @transform_10(%arg0: i32) -> (i32, i32) {
    %c0_i32 = arith.constant 0 : i32
    %c0_i32_0 = arith.constant 0 : i32
    %c0_i32_1 = arith.constant 0 : i32
    return %c0_i32, %c0_i32_0 : i32, i32
  }
  func.func @transform_11(%arg0: i32) -> (i32, i32) {
    %c0_i32 = arith.constant 0 : i32
    %c0_i32_0 = arith.constant 0 : i32
    %c0_i32_1 = arith.constant 0 : i32
    return %c0_i32, %c0_i32_0 : i32, i32
  }
}

</mosaic_0001>

<bundles_post_ra>
// kernel: tpu_custom_call.1
= control target key start
LH: loop header
LB: loop body
LE: loop exit
PB: predicated region body
PF: predicated region fallthrough
CT: control target
= control target key end

     0   :  { %17 = vsyncpa [#allocation3], 0  ;;  %s5703_s0 = inlined_call_operand.hbm [shape: f32[1,256], index: 0, kind: input, shape index: {}]   ;;  %s5704_s1 = inlined_call_operand.hbm [shape: f32[1,256], index: 1, kind: input, shape index: {}]   ;;  %s5705_s2 = inlined_call_operand.hbm [shape: bf16[128,256], index: 2, kind: input, shape index: {}]   ;;  %s5706_s3 = inlined_call_operand.hbm [shape: bf16[512,768], index: 3, kind: input, shape index: {}]   ;;  %s5707_s4 = inlined_call_operand.hbm [shape: bf16[256,768], index: 4, kind: input, shape index: {}]   ;;  %s5708_s5 = inlined_call_operand.hbm [shape: f32[1,768], index: 5, kind: input, shape index: {}]   ;;  %s5709_s6 = inlined_call_operand.hbm [shape: f32[1,768], index: 6, kind: input, shape index: {}]   ;;  %s5710_s7 = inlined_call_operand.hbm [shape: bf16[512,256], index: 7, kind: input, shape index: {}]   ;;  %s5711_s8 = inlined_call_operand.vmem [shape: f32[1,256], index: 8, kind: input, shape index: {}]   ;;  %s5712_s9 = inlined_call_operand.hbm [shape: f32[1,256], index: 9, kind: output, shape index: {0}]   ;;  %s5713_s10 = inlined_call_operand.hbm [shape: f32[1,256], index: 10, kind: output, shape index: {1}]   ;;  %s5714_s11 = inlined_call_operand.hbm [shape: f32[1,128], index: 11, kind: output, shape index: {2}]  }
   0x1   :  { %18 = vsyncpa [#allocation6], 0 }
   0x2   :  { %19 = vsyncpa [#allocation9], 0 }
   0x3   :  { %20 = vsyncpa [#allocation12], 0 }
   0x4   :  { %21 = vsyncpa [#allocation15], 0 }
   0x5   :  { %22 = vsyncpa [#allocation4], 0  ;;  %s40_s19 = sshll.u32 %s5704_s1, 4  ;;  %s41_s19 = int_to_ptr.hbm [resolvable:$true] %s40_s19 }
   0x6   :  { %23 = vsyncpa [#allocation18], 0  ;;  %s5394_s20 = smov [#allocation5]   ;;  %s63_s24 = sshll.u32 %s5706_s3, 4  ;;  %s64_s24 = int_to_ptr.hbm [resolvable:$true] %s63_s24 }
   0x7   :  { %s42_s21 = sshll.u32 %s5394_s20, 4  ;;  %s5395_s25 = smov [#allocation8]   ;;  %s43_s21 = int_to_ptr.vmem [resolvable:$true] %s42_s21 }
   0x8   :  { %45 = dma.hbm_to_vmem [thread:$0]  %s41_s19, 32, %s43_s21, [#allocation6]  }
   0x9   :  { %s65_s26 = sshll.u32 %s5395_s25, 4  ;;  %s5396_s27 = smov 384   ;;  %s66_s26 = int_to_ptr.vmem [resolvable:$true] %s65_s26 }
   0xa   :  { %s5397_s28 = smov 24   ;;  %s90_s30 = sshll.u32 %s5708_s5, 4  ;;  %s91_s30 = int_to_ptr.hbm [resolvable:$true] %s90_s30 }
   0xb   :  { %71 = dma.hbm_to_vmem [thread:$0]  %s64_s24, 24576, %s66_s26, [#allocation9], %s5396_s27, %s5396_s27, %s5397_s28  }
   0xc   :  { %s5398_s12 = smov [#allocation11]   ;;  %s29_s15 = sshll.u32 %s5703_s0, 4  ;;  %s30_s15 = int_to_ptr.hbm [resolvable:$true] %s29_s15 }
   0xd   :  { %s92_s13 = sshll.u32 %s5398_s12, 4  ;;  %s5399_s16 = smov [#allocation2]   ;;  %s93_s13 = int_to_ptr.vmem [resolvable:$true] %s92_s13 }
   0xe   :  { %95 = dma.hbm_to_vmem [thread:$0]  %s91_s30, 96, %s93_s13, [#allocation12]  }
   0xf   :  { %s31_s17 = sshll.u32 %s5399_s16, 4  ;;  %s50_s20 = sshll.u32 %s5705_s2, 4  ;;  %s32_s17 = int_to_ptr.vmem [resolvable:$true] %s31_s17  ;;  %s51_s20 = int_to_ptr.hbm [resolvable:$true] %s50_s20 }
  0x10   :  { %34 = dma.hbm_to_vmem [thread:$0]  %s30_s15, 32, %s32_s17, [#allocation3]  }
  0x11   :  { %s5400_s5 = smov [#allocation7]   ;;  %s76_s24 = sshll.u32 %s5707_s4, 4  ;;  %s77_s24 = int_to_ptr.hbm [resolvable:$true] %s76_s24 }
  0x12   :  { %s52_s21 = sshll.u32 %s5400_s5, 4  ;;  %s5401_s25 = smov 128   ;;  %s53_s21 = int_to_ptr.vmem [resolvable:$true] %s52_s21 }
  0x13   :  { %s5402_s0 = smov 8   ;;  %s5403_s26 = smov [#allocation10]  }
  0x14   :  { %58 = dma.hbm_to_vmem [thread:$0]  %s51_s20, 2048, %s53_s21, [#allocation6], %s5401_s25, %s5401_s25, %s5402_s0  }
  0x15   :  { %s78_s1 = sshll.u32 %s5403_s26, 4  ;;  %s101_s2 = sshll.u32 %s5709_s6, 4  ;;  %s79_s1 = int_to_ptr.vmem [resolvable:$true] %s78_s1  ;;  %s102_s2 = int_to_ptr.hbm [resolvable:$true] %s101_s2 }
  0x16   :  { %84 = dma.hbm_to_vmem [thread:$0]  %s77_s24, 12288, %s79_s1, [#allocation9], %s5396_s27, %s5396_s27, %s5397_s28  }
  0x17   :  { %s111_s4 = sshll.u32 %s5710_s7, 4  ;;  %s5404_s3 = smov [#allocation13]   ;;  %s112_s4 = int_to_ptr.hbm [resolvable:$true] %s111_s4 }
  0x18   :  { %s103_s14 = sshll.u32 %s5404_s3, 4  ;;  %s5405_s15 = smov [#allocation14]   ;;  %s104_s14 = int_to_ptr.vmem [resolvable:$true] %s103_s14 }
  0x19   :  { %106 = dma.hbm_to_vmem [thread:$0]  %s102_s2, 96, %s104_s14, [#allocation12]  }
  0x1a   :  { %s113_s16 = sshll.u32 %s5405_s15, 4  ;;  %s114_s16 = int_to_ptr.vmem [resolvable:$true] %s113_s16 }
  0x1b   :  { %119 = dma.hbm_to_vmem [thread:$0]  %s112_s4, 8192, %s114_s16, [#allocation15], %s5401_s25, %s5401_s25, %s5402_s0  }
  0x1c   :  { %5380 = dma.done.wait [#allocation3], 32  }
  0x1d   :  { %5381 = vsyncadd [#allocation3], 4294967264 }
  0x1e   :  { %5382 = dma.done.wait [#allocation6], 2080  }
  0x1f   :  { %5383 = vsyncadd [#allocation6], 4294965216 }
  0x20   :  { %5384 = dma.done.wait [#allocation9], 36864  }
  0x21   :  { %5385 = vsyncadd [#allocation9], 4294930432 }
  0x22   :  { %5386 = dma.done.wait [#allocation12], 192  }
  0x23   :  { %5387 = vsyncadd [#allocation12], 4294967104 }
  0x24   :  { %5388 = dma.done.wait [#allocation15], 8192  }
  0x25   :  { %5389 = vsyncadd [#allocation15], 4294959104  ;;  %v3291_v0 = vld [vmem:[#allocation7 + $0x70] sm:$0xf]  ;;  %v4724_v1 = vld [vmem:[#allocation7 + $0x74] sm:$0xf0]  ;;  %v285_v53 = vlaneseq }
  0x26   :  { %v4723_v2 = vld [vmem:[#allocation7 + $0x74] sm:$0xf]  ;;  %v3292_v3 = vor.u32 %v4724_v1, %v3291_v0  ;;  %v3293_v4 = vld [vmem:[#allocation7 + $0x78] sm:$0xf0]  ;;  %v3283_v6 = vld [vmem:[#allocation7 + $0x60] sm:$0xf] }
  0x27   :  { %v3296_v5 = vor.u32 %v4723_v2, %v3293_v4  ;;  %v4722_v7 = vld [vmem:[#allocation7 + $0x64] sm:$0xf0]  ;;  %v4721_v8 = vld [vmem:[#allocation7 + $0x64] sm:$0xf]  ;;  %v3285_v9 = vld [vmem:[#allocation7 + $0x68] sm:$0xf0] }
  0x28   :  { %259 = vmatpush.bf16.xpose.msra.mxu0 %v3292_v3  ;;  %316 = vmatpush.bf16.msra.mxu2 %v3292_v3  ;;  %v3284_v10 = vor.u32 %v4722_v7, %v3283_v6  ;;  %v3288_v11 = vor.u32 %v4721_v8, %v3285_v9  ;;  %v3275_v12 = vld [vmem:[#allocation7 + $0x50] sm:$0xf]  ;;  %v4720_v13 = vld [vmem:[#allocation7 + $0x54] sm:$0xf0]  ;;  %v4719_v14 = vld [vmem:[#allocation7 + $0x54] sm:$0xf] }
  0x29   :  { %272 = vmatpush.bf16.xpose.msra.mxu1 %v3296_v5  ;;  %329 = vmatpush.bf16.msra.mxu3 %v3296_v5  ;;  %v3277_v15 = vld [vmem:[#allocation7 + $0x58] sm:$0xf0]  ;;  %v3276_v16 = vor.u32 %v4720_v13, %v3275_v12  ;;  %v3267_v18 = vld [vmem:[#allocation7 + $0x40] sm:$0xf]  ;;  %v4718_v19 = vld [vmem:[#allocation7 + $0x44] sm:$0xf0] }
  0x2a   :  { %v3280_v17 = vor.u32 %v4719_v14, %v3277_v15  ;;  %v4717_v20 = vld [vmem:[#allocation7 + $0x44] sm:$0xf]  ;;  %v3269_v21 = vld [vmem:[#allocation7 + $0x48] sm:$0xf0]  ;;  %v3268_v22 = vor.u32 %v4718_v19, %v3267_v18  ;;  %v3259_v24 = vld [vmem:[#allocation7 + $0x30] sm:$0xf] }
  0x2b   :  { %v3272_v23 = vor.u32 %v4717_v20, %v3269_v21  ;;  %v4716_v25 = vld [vmem:[#allocation7 + $0x34] sm:$0xf0]  ;;  %v4715_v26 = vld [vmem:[#allocation7 + $0x34] sm:$0xf]  ;;  %v3261_v27 = vld [vmem:[#allocation7 + $0x38] sm:$0xf0] }
  0x2c   :  { %317 = vmatpush.bf16.msra.mxu2 %v3284_v10  ;;  %v3260_v28 = vor.u32 %v4716_v25, %v3259_v24  ;;  %v3264_v29 = vor.u32 %v4715_v26, %v3261_v27  ;;  %v3251_v30 = vld [vmem:[#allocation7 + $0x20] sm:$0xf]  ;;  %v4714_v31 = vld [vmem:[#allocation7 + $0x24] sm:$0xf0]  ;;  %v4713_v32 = vld [vmem:[#allocation7 + $0x24] sm:$0xf] }
  0x2d   :  { %330 = vmatpush.bf16.msra.mxu3 %v3288_v11  ;;  %v3253_v33 = vld [vmem:[#allocation7 + $0x28] sm:$0xf0]  ;;  %v3252_v34 = vor.u32 %v4714_v31, %v3251_v30  ;;  %v3243_v36 = vld [vmem:[#allocation7 + $0x10] sm:$0xf]  ;;  %v4712_v37 = vld [vmem:[#allocation7 + $0x14] sm:$0xf0] }
  0x2e   :  { %v3256_v35 = vor.u32 %v4713_v32, %v3253_v33  ;;  %v4711_v38 = vld [vmem:[#allocation7 + $0x14] sm:$0xf]  ;;  %v3245_v39 = vld [vmem:[#allocation7 + $0x18] sm:$0xf0]  ;;  %v3244_v40 = vor.u32 %v4712_v37, %v3243_v36  ;;  %v3235_v42 = vld [vmem:[#allocation7] sm:$0xf] }
  0x2f   :  { %v3248_v41 = vor.u32 %v4711_v38, %v3245_v39  ;;  %v4710_v43 = vld [vmem:[#allocation7 + $0x4] sm:$0xf0]  ;;  %v4709_v44 = vld [vmem:[#allocation7 + $0x4] sm:$0xf]  ;;  %v3237_v45 = vld [vmem:[#allocation7 + $0x8] sm:$0xf0] }
  0x30   :  { %260 = vmatpush.bf16.xpose.msra.mxu0 %v3284_v10  ;;  %318 = vmatpush.bf16.msra.mxu2 %v3276_v16  ;;  %v3236_v46 = vor.u32 %v4710_v43, %v3235_v42  ;;  %v3240_v47 = vor.u32 %v4709_v44, %v3237_v45  ;;  %v154_v48 = vld [vmem:[#allocation5] sm:$0x3]  ;;  %v286_v54 = vand.u32 127, %v285_v53  ;;  %vm289_vm1 = vcmask 1040384   ;;  %v3467_v62 = vld [vmem:[#allocation8 + $0x150] sm:$0xf] }
  0x31   :  { %273 = vmatpush.bf16.xpose.msra.mxu1 %v3288_v11  ;;  %331 = vmatpush.bf16.msra.mxu3 %v3280_v17  ;;  %v5499_v49 = vperm.slane %v154_v48, 0  ;;  %v5501_v50 = vperm.slane %v154_v48, 1  ;;  %v4770_v63 = vld [vmem:[#allocation8 + $0x164] sm:$0xf0]  ;;  %v3659_v0 = vld [vmem:[#allocation8 + $0x2d0] sm:$0xf] }
  0x32   :  { %vm287_vm0 = vcmp.lt.s32.totalorder %v286_v54, 9  ;;  %v3468_v1 = vor.u32 %v4770_v63, %v3467_v62  ;;  %v4818_v2 = vld [vmem:[#allocation8 + $0x2e4] sm:$0xf0]  ;;  %v3443_v3 = vld [vmem:[#allocation8 + $0x120] sm:$0xf]  ;;  %s3199_s27 = sshll.u32 %s5713_s10, 4  ;;  %s3200_s27 = int_to_ptr.hbm [resolvable:$true] %s3199_s27 }
  0x33   :  { %v5505_v51 = vpack.c.bf16 %v5499_v49, %v5499_v49  ;;  %v5509_v52 = vpack.c.bf16 %v5501_v50, %v5501_v50  ;;  %v4764_v4 = vld [vmem:[#allocation8 + $0x134] sm:$0xf0]  ;;  %v3660_v5 = vor.u32 %v4818_v2, %v3659_v0  ;;  %v3635_v6 = vld [vmem:[#allocation8 + $0x2a0] sm:$0xf]  ;;  %v3419_v15 = vld [vmem:[#allocation8 + $0xf0] sm:$0xf] }
  0x34   :  { %319 = vmatpush.bf16.msra.mxu2 %v3268_v22  ;;  %v4812_v7 = vld [vmem:[#allocation8 + $0x2b4] sm:$0xf0]  ;;  %v3444_v8 = vor.u32 %v4764_v4, %v3443_v3  ;;  %v3611_v18 = vld [vmem:[#allocation8 + $0x270] sm:$0xf]  ;;  %v4806_v19 = vld [vmem:[#allocation8 + $0x284] sm:$0xf0] }
  0x35   :  { %332 = vmatpush.bf16.msra.mxu3 %v3272_v23  ;;  %v3636_v9 = vor.u32 %v4812_v7, %v3635_v6  ;;  %v3612_v20 = vor.u32 %v4806_v19, %v3611_v18  ;;  %v3395_v21 = vld [vmem:[#allocation8 + $0xc0] sm:$0xf]  ;;  %v4800_v25 = vld [vmem:[#allocation8 + $0x254] sm:$0xf0]  ;;  %v3371_v27 = vld [vmem:[#allocation8 + $0x90] sm:$0xf] }
  0x36   :  { %v3587_v24 = vld [vmem:[#allocation8 + $0x240] sm:$0xf]  ;;  %v3563_v30 = vld [vmem:[#allocation8 + $0x210] sm:$0xf]  ;;  %v4794_v31 = vld [vmem:[#allocation8 + $0x224] sm:$0xf0] }
  0x37   :  { %v3588_v26 = vor.u32 %v4800_v25, %v3587_v24  ;;  %v3564_v32 = vor.u32 %v4794_v31, %v3563_v30  ;;  %v3347_v33 = vld [vmem:[#allocation8 + $0x60] sm:$0xf]  ;;  %v4788_v37 = vld [vmem:[#allocation8 + $0x1f4] sm:$0xf0]  ;;  %v3323_v39 = vld [vmem:[#allocation8 + $0x30] sm:$0xf] }
  0x38   :  { %261 = vmatpush.bf16.xpose.msra.mxu0 %v3276_v16  ;;  %320 = vmatpush.bf16.msra.mxu2 %v3260_v28  ;;  %v4758_v16 = vld [vmem:[#allocation8 + $0x104] sm:$0xf0]  ;;  %v3539_v36 = vld [vmem:[#allocation8 + $0x1e0] sm:$0xf]  ;;  %v4728_v45 = vld [vmem:[#allocation8 + $0x14] sm:$0xf0] }
  0x39   :  { %274 = vmatpush.bf16.xpose.msra.mxu1 %v3280_v17  ;;  %333 = vmatpush.bf16.msra.mxu3 %v3264_v29  ;;  %v3420_v17 = vor.u32 %v4758_v16, %v3419_v15  ;;  %v3540_v38 = vor.u32 %v4788_v37, %v3539_v36  ;;  %v4782_v43 = vld [vmem:[#allocation8 + $0x1c4] sm:$0xf0]  ;;  %v3299_v44 = vld [vmem:[#allocation8] sm:$0xf]  ;;  %v4776_v54 = vld [vmem:[#allocation8 + $0x194] sm:$0xf0] }
  0x3a   :  { %v3491_v48 = vld [vmem:[#allocation8 + $0x180] sm:$0xf]  ;;  %v3469_v2 = vld [vmem:[#allocation8 + $0x168] sm:$0xf0]  ;;  %v4815_v4 = vld [vmem:[#allocation8 + $0x2d4] sm:$0xf] }
  0x3b   :  { %v3637_v15 = vld [vmem:[#allocation8 + $0x2b8] sm:$0xf0]  ;;  %v4755_v18 = vld [vmem:[#allocation8 + $0xf4] sm:$0xf]  ;;  %v3421_v19 = vld [vmem:[#allocation8 + $0x108] sm:$0xf0] }
  0x3c   :  { %321 = vmatpush.bf16.msra.mxu2 %v3252_v34  ;;  %v155_v24 = vld [vmem:[#allocation2] sm:$0x3]  ;;  %s5406_s28 = smov [#allocation17]   ;;  %s3210_s20 = sshll.u32 %s5714_s11, 4  ;;  %s3211_s20 = int_to_ptr.hbm [resolvable:$true] %s3210_s20 }
  0x3d   :  { %334 = vmatpush.bf16.msra.mxu3 %v3256_v35  ;;  %v3397_v25 = vld [vmem:[#allocation8 + $0xd8] sm:$0xf0]  ;;  %s3197_s17 = sshll.u32 %s5406_s28, 4  ;;  %s5407_s5 = smov [#allocation19]   ;;  %s3198_s17 = int_to_ptr.vmem [resolvable:$true] %s3197_s17 }
  0x3e   :  { %s3208_s21 = sshll.u32 %s5407_s5, 4  ;;  %s5408_s11 = smov [#allocation16]   ;;  %s3209_s21 = int_to_ptr.vmem [resolvable:$true] %s3208_s21 }
  0x3f   :  { %s3186_s23 = sshll.u32 %s5408_s11, 4  ;;  %s3188_s0 = sshll.u32 %s5712_s9, 4  ;;  %s3187_s23 = int_to_ptr.vmem [resolvable:$true] %s3186_s23  ;;  %s3189_s0 = int_to_ptr.hbm [resolvable:$true] %s3188_s0 }
  0x40   :  { %262 = vmatpush.bf16.xpose.msra.mxu0 %v3268_v22  ;;  %322 = vmatpush.bf16.msra.mxu2 %v3244_v40  ;;  %v4752_v22 = vld [vmem:[#allocation8 + $0xd4] sm:$0xf0] }
  0x41   :  { %275 = vmatpush.bf16.xpose.msra.mxu1 %v3272_v23  ;;  %335 = vmatpush.bf16.msra.mxu3 %v3248_v41  ;;  %v3396_v23 = vor.u32 %v4752_v22, %v3395_v21  ;;  %v3613_v21 = vld [vmem:[#allocation8 + $0x288] sm:$0xf0] }
  0x44   :  { %323 = vmatpush.bf16.msra.mxu2 %v3236_v46 }
  0x45   :  { %336 = vmatpush.bf16.msra.mxu3 %v3240_v47 }
  0x48   :  { %263 = vmatpush.bf16.xpose.msra.mxu0 %v3260_v28  ;;  %1517 = vmatpush.bf16.msrb.mxu2 %v3468_v1  ;;  %v4746_v28 = vld [vmem:[#allocation8 + $0xa4] sm:$0xf0]  ;;  %v4767_v1 = vld [vmem:[#allocation8 + $0x154] sm:$0xf] }
  0x49   :  { %276 = vmatpush.bf16.xpose.msra.mxu1 %v3264_v29  ;;  %1530 = vmatpush.bf16.msrb.mxu3 %v3660_v5  ;;  %v3372_v29 = vor.u32 %v4746_v28, %v3371_v27  ;;  %v3661_v5 = vld [vmem:[#allocation8 + $0x2e8] sm:$0xf0]  ;;  %v3589_v27 = vld [vmem:[#allocation8 + $0x258] sm:$0xf0]  ;;  %v343_v28 = vperm.slane %v155_v24, 0 }
  0x4b   :  { %v5520_v36 = vpack.c.bf16 %v343_v28, %v343_v28  ;;  %v4741_v28 = vld [vmem:[#allocation8 + $0x7c] sm:$0xf0] }
  0x4c   :  { %1518 = vmatpush.bf16.msrb.mxu2 %v3444_v8  ;;  %v3472_v8 = vor.u32 %v4767_v1, %v3469_v2 }
  0x4d   :  { %1531 = vmatpush.bf16.msrb.mxu3 %v3636_v9  ;;  %v3664_v9 = vor.u32 %v4815_v4, %v3661_v5  ;;  %v3451_v5 = vld [vmem:[#allocation8 + $0x128] sm:$0xf] }
  0x50   :  { %264 = vmatpush.bf16.xpose.msra.mxu0 %v3252_v34  ;;  %1519 = vmatpush.bf16.msrb.mxu2 %v3420_v17  ;;  %v4740_v34 = vld [vmem:[#allocation8 + $0x74] sm:$0xf0] }
  0x51   :  { %277 = vmatpush.bf16.xpose.msra.mxu1 %v3256_v35  ;;  %1532 = vmatpush.bf16.msrb.mxu3 %v3612_v20  ;;  %v3348_v35 = vor.u32 %v4740_v34, %v3347_v33  ;;  %v4803_v20 = vld [vmem:[#allocation8 + $0x274] sm:$0xf]  ;;  %v3373_v33 = vld [vmem:[#allocation8 + $0xa8] sm:$0xf0] }
  0x52   :  { %v3616_v22 = vor.u32 %v4803_v20, %v3613_v21  ;;  %v4791_v34 = vld [vmem:[#allocation8 + $0x214] sm:$0xf]  ;;  %v3595_v20 = vld [vmem:[#allocation8 + $0x248] sm:$0xf]  ;;  %v4801_v21 = vld [vmem:[#allocation8 + $0x25c] sm:$0xf0] }
  0x54   :  { %1520 = vmatpush.bf16.msrb.mxu2 %v3396_v23  ;;  %v4749_v23 = vld [vmem:[#allocation8 + $0xc4] sm:$0xf] }
  0x55   :  { %1533 = vmatpush.bf16.msrb.mxu3 %v3588_v26  ;;  %v4797_v26 = vld [vmem:[#allocation8 + $0x244] sm:$0xf]  ;;  %v3400_v30 = vor.u32 %v4749_v23, %v3397_v25  ;;  %v3379_v23 = vld [vmem:[#allocation8 + $0x98] sm:$0xf] }
  0x56   :  { %v3592_v31 = vor.u32 %v4797_v26, %v3589_v27  ;;  %v3571_v25 = vld [vmem:[#allocation8 + $0x218] sm:$0xf]  ;;  %v4795_v26 = vld [vmem:[#allocation8 + $0x22c] sm:$0xf0]  ;;  %v3355_v27 = vld [vmem:[#allocation8 + $0x68] sm:$0xf] }
  0x58   :  { %265 = vmatpush.bf16.xpose.msra.mxu0 %v3244_v40  ;;  %1521 = vmatpush.bf16.msrb.mxu2 %v3372_v29  ;;  %v4734_v40 = vld [vmem:[#allocation8 + $0x44] sm:$0xf0]  ;;  %v344_v29 = vperm.slane %v155_v24, 1  ;;  %v4747_v24 = vld [vmem:[#allocation8 + $0xac] sm:$0xf0] }
  0x59   :  { %278 = vmatpush.bf16.xpose.msra.mxu1 %v3248_v41  ;;  %1534 = vmatpush.bf16.msrb.mxu3 %v3564_v32  ;;  %v3515_v41 = vld [vmem:[#allocation8 + $0x1b0] sm:$0xf]  ;;  %v3324_v42 = vor.u32 %v4734_v40, %v3323_v39  ;;  %v4743_v32 = vld [vmem:[#allocation8 + $0x94] sm:$0xf]  ;;  %v4737_v40 = vld [vmem:[#allocation8 + $0x64] sm:$0xf] }
  0x5a   :  { %v5522_v37 = vpack.c.bf16 %v344_v29, %v344_v29  ;;  %v3380_v29 = vor.u32 %v4747_v24, %v3379_v23  ;;  %v3755_v24 = vld [vmem:[#allocation8 + $0x390] sm:$0xf] }
  0x5c   :  { %1522 = vmatpush.bf16.msrb.mxu2 %v3348_v35  ;;  %v3565_v35 = vld [vmem:[#allocation8 + $0x228] sm:$0xf0] }
  0x5d   :  { %1535 = vmatpush.bf16.msrb.mxu3 %v3540_v38  ;;  %v3376_v38 = vor.u32 %v4743_v32, %v3373_v33  ;;  %v3568_v39 = vor.u32 %v4791_v34, %v3565_v35  ;;  %v4866_v32 = vld [vmem:[#allocation8 + $0x464] sm:$0xf0]  ;;  %v4043_v33 = vld [vmem:[#allocation8 + $0x5d0] sm:$0xf]  ;;  %v4789_v35 = vld [vmem:[#allocation8 + $0x1fc] sm:$0xf0] }
  0x5e   :  { %v3547_v34 = vld [vmem:[#allocation8 + $0x1e8] sm:$0xf] }
  0x60   :  { %266 = vmatpush.bf16.xpose.msra.mxu0 %v3236_v46  ;;  %v3516_v46 = vor.u32 %v4782_v43, %v3515_v41  ;;  %1523 = vmatpush.bf16.msrb.mxu2 %v3324_v42  ;;  %v3349_v41 = vld [vmem:[#allocation8 + $0x78] sm:$0xf0]  ;;  %v4785_v42 = vld [vmem:[#allocation8 + $0x1e4] sm:$0xf] }
  0x61   :  { %279 = vmatpush.bf16.xpose.msra.mxu1 %v3240_v47  ;;  %v3300_v47 = vor.u32 %v4728_v45, %v3299_v44  ;;  %v3541_v43 = vld [vmem:[#allocation8 + $0x1f8] sm:$0xf0]  ;;  %v3352_v44 = vor.u32 %v4737_v40, %v3349_v41  ;;  %v3331_v41 = vld [vmem:[#allocation8 + $0x38] sm:$0xf] }
  0x62   :  { %1536 = vmatpush.bf16.msrb.mxu3 %v3516_v46  ;;  %v3544_v45 = vor.u32 %v4785_v42, %v3541_v43  ;;  %v4731_v46 = vld [vmem:[#allocation8 + $0x34] sm:$0xf]  ;;  %v4735_v42 = vld [vmem:[#allocation8 + $0x4c] sm:$0xf0]  ;;  %v3356_v43 = vor.u32 %v4741_v28, %v3355_v27 }
  0x64   :  { %1524 = vmatpush.bf16.msrb.mxu2 %v3300_v47  ;;  %v3325_v47 = vld [vmem:[#allocation8 + $0x48] sm:$0xf0] }
  0x67   :  { %267 = vmatmul.bf16.vlgmr.msra.gmra.mxu0 %v5505_v51 }
  0x68   :  { %280 = vmatmul.bf16.vlgmr.msra.gmra.mxu1 %v5509_v52 }
  0xe4   :  { %v268_v55 = vpop.f32.mrf.mxu0 }
  0xe5   :  { %v281_v56 = vpop.f32.mrf.mxu1 }
  0xe6   :  { %v282_v57 = vadd.f32 %v281_v56, %v268_v55  ;;  %v3492_v55 = vor.u32 %v4776_v54, %v3491_v48  ;;  %v4779_v48 = vld [vmem:[#allocation8 + $0x1b4] sm:$0xf]  ;;  %v3517_v54 = vld [vmem:[#allocation8 + $0x1c8] sm:$0xf0] }
  0xe8   :  { %v288_v58 = vsel %vm287_vm0, %v282_v57, -inf  ;;  %1537 = vmatpush.bf16.msrb.mxu3 %v3492_v55  ;;  %v3328_v55 = vor.u32 %v4731_v46, %v3325_v47  ;;  %v4860_v46 = vld [vmem:[#allocation8 + $0x434] sm:$0xf0]  ;;  %v4019_v47 = vld [vmem:[#allocation8 + $0x5a0] sm:$0xf] }
  0xe9   :  { %v290_v59 = vsel %vm289_vm1, %v288_v58, -inf }
  0xea   :  { %291 = vmax.xlane.f32.xlu0 %v290_v59 }
  0xec   :  { %v270_v60 = vpop.f32.mrf.mxu0 }
  0xed   :  { %v283_v61 = vpop.f32.mrf.mxu1 }
 0x15d   :  { %v292_v10 = vpop.xlane.xlu0 %291 }
 0x15e   :  { %v293_v11 = vsub.f32 %v288_v58, %v292_v10  ;;  %v4761_v10 = vld [vmem:[#allocation8 + $0x124] sm:$0xf] }
 0x160   :  { %v294_v12 = vmul.f32 1.442695, %v293_v11  ;;  %v3445_v11 = vld [vmem:[#allocation8 + $0x138] sm:$0xf0] }
 0x161   :  { %v3448_v16 = vor.u32 %v4761_v10, %v3445_v11  ;;  %v3427_v11 = vld [vmem:[#allocation8 + $0xf8] sm:$0xf] }
 0x162   :  { %5092 = vpow2.f32 %v294_v12 }
 0x168   :  { %v5515_v13 = vpop.eup %5092 }
 0x169   :  { %v296_v14 = vsel %vm289_vm1, %v5515_v13, 0.0 }
 0x16a   :  { %297 = vadd.xlane.f32.xlu0 %v296_v14  ;;  %v4809_v14 = vld [vmem:[#allocation8 + $0x2a4] sm:$0xf] }
 0x16b   :  { %v3640_v17 = vor.u32 %v4809_v14, %v3637_v15  ;;  %v3619_v14 = vld [vmem:[#allocation8 + $0x278] sm:$0xf]  ;;  %v4807_v15 = vld [vmem:[#allocation8 + $0x28c] sm:$0xf0] }
 0x1dd   :  { %v298_v56 = vpop.xlane.xlu0 %297 }
 0x1de   :  { %5094 = vrcp.f32 %v298_v56  ;;  %v310_v60 = vand.u32 2147483648, %v298_v56  ;;  %v308_v62 = vand.u32 2147483647, %v298_v56  ;;  %vm304_vm3 = vweird.f32 %v298_v56 }
 0x1e0   :  { %v311_v0 = vor.u32 1.1754944e-38, %v310_v60  ;;  %vm309_vm5 = vcmp.eq.f32.partialorder %v308_v62, 8.507059e+37  ;;  %v4773_v60 = vld [vmem:[#allocation8 + $0x184] sm:$0xf]  ;;  %v4771_v62 = vld [vmem:[#allocation8 + $0x16c] sm:$0xf0] }
 0x1e4   :  { %v5095_v57 = vpop.eup %5094 }
 0x1e5   :  { %v300_v58 = vmul.f32 %v5095_v57, %v298_v56  ;;  %vm305_vm2 = vweird.f32 %v5095_v57  ;;  %v3520_v56 = vor.u32 %v4779_v48, %v3517_v54  ;;  %v3523_v48 = vld [vmem:[#allocation8 + $0x1b8] sm:$0xf]  ;;  %v4783_v54 = vld [vmem:[#allocation8 + $0x1cc] sm:$0xf0] }
 0x1e6   :  { %vm306_vm4 = vmor %vm304_vm3, %vm305_vm2 }
 0x1e7   :  { %v301_v59 = vsub.f32 1.0, %v300_v58  ;;  %v3301_v58 = vld [vmem:[#allocation8 + $0x18] sm:$0xf0] }
 0x1e9   :  { %v302_v61 = vmul.f32 %v5095_v57, %v301_v59  ;;  %v3475_v59 = vld [vmem:[#allocation8 + $0x158] sm:$0xf] }
 0x1eb   :  { %v303_v63 = vadd.f32 %v5095_v57, %v302_v61  ;;  %v3493_v61 = vld [vmem:[#allocation8 + $0x198] sm:$0xf0] }
 0x1ec   :  { %v3496_v2 = vor.u32 %v4773_v60, %v3493_v61  ;;  %v3332_v60 = vor.u32 %v4735_v42, %v3331_v41  ;;  %v3524_v61 = vor.u32 %v4783_v54, %v3523_v48  ;;  %v3597_v48 = vld [vmem:[#allocation8 + $0x260] sm:$0xf0] }
 0x1ed   :  { %v307_v3 = vsel %vm306_vm4, %v5095_v57, %v303_v63  ;;  %v4725_v57 = vld [vmem:[#allocation8 + $0x4] sm:$0xf]  ;;  %v3667_v63 = vld [vmem:[#allocation8 + $0x2d8] sm:$0xf] }
 0x1ee   :  { %v312_v6 = vsel %vm309_vm5, %v311_v0, %v307_v3  ;;  %v4819_v0 = vld [vmem:[#allocation8 + $0x2ec] sm:$0xf0]  ;;  %v3304_v1 = vor.u32 %v4725_v57, %v3301_v58  ;;  %v3476_v3 = vor.u32 %v4771_v62, %v3475_v59  ;;  %v3307_v58 = vld [vmem:[#allocation8 + $0x8] sm:$0xf]  ;;  %v4729_v59 = vld [vmem:[#allocation8 + $0x1c] sm:$0xf0] }
 0x1ef   :  { %v313_v7 = vmul.f32 %v5515_v13, %v312_v6  ;;  %v3424_v13 = vor.u32 %v4755_v18, %v3421_v19  ;;  %v3668_v4 = vor.u32 %v4819_v0, %v3667_v63  ;;  %v4765_v6 = vld [vmem:[#allocation8 + $0x13c] sm:$0xf0]  ;;  %v3403_v18 = vld [vmem:[#allocation8 + $0xc8] sm:$0xf]  ;;  %v4768_v62 = vld [vmem:[#allocation8 + $0x15c] sm:$0xf] }
 0x1f0   :  { %v4753_v19 = vld [vmem:[#allocation8 + $0xdc] sm:$0xf0]  ;;  %v3803_v63 = vld [vmem:[#allocation8 + $0x3f0] sm:$0xf]  ;;  %v4854_v0 = vld [vmem:[#allocation8 + $0x404] sm:$0xf0] }
 0x1f1   :  { %314 = vst [vmem:[#allocation19] sm:$0x1] %v313_v7  ;;  %v315_v12 = vpack.c.bf16 %v313_v7, %v313_v7  ;;  %v3643_v7 = vld [vmem:[#allocation8 + $0x2a8] sm:$0xf] }
 0x1f3   :  { %324 = vmatmul.bf16.vlgmr.msra.gmra.mxu2 %v315_v12  ;;  %337 = vmatmul.bf16.vlgmr.msra.gmra.mxu3 %v315_v12  ;;  %v4759_v12 = vld [vmem:[#allocation8 + $0x10c] sm:$0xf0] }
 0x1f4   :  { %1569 = vmatpush.bf16.msra.mxu2 %v3472_v8  ;;  %1582 = vmatpush.bf16.msra.mxu3 %v3664_v9  ;;  %v4813_v8 = vld [vmem:[#allocation8 + $0x2bc] sm:$0xf0]  ;;  %v3452_v9 = vor.u32 %v4765_v6, %v3451_v5  ;;  %v4902_v5 = vld [vmem:[#allocation8 + $0x584] sm:$0xf0]  ;;  %v3477_v6 = vld [vmem:[#allocation8 + $0x170] sm:$0xf0] }
 0x1f5   :  { %v3644_v10 = vor.u32 %v4813_v8, %v3643_v7  ;;  %v4816_v7 = vld [vmem:[#allocation8 + $0x2dc] sm:$0xf]  ;;  %v3669_v8 = vld [vmem:[#allocation8 + $0x2f0] sm:$0xf0] }
 0x1f8   :  { %1570 = vmatpush.bf16.msra.mxu2 %v3448_v16  ;;  %1583 = vmatpush.bf16.msra.mxu3 %v3640_v17  ;;  %v3428_v16 = vor.u32 %v4759_v12, %v3427_v11  ;;  %v3620_v17 = vor.u32 %v4807_v15, %v3619_v14  ;;  %v3779_v12 = vld [vmem:[#allocation8 + $0x3c0] sm:$0xf]  ;;  %v4848_v14 = vld [vmem:[#allocation8 + $0x3d4] sm:$0xf0] }
 0x1f9   :  { %v3971_v15 = vld [vmem:[#allocation8 + $0x540] sm:$0xf] }
 0x1fc   :  { %1571 = vmatpush.bf16.msra.mxu2 %v3424_v13  ;;  %1584 = vmatpush.bf16.msra.mxu3 %v3616_v22  ;;  %v3404_v13 = vor.u32 %v4753_v19, %v3403_v18  ;;  %v3596_v22 = vor.u32 %v4801_v21, %v3595_v20  ;;  %v4762_v18 = vld [vmem:[#allocation8 + $0x12c] sm:$0xf]  ;;  %v3780_v19 = vor.u32 %v4848_v14, %v3779_v12  ;;  %v4896_v20 = vld [vmem:[#allocation8 + $0x554] sm:$0xf0]  ;;  %v3453_v21 = vld [vmem:[#allocation8 + $0x140] sm:$0xf0] }
 0x1fd   :  { %v3972_v23 = vor.u32 %v4896_v20, %v3971_v15  ;;  %v3456_v27 = vor.u32 %v4762_v18, %v3453_v21  ;;  %v4872_v12 = vld [vmem:[#allocation8 + $0x494] sm:$0xf0]  ;;  %v4863_v14 = vld [vmem:[#allocation8 + $0x454] sm:$0xf]  ;;  %v3853_v15 = vld [vmem:[#allocation8 + $0x468] sm:$0xf0] }
 0x1fe   :  { %v3856_v18 = vor.u32 %v4863_v14, %v3853_v15  ;;  %v4045_v20 = vld [vmem:[#allocation8 + $0x5e8] sm:$0xf0]  ;;  %v4760_v14 = vld [vmem:[#allocation8 + $0x114] sm:$0xf0]  ;;  %v3627_v15 = vld [vmem:[#allocation8 + $0x280] sm:$0xf] }
 0x200   :  { %1572 = vmatpush.bf16.msra.mxu2 %v3400_v30  ;;  %1585 = vmatpush.bf16.msra.mxu3 %v3592_v31  ;;  %v3572_v30 = vor.u32 %v4795_v26, %v3571_v25  ;;  %v3851_v31 = vld [vmem:[#allocation8 + $0x450] sm:$0xf]  ;;  %v4842_v25 = vld [vmem:[#allocation8 + $0x3a4] sm:$0xf0] }
 0x201   :  { %v3947_v26 = vld [vmem:[#allocation8 + $0x510] sm:$0xf] }
 0x203   :  { %1525 = vmatmul.bf16.vlgmr.msrb.gmra.mxu2 %v5520_v36  ;;  %1538 = vmatmul.bf16.vlgmr.msrb.gmra.mxu3 %v5522_v37 }
 0x204   :  { %1573 = vmatpush.bf16.msra.mxu2 %v3376_v38  ;;  %1586 = vmatpush.bf16.msra.mxu3 %v3568_v39  ;;  %v3852_v38 = vor.u32 %v4866_v32, %v3851_v31  ;;  %v4914_v39 = vld [vmem:[#allocation8 + $0x5e4] sm:$0xf0]  ;;  %v3429_v32 = vld [vmem:[#allocation8 + $0x110] sm:$0xf0] }
 0x205   :  { %v4044_v40 = vor.u32 %v4914_v39, %v4043_v33  ;;  %v4890_v31 = vld [vmem:[#allocation8 + $0x524] sm:$0xf0]  ;;  %v4804_v33 = vld [vmem:[#allocation8 + $0x27c] sm:$0xf]  ;;  %v4836_v39 = vld [vmem:[#allocation8 + $0x374] sm:$0xf0] }
 0x206   :  { %1543 = vmatpush.bf16.msrb.mxu0 %v3852_v38  ;;  %v3731_v38 = vld [vmem:[#allocation8 + $0x360] sm:$0xf] }
 0x207   :  { %1556 = vmatpush.bf16.msrb.mxu1 %v4044_v40  ;;  %v3923_v40 = vld [vmem:[#allocation8 + $0x4e0] sm:$0xf] }
 0x208   :  { %1574 = vmatpush.bf16.msra.mxu2 %v3352_v44  ;;  %1587 = vmatpush.bf16.msra.mxu3 %v3544_v45  ;;  %v3548_v44 = vor.u32 %v4789_v35, %v3547_v34  ;;  %v3827_v45 = vld [vmem:[#allocation8 + $0x420] sm:$0xf]  ;;  %v3621_v34 = vld [vmem:[#allocation8 + $0x290] sm:$0xf0]  ;;  %v3948_v35 = vor.u32 %v4890_v31, %v3947_v26  ;;  %v3829_v26 = vld [vmem:[#allocation8 + $0x438] sm:$0xf0] }
 0x209   :  { %v3624_v42 = vor.u32 %v4804_v33, %v3621_v34  ;;  %v4021_v31 = vld [vmem:[#allocation8 + $0x5b8] sm:$0xf0]  ;;  %v4726_v33 = vld [vmem:[#allocation8 + $0xc] sm:$0xf]  ;;  %v3309_v34 = vld [vmem:[#allocation8 + $0x20] sm:$0xf0] }
 0x20c   :  { %1575 = vmatpush.bf16.msra.mxu2 %v3328_v55  ;;  %1588 = vmatpush.bf16.msra.mxu3 %v3520_v56  ;;  %v3828_v55 = vor.u32 %v4860_v46, %v3827_v45  ;;  %v4908_v56 = vld [vmem:[#allocation8 + $0x5b4] sm:$0xf0]  ;;  %v3405_v46 = vld [vmem:[#allocation8 + $0xe0] sm:$0xf0] }
 0x20d   :  { %v4020_v57 = vor.u32 %v4908_v56, %v4019_v47  ;;  %v4884_v45 = vld [vmem:[#allocation8 + $0x4f4] sm:$0xf0]  ;;  %v4798_v47 = vld [vmem:[#allocation8 + $0x24c] sm:$0xf]  ;;  %v4830_v56 = vld [vmem:[#allocation8 + $0x344] sm:$0xf0] }
 0x20e   :  { %1544 = vmatpush.bf16.msrb.mxu0 %v3828_v55  ;;  %v3924_v54 = vor.u32 %v4884_v45, %v3923_v40  ;;  %v3707_v55 = vld [vmem:[#allocation8 + $0x330] sm:$0xf]  ;;  %v4851_v40 = vld [vmem:[#allocation8 + $0x3f4] sm:$0xf] }
 0x20f   :  { %1557 = vmatpush.bf16.msrb.mxu1 %v4020_v57  ;;  %v3899_v57 = vld [vmem:[#allocation8 + $0x4b0] sm:$0xf] }
 0x210   :  { %1576 = vmatpush.bf16.msra.mxu2 %v3304_v1  ;;  %1589 = vmatpush.bf16.msra.mxu3 %v3496_v2  ;;  %v3995_v1 = vld [vmem:[#allocation8 + $0x570] sm:$0xf]  ;;  %v3499_v2 = vld [vmem:[#allocation8 + $0x188] sm:$0xf] }
 0x213   :  { %1577 = vmatmul.bf16.vlgmr.msra.gmra.mxu2 %v5520_v36  ;;  %1590 = vmatmul.bf16.vlgmr.msra.gmra.mxu3 %v5522_v37 }
 0x214   :  { %1621 = vmatpush.bf16.msrb.mxu2 %v3476_v3  ;;  %1634 = vmatpush.bf16.msrb.mxu3 %v3668_v4  ;;  %v4777_v3 = vld [vmem:[#allocation8 + $0x19c] sm:$0xf0]  ;;  %v3804_v4 = vor.u32 %v4854_v0, %v3803_v63  ;;  %v3381_v63 = vld [vmem:[#allocation8 + $0xb0] sm:$0xf0]  ;;  %v4792_v0 = vld [vmem:[#allocation8 + $0x21c] sm:$0xf] }
 0x215   :  { %v3500_v11 = vor.u32 %v4777_v3, %v3499_v2  ;;  %v4738_v3 = vld [vmem:[#allocation8 + $0x6c] sm:$0xf] }
 0x216   :  { %1545 = vmatpush.bf16.msrb.mxu0 %v3804_v4  ;;  %v3357_v4 = vld [vmem:[#allocation8 + $0x80] sm:$0xf0] }
 0x218   :  { %1622 = vmatpush.bf16.msrb.mxu2 %v3452_v9  ;;  %1635 = vmatpush.bf16.msrb.mxu3 %v3644_v10  ;;  %v3996_v9 = vor.u32 %v4902_v5, %v3995_v1  ;;  %v3308_v10 = vor.u32 %v4729_v59, %v3307_v58  ;;  %v3600_v59 = vor.u32 %v4798_v47, %v3597_v48  ;;  %v3573_v1 = vld [vmem:[#allocation8 + $0x230] sm:$0xf0]  ;;  %v4786_v5 = vld [vmem:[#allocation8 + $0x1ec] sm:$0xf]  ;;  %v4772_v47 = vld [vmem:[#allocation8 + $0x174] sm:$0xf0] }
 0x219   :  { %v3675_v48 = vld [vmem:[#allocation8 + $0x2e0] sm:$0xf] }
 0x21a   :  { %1558 = vmatpush.bf16.msrb.mxu1 %v3996_v9  ;;  %1546 = vmatpush.bf16.msrb.mxu0 %v3780_v19  ;;  %v4911_v19 = vld [vmem:[#allocation8 + $0x5d4] sm:$0xf] }
 0x21b   :  { %v4048_v21 = vor.u32 %v4911_v19, %v4045_v20  ;;  %v4833_v19 = vld [vmem:[#allocation8 + $0x364] sm:$0xf]  ;;  %v3733_v20 = vld [vmem:[#allocation8 + $0x378] sm:$0xf0] }
 0x21c   :  { %1623 = vmatpush.bf16.msrb.mxu2 %v3428_v16  ;;  %1636 = vmatpush.bf16.msrb.mxu3 %v3620_v17  ;;  %v3480_v16 = vor.u32 %v4768_v62, %v3477_v6  ;;  %v3672_v17 = vor.u32 %v4816_v7, %v3669_v8  ;;  %v4878_v62 = vld [vmem:[#allocation8 + $0x4c4] sm:$0xf0]  ;;  %v3683_v6 = vld [vmem:[#allocation8 + $0x300] sm:$0xf]  ;;  %v4824_v7 = vld [vmem:[#allocation8 + $0x314] sm:$0xf0] }
 0x21d   :  { %v3900_v2 = vor.u32 %v4878_v62, %v3899_v57  ;;  %v3875_v8 = vld [vmem:[#allocation8 + $0x480] sm:$0xf] }
 0x21e   :  { %1559 = vmatpush.bf16.msrb.mxu1 %v3972_v23  ;;  %v3360_v23 = vor.u32 %v4738_v3, %v3357_v4  ;;  %v4814_v3 = vld [vmem:[#allocation8 + $0x2c4] sm:$0xf0] }
 0x220   :  { %1624 = vmatpush.bf16.msrb.mxu2 %v3404_v13  ;;  %1637 = vmatpush.bf16.msrb.mxu3 %v3596_v22  ;;  %v4810_v13 = vld [vmem:[#allocation8 + $0x2ac] sm:$0xf]  ;;  %v3645_v22 = vld [vmem:[#allocation8 + $0x2c0] sm:$0xf0] }
 0x221   :  { %v3648_v28 = vor.u32 %v4810_v13, %v3645_v22  ;;  %v4732_v13 = vld [vmem:[#allocation8 + $0x3c] sm:$0xf]  ;;  %v3333_v22 = vld [vmem:[#allocation8 + $0x50] sm:$0xf0] }
 0x222   :  { %1560 = vmatpush.bf16.msrb.mxu1 %v3948_v35  ;;  %v3336_v35 = vor.u32 %v4732_v13, %v3333_v22 }
 0x224   :  { %1625 = vmatpush.bf16.msrb.mxu2 %v3380_v29  ;;  %1638 = vmatpush.bf16.msrb.mxu3 %v3572_v30  ;;  %v4756_v29 = vld [vmem:[#allocation8 + $0xfc] sm:$0xf]  ;;  %v3756_v30 = vor.u32 %v4842_v25, %v3755_v24  ;;  %v4857_v25 = vld [vmem:[#allocation8 + $0x424] sm:$0xf] }
 0x225   :  { %v3432_v41 = vor.u32 %v4756_v29, %v3429_v32  ;;  %v3525_v29 = vld [vmem:[#allocation8 + $0x1d0] sm:$0xf0] }
 0x226   :  { %1547 = vmatpush.bf16.msrb.mxu0 %v3756_v30  ;;  %1561 = vmatpush.bf16.msrb.mxu1 %v3924_v54  ;;  %v3832_v30 = vor.u32 %v4857_v25, %v3829_v26  ;;  %v4820_v54 = vld [vmem:[#allocation8 + $0x2f4] sm:$0xf0]  ;;  %v4754_v25 = vld [vmem:[#allocation8 + $0xe4] sm:$0xf0]  ;;  %v3603_v26 = vld [vmem:[#allocation8 + $0x250] sm:$0xf] }
 0x227   :  { %v3676_v62 = vor.u32 %v4820_v54, %v3675_v48  ;;  %v3363_v54 = vld [vmem:[#allocation8 + $0x70] sm:$0xf] }
 0x228   :  { %1626 = vmatpush.bf16.msrb.mxu2 %v3356_v43  ;;  %1639 = vmatpush.bf16.msrb.mxu3 %v3548_v44  ;;  %v4750_v43 = vld [vmem:[#allocation8 + $0xcc] sm:$0xf]  ;;  %v3732_v44 = vor.u32 %v4836_v39, %v3731_v38  ;;  %v3483_v39 = vld [vmem:[#allocation8 + $0x160] sm:$0xf] }
 0x229   :  { %v3408_v58 = vor.u32 %v4750_v43, %v3405_v46  ;;  %v4774_v43 = vld [vmem:[#allocation8 + $0x18c] sm:$0xf] }
 0x22a   :  { %1548 = vmatpush.bf16.msrb.mxu0 %v3732_v44  ;;  %1562 = vmatpush.bf16.msrb.mxu1 %v3900_v2  ;;  %v3501_v44 = vld [vmem:[#allocation8 + $0x1a0] sm:$0xf0]  ;;  %v3997_v46 = vld [vmem:[#allocation8 + $0x588] sm:$0xf0]  ;;  %v3651_v2 = vld [vmem:[#allocation8 + $0x2b0] sm:$0xf] }
 0x22b   :  { %v3504_v57 = vor.u32 %v4774_v43, %v3501_v44  ;;  %v4821_v44 = vld [vmem:[#allocation8 + $0x304] sm:$0xf] }
 0x22c   :  { %1627 = vmatpush.bf16.msrb.mxu2 %v3332_v60  ;;  %1640 = vmatpush.bf16.msrb.mxu3 %v3524_v61  ;;  %v4744_v60 = vld [vmem:[#allocation8 + $0x9c] sm:$0xf]  ;;  %v3708_v61 = vor.u32 %v4830_v56, %v3707_v55  ;;  %v3312_v56 = vor.u32 %v4726_v33, %v3309_v34 }
 0x22d   :  { %v3384_v9 = vor.u32 %v4744_v60, %v3381_v63  ;;  %v4893_v60 = vld [vmem:[#allocation8 + $0x544] sm:$0xf]  ;;  %v3459_v63 = vld [vmem:[#allocation8 + $0x130] sm:$0xf] }
 0x22e   :  { %1549 = vmatpush.bf16.msrb.mxu0 %v3708_v61  ;;  %v3484_v61 = vor.u32 %v4772_v47, %v3483_v39  ;;  %v4748_v39 = vld [vmem:[#allocation8 + $0xb4] sm:$0xf0] }
 0x230   :  { %1628 = vmatpush.bf16.msrb.mxu2 %v3308_v10  ;;  %1641 = vmatpush.bf16.msrb.mxu3 %v3500_v11  ;;  %v3576_v10 = vor.u32 %v4792_v0, %v3573_v1  ;;  %v3684_v11 = vor.u32 %v4824_v7, %v3683_v6  ;;  %v3973_v0 = vld [vmem:[#allocation8 + $0x558] sm:$0xf0]  ;;  %v4766_v1 = vld [vmem:[#allocation8 + $0x144] sm:$0xf0]  ;;  %v4839_v6 = vld [vmem:[#allocation8 + $0x394] sm:$0xf] }
 0x231   :  { %v3757_v7 = vld [vmem:[#allocation8 + $0x3a8] sm:$0xf0] }
 0x232   :  { %1550 = vmatpush.bf16.msrb.mxu0 %v3684_v11  ;;  %v3435_v11 = vld [vmem:[#allocation8 + $0x100] sm:$0xf] }
 0x233   :  { %1629 = vmatmul.bf16.vlgmr.msrb.gmra.mxu2 %v5520_v36  ;;  %1642 = vmatmul.bf16.vlgmr.msrb.gmra.mxu3 %v5522_v37  ;;  %v3436_v13 = vor.u32 %v4760_v14, %v3435_v11  ;;  %v4817_v11 = vld [vmem:[#allocation8 + $0x2e4] sm:$0xf] }
 0x234   :  { %1673 = vmatpush.bf16.msra.mxu2 %v3480_v16  ;;  %1686 = vmatpush.bf16.msra.mxu3 %v3672_v17  ;;  %v3549_v16 = vld [vmem:[#allocation8 + $0x200] sm:$0xf0]  ;;  %v3876_v17 = vor.u32 %v4872_v12, %v3875_v8  ;;  %v4887_v8 = vld [vmem:[#allocation8 + $0x514] sm:$0xf]  ;;  %v3949_v12 = vld [vmem:[#allocation8 + $0x528] sm:$0xf0] }
 0x235   :  { %v3552_v24 = vor.u32 %v4786_v5, %v3549_v16  ;;  %v3976_v5 = vor.u32 %v4893_v60, %v3973_v0  ;;  %v4808_v16 = vld [vmem:[#allocation8 + $0x294] sm:$0xf0] }
 0x236   :  { %1563 = vmatpush.bf16.msrb.mxu1 %v3876_v17  ;;  %1595 = vmatpush.bf16.msra.mxu0 %v3856_v18  ;;  %v3760_v17 = vor.u32 %v4839_v6, %v3757_v7  ;;  %v3952_v18 = vor.u32 %v4887_v8, %v3949_v12  ;;  %v3628_v22 = vor.u32 %v4808_v16, %v3627_v15  ;;  %v4736_v0 = vld [vmem:[#allocation8 + $0x54] sm:$0xf0]  ;;  %v4730_v6 = vld [vmem:[#allocation8 + $0x24] sm:$0xf0]  ;;  %v4769_v7 = vld [vmem:[#allocation8 + $0x164] sm:$0xf] }
 0x237   :  { %v3507_v8 = vld [vmem:[#allocation8 + $0x190] sm:$0xf]  ;;  %v3677_v12 = vld [vmem:[#allocation8 + $0x2f8] sm:$0xf0] }
 0x238   :  { %1674 = vmatpush.bf16.msra.mxu2 %v3456_v27  ;;  %1687 = vmatpush.bf16.msra.mxu3 %v3648_v28  ;;  %v4905_v27 = vld [vmem:[#allocation8 + $0x5a4] sm:$0xf]  ;;  %v4780_v28 = vld [vmem:[#allocation8 + $0x1bc] sm:$0xf] }
 0x239   :  { %v4024_v32 = vor.u32 %v4905_v27, %v4021_v31  ;;  %v3528_v38 = vor.u32 %v4780_v28, %v3525_v29  ;;  %v4802_v27 = vld [vmem:[#allocation8 + $0x264] sm:$0xf0]  ;;  %v3736_v28 = vor.u32 %v4833_v19, %v3733_v20  ;;  %v3709_v31 = vld [vmem:[#allocation8 + $0x348] sm:$0xf0]  ;;  %v4811_v20 = vld [vmem:[#allocation8 + $0x2b4] sm:$0xf] }
 0x23a   :  { %1608 = vmatpush.bf16.msra.mxu1 %v4048_v21  ;;  %1596 = vmatpush.bf16.msra.mxu0 %v3832_v30  ;;  %v4881_v21 = vld [vmem:[#allocation8 + $0x4e4] sm:$0xf]  ;;  %v4827_v30 = vld [vmem:[#allocation8 + $0x334] sm:$0xf]  ;;  %v3604_v34 = vor.u32 %v4802_v27, %v3603_v26  ;;  %v3461_v19 = vld [vmem:[#allocation8 + $0x148] sm:$0xf0] }
 0x23b   :  { %v3629_v26 = vld [vmem:[#allocation8 + $0x298] sm:$0xf0] }
 0x23c   :  { %1675 = vmatpush.bf16.msra.mxu2 %v3432_v41  ;;  %1688 = vmatpush.bf16.msra.mxu3 %v3624_v42  ;;  %v3805_v41 = vld [vmem:[#allocation8 + $0x408] sm:$0xf0]  ;;  %v4899_v42 = vld [vmem:[#allocation8 + $0x574] sm:$0xf] }
 0x23d   :  { %v3808_v45 = vor.u32 %v4851_v40, %v3805_v41  ;;  %v4000_v55 = vor.u32 %v4899_v42, %v3997_v46  ;;  %v3579_v40 = vld [vmem:[#allocation8 + $0x220] sm:$0xf]  ;;  %v4796_v41 = vld [vmem:[#allocation8 + $0x234] sm:$0xf0]  ;;  %v3712_v42 = vor.u32 %v4827_v30, %v3709_v31  ;;  %v4869_v46 = vld [vmem:[#allocation8 + $0x484] sm:$0xf] }
 0x23e   :  { %1609 = vmatpush.bf16.msra.mxu1 %v4024_v32  ;;  %v4875_v32 = vld [vmem:[#allocation8 + $0x4b4] sm:$0xf]  ;;  %v3580_v48 = vor.u32 %v4796_v41, %v3579_v40  ;;  %v3413_v30 = vld [vmem:[#allocation8 + $0xe8] sm:$0xf0]  ;;  %v3581_v40 = vld [vmem:[#allocation8 + $0x238] sm:$0xf0] }
 0x23f   :  { %1597 = vmatpush.bf16.msra.mxu0 %v3808_v45  ;;  %v3685_v45 = vld [vmem:[#allocation8 + $0x318] sm:$0xf0]  ;;  %v4799_v31 = vld [vmem:[#allocation8 + $0x254] sm:$0xf]  ;;  %v3859_v41 = vld [vmem:[#allocation8 + $0x458] sm:$0xf] }
 0x240   :  { %1676 = vmatpush.bf16.msra.mxu2 %v3408_v58  ;;  %1689 = vmatpush.bf16.msra.mxu3 %v3600_v59  ;;  %v4845_v58 = vld [vmem:[#allocation8 + $0x3c4] sm:$0xf]  ;;  %v3781_v59 = vld [vmem:[#allocation8 + $0x3d8] sm:$0xf0] }
 0x241   :  { %v3784_v4 = vor.u32 %v4845_v58, %v3781_v59  ;;  %v4790_v58 = vld [vmem:[#allocation8 + $0x204] sm:$0xf0]  ;;  %v3688_v59 = vor.u32 %v4821_v44, %v3685_v45  ;;  %v4915_v44 = vld [vmem:[#allocation8 + $0x5ec] sm:$0xf0] }
 0x242   :  { %1610 = vmatpush.bf16.msra.mxu1 %v4000_v55  ;;  %v3877_v55 = vld [vmem:[#allocation8 + $0x498] sm:$0xf0] }
 0x243   :  { %1598 = vmatpush.bf16.msra.mxu0 %v3784_v4  ;;  %v3880_v60 = vor.u32 %v4869_v46, %v3877_v55  ;;  %v3557_v55 = vld [vmem:[#allocation8 + $0x208] sm:$0xf0] }
 0x244   :  { %1677 = vmatpush.bf16.msra.mxu2 %v3384_v9  ;;  %1690 = vmatpush.bf16.msra.mxu3 %v3576_v10  ;;  %v3460_v9 = vor.u32 %v4766_v1, %v3459_v63  ;;  %v3652_v10 = vor.u32 %v4814_v3, %v3651_v2  ;;  %v3339_v63 = vld [vmem:[#allocation8 + $0x40] sm:$0xf]  ;;  %v4784_v2 = vld [vmem:[#allocation8 + $0x1d4] sm:$0xf0] }
 0x245   :  { %v3531_v1 = vld [vmem:[#allocation8 + $0x1c0] sm:$0xf]  ;;  %v3340_v3 = vor.u32 %v4736_v0, %v3339_v63  ;;  %v4027_v0 = vld [vmem:[#allocation8 + $0x5a8] sm:$0xf] }
 0x246   :  { %1611 = vmatpush.bf16.msra.mxu1 %v3976_v5  ;;  %v3532_v4 = vor.u32 %v4784_v2, %v3531_v1  ;;  %v3315_v5 = vld [vmem:[#allocation8 + $0x10] sm:$0xf]  ;;  %v4861_v63 = vld [vmem:[#allocation8 + $0x43c] sm:$0xf0] }
 0x247   :  { %1599 = vmatpush.bf16.msra.mxu0 %v3760_v17  ;;  %v3316_v14 = vor.u32 %v4730_v6, %v3315_v5  ;;  %v3680_v17 = vor.u32 %v4817_v11, %v3677_v12  ;;  %v4909_v1 = vld [vmem:[#allocation8 + $0x5bc] sm:$0xf0]  ;;  %v3341_v5 = vld [vmem:[#allocation8 + $0x58] sm:$0xf0]  ;;  %v4781_v6 = vld [vmem:[#allocation8 + $0x1c4] sm:$0xf] }
 0x248   :  { %1678 = vmatpush.bf16.msra.mxu2 %v3360_v23  ;;  %1691 = vmatpush.bf16.msra.mxu3 %v3552_v24  ;;  %v3411_v23 = vld [vmem:[#allocation8 + $0xd0] sm:$0xf]  ;;  %v3925_v24 = vld [vmem:[#allocation8 + $0x4f8] sm:$0xf0]  ;;  %v4003_v12 = vld [vmem:[#allocation8 + $0x578] sm:$0xf] }
 0x249   :  { %v3928_v29 = vor.u32 %v4881_v21, %v3925_v24  ;;  %v3412_v33 = vor.u32 %v4754_v25, %v3411_v23  ;;  %v3653_v21 = vld [vmem:[#allocation8 + $0x2c8] sm:$0xf0]  ;;  %v4757_v23 = vld [vmem:[#allocation8 + $0x104] sm:$0xf]  ;;  %v3437_v24 = vld [vmem:[#allocation8 + $0x118] sm:$0xf0] }
 0x24a   :  { %1612 = vmatpush.bf16.msra.mxu1 %v3952_v18  ;;  %v4763_v18 = vld [vmem:[#allocation8 + $0x134] sm:$0xf]  ;;  %v4805_v25 = vld [vmem:[#allocation8 + $0x284] sm:$0xf]  ;;  %v3440_v27 = vor.u32 %v4757_v23, %v3437_v24  ;;  %v4855_v11 = vld [vmem:[#allocation8 + $0x40c] sm:$0xf0] }
 0x24b   :  { %1600 = vmatpush.bf16.msra.mxu0 %v3736_v28  ;;  %v3632_v28 = vor.u32 %v4805_v25, %v3629_v26  ;;  %v3787_v26 = vld [vmem:[#allocation8 + $0x3c8] sm:$0xf] }
 0x24c   :  { %1679 = vmatpush.bf16.msra.mxu2 %v3336_v35  ;;  %1692 = vmatpush.bf16.msra.mxu3 %v3528_v38  ;;  %v3387_v35 = vld [vmem:[#allocation8 + $0xa0] sm:$0xf]  ;;  %v3901_v38 = vld [vmem:[#allocation8 + $0x4c8] sm:$0xf0] }
 0x24d   :  { %v3904_v43 = vor.u32 %v4875_v32, %v3901_v38  ;;  %v3388_v47 = vor.u32 %v4748_v39, %v3387_v35  ;;  %v3605_v32 = vld [vmem:[#allocation8 + $0x268] sm:$0xf0]  ;;  %v4745_v35 = vld [vmem:[#allocation8 + $0xa4] sm:$0xf]  ;;  %v3389_v38 = vld [vmem:[#allocation8 + $0xb8] sm:$0xf0] }
 0x24e   :  { %1613 = vmatpush.bf16.msra.mxu1 %v3928_v29  ;;  %v4751_v29 = vld [vmem:[#allocation8 + $0xd4] sm:$0xf]  ;;  %v4793_v39 = vld [vmem:[#allocation8 + $0x224] sm:$0xf]  ;;  %v3392_v45 = vor.u32 %v4745_v35, %v3389_v38 }
 0x24f   :  { %1601 = vmatpush.bf16.msra.mxu0 %v3712_v42  ;;  %v4867_v42 = vld [vmem:[#allocation8 + $0x46c] sm:$0xf0]  ;;  %v3584_v46 = vor.u32 %v4793_v39, %v3581_v40  ;;  %v4211_v40 = vld [vmem:[#allocation10 + $0x120] sm:$0xf] }
 0x250   :  { %1680 = vmatpush.bf16.msra.mxu2 %v3312_v56  ;;  %1693 = vmatpush.bf16.msra.mxu3 %v3504_v57  ;;  %v4742_v56 = vld [vmem:[#allocation8 + $0x84] sm:$0xf0]  ;;  %v3555_v57 = vld [vmem:[#allocation8 + $0x1f0] sm:$0xf] }
 0x252   :  { %1614 = vmatpush.bf16.msra.mxu1 %v3904_v43  ;;  %v4051_v43 = vld [vmem:[#allocation8 + $0x5d8] sm:$0xf] }
 0x253   :  { %1681 = vmatmul.bf16.vlgmr.msra.gmra.mxu2 %v5520_v36  ;;  %1694 = vmatmul.bf16.vlgmr.msra.gmra.mxu3 %v5522_v37 }
 0x254   :  { %1725 = vmatpush.bf16.msrb.mxu2 %v3484_v61  ;;  %1738 = vmatpush.bf16.msrb.mxu3 %v3676_v62  ;;  %v3364_v61 = vor.u32 %v4742_v56, %v3363_v54  ;;  %v3556_v62 = vor.u32 %v4790_v58, %v3555_v57  ;;  %v4787_v54 = vld [vmem:[#allocation8 + $0x1f4] sm:$0xf]  ;;  %v3860_v58 = vor.u32 %v4867_v42, %v3859_v41  ;;  %v4956_v41 = vld [vmem:[#allocation10 + $0x134] sm:$0xf0] }
 0x255   :  { %1602 = vmatpush.bf16.msra.mxu0 %v3688_v59  ;;  %v4052_v59 = vor.u32 %v4915_v44, %v4051_v43  ;;  %v3763_v42 = vld [vmem:[#allocation8 + $0x398] sm:$0xf]  ;;  %v4843_v43 = vld [vmem:[#allocation8 + $0x3ac] sm:$0xf0] }
 0x256   :  { %1615 = vmatpush.bf16.msra.mxu1 %v3880_v60  ;;  %v3835_v60 = vld [vmem:[#allocation8 + $0x428] sm:$0xf]  ;;  %v3955_v44 = vld [vmem:[#allocation8 + $0x518] sm:$0xf] }
 0x258   :  { %1726 = vmatpush.bf16.msrb.mxu2 %v3460_v9  ;;  %1739 = vmatpush.bf16.msrb.mxu3 %v3652_v10  ;;  %v4778_v9 = vld [vmem:[#allocation8 + $0x1a4] sm:$0xf0]  ;;  %v3485_v10 = vld [vmem:[#allocation8 + $0x178] sm:$0xf0] }
 0x259   :  { %v3508_v15 = vor.u32 %v4778_v9, %v3507_v8  ;;  %v3488_v16 = vor.u32 %v4769_v7, %v3485_v10  ;;  %v3533_v7 = vld [vmem:[#allocation8 + $0x1d8] sm:$0xf0]  ;;  %v3836_v8 = vor.u32 %v4861_v63, %v3835_v60  ;;  %v4028_v9 = vor.u32 %v4909_v1, %v4027_v0  ;;  %v3811_v10 = vld [vmem:[#allocation8 + $0x3f8] sm:$0xf]  ;;  %v4837_v60 = vld [vmem:[#allocation8 + $0x37c] sm:$0xf0] }
 0x25a   :  { %v3812_v24 = vor.u32 %v4855_v11, %v3811_v10  ;;  %v3931_v63 = vld [vmem:[#allocation8 + $0x4e8] sm:$0xf]  ;;  %v4885_v0 = vld [vmem:[#allocation8 + $0x4fc] sm:$0xf0]  ;;  %v4379_v1 = vld [vmem:[#allocation10 + $0x270] sm:$0xf] }
 0x25b   :  { %v4879_v10 = vld [vmem:[#allocation8 + $0x4cc] sm:$0xf0]  ;;  %v4355_v11 = vld [vmem:[#allocation10 + $0x240] sm:$0xf] }
 0x25c   :  { %1727 = vmatpush.bf16.msrb.mxu2 %v3436_v13  ;;  %1740 = vmatpush.bf16.msrb.mxu3 %v3628_v22  ;;  %v3464_v13 = vor.u32 %v4763_v18, %v3461_v19  ;;  %v3656_v22 = vor.u32 %v4811_v20, %v3653_v21  ;;  %v3317_v18 = vld [vmem:[#allocation8 + $0x28] sm:$0xf0]  ;;  %v4235_v19 = vld [vmem:[#allocation10 + $0x150] sm:$0xf]  ;;  %v4962_v20 = vld [vmem:[#allocation10 + $0x164] sm:$0xf0] }
 0x25d   :  { %v4775_v21 = vld [vmem:[#allocation8 + $0x194] sm:$0xf] }
 0x260   :  { %1728 = vmatpush.bf16.msrb.mxu2 %v3412_v33  ;;  %1741 = vmatpush.bf16.msrb.mxu3 %v3604_v34  ;;  %v3416_v33 = vor.u32 %v4751_v29, %v3413_v30  ;;  %v3608_v34 = vor.u32 %v4799_v31, %v3605_v32  ;;  %v4849_v29 = vld [vmem:[#allocation8 + $0x3dc] sm:$0xf0]  ;;  %v3979_v30 = vld [vmem:[#allocation8 + $0x548] sm:$0xf] }
 0x261   :  { %v4897_v31 = vld [vmem:[#allocation8 + $0x55c] sm:$0xf0]  ;;  %v3788_v38 = vor.u32 %v4849_v29, %v3787_v26  ;;  %v4986_v29 = vld [vmem:[#allocation10 + $0x224] sm:$0xf0] }
 0x262   :  { %v3980_v39 = vor.u32 %v4897_v31, %v3979_v30  ;;  %v4115_v31 = vld [vmem:[#allocation10 + $0x60] sm:$0xf] }
 0x264   :  { %1729 = vmatpush.bf16.msrb.mxu2 %v3388_v47  ;;  %1742 = vmatpush.bf16.msrb.mxu3 %v3580_v48  ;;  %v4739_v47 = vld [vmem:[#allocation8 + $0x74] sm:$0xf]  ;;  %v3365_v48 = vld [vmem:[#allocation8 + $0x88] sm:$0xf0] }
 0x265   :  { %v3368_v2 = vor.u32 %v4739_v47, %v3365_v48  ;;  %v5004_v47 = vld [vmem:[#allocation10 + $0x2b4] sm:$0xf0]  ;;  %v4212_v48 = vor.u32 %v4956_v41, %v4211_v40  ;;  %v3837_v40 = vld [vmem:[#allocation8 + $0x440] sm:$0xf0]  ;;  %v4906_v41 = vld [vmem:[#allocation8 + $0x5ac] sm:$0xf] }
 0x268   :  { %1730 = vmatpush.bf16.msrb.mxu2 %v3364_v61  ;;  %1743 = vmatpush.bf16.msrb.mxu3 %v3556_v62 }
 0x26c   :  { %1731 = vmatpush.bf16.msrb.mxu2 %v3340_v3  ;;  %1744 = vmatpush.bf16.msrb.mxu3 %v3532_v4  ;;  %v3560_v3 = vor.u32 %v4787_v54, %v3557_v55  ;;  %v4733_v4 = vld [vmem:[#allocation8 + $0x44] sm:$0xf]  ;;  %v3764_v54 = vor.u32 %v4843_v43, %v3763_v42  ;;  %v4187_v55 = vld [vmem:[#allocation10 + $0xf0] sm:$0xf] }
 0x26d   :  { %v4029_v43 = vld [vmem:[#allocation8 + $0x5c0] sm:$0xf0] }
 0x270   :  { %1732 = vmatpush.bf16.msrb.mxu2 %v3316_v14  ;;  %1745 = vmatpush.bf16.msrb.mxu3 %v3508_v15  ;;  %v4903_v14 = vld [vmem:[#allocation8 + $0x58c] sm:$0xf0]  ;;  %v3344_v15 = vor.u32 %v4733_v4, %v3341_v5  ;;  %v4163_v5 = vld [vmem:[#allocation10 + $0xc0] sm:$0xf] }
 0x271   :  { %v4004_v25 = vor.u32 %v4903_v14, %v4003_v12  ;;  %v4992_v12 = vld [vmem:[#allocation10 + $0x254] sm:$0xf0] }
 0x273   :  { %1733 = vmatmul.bf16.vlgmr.msrb.gmra.mxu2 %v5520_v36  ;;  %1746 = vmatmul.bf16.vlgmr.msrb.gmra.mxu3 %v5522_v37 }
 0x274   :  { %1777 = vmatpush.bf16.msra.mxu2 %v3488_v16  ;;  %1790 = vmatpush.bf16.msra.mxu3 %v3680_v17  ;;  %v3536_v16 = vor.u32 %v4781_v6, %v3533_v7  ;;  %v4727_v17 = vld [vmem:[#allocation8 + $0x14] sm:$0xf]  ;;  %v4944_v6 = vld [vmem:[#allocation10 + $0xd4] sm:$0xf0]  ;;  %v3932_v7 = vor.u32 %v4885_v0, %v3931_v63  ;;  %v4283_v63 = vld [vmem:[#allocation10 + $0x1b0] sm:$0xf] }
 0x275   :  { %v3320_v32 = vor.u32 %v4727_v17, %v3317_v18  ;;  %v4164_v14 = vor.u32 %v4944_v6, %v4163_v5  ;;  %v4938_v17 = vld [vmem:[#allocation10 + $0xa4] sm:$0xf0]  ;;  %v4963_v5 = vld [vmem:[#allocation10 + $0x16c] sm:$0xf0] }
 0x276   :  { %v325_v56 = vpop.f32.mrf.mxu2  ;;  %v338_v57 = vpop.f32.mrf.mxu3  ;;  %v3691_v18 = vld [vmem:[#allocation8 + $0x308] sm:$0xf] }
 0x277   :  { %v5534_v61 = vpack.c.bf16 %v325_v56, %v325_v56  ;;  %v5536_v62 = vpack.c.bf16 %v338_v57, %v338_v57  ;;  %v4950_v56 = vld [vmem:[#allocation10 + $0x104] sm:$0xf0] }
 0x278   :  { %1778 = vmatpush.bf16.msra.mxu2 %v3464_v13  ;;  %1791 = vmatpush.bf16.msra.mxu3 %v3656_v22  ;;  %v3509_v13 = vld [vmem:[#allocation8 + $0x1a8] sm:$0xf0]  ;;  %v4974_v0 = vld [vmem:[#allocation10 + $0x1c4] sm:$0xf0] }
 0x279   :  { %1551 = vmatmul.bf16.vlgmr.msrb.gmra.mxu0 %v5534_v61  ;;  %1564 = vmatmul.bf16.vlgmr.msrb.gmra.mxu1 %v5536_v62 }
 0x27a   :  { %1647 = vmatpush.bf16.msrb.mxu0 %v3860_v58  ;;  %1660 = vmatpush.bf16.msrb.mxu1 %v4052_v59  ;;  %v3739_v59 = vld [vmem:[#allocation8 + $0x368] sm:$0xf] }
 0x27b   :  { %v3740_v4 = vor.u32 %v4837_v60, %v3739_v59  ;;  %v4005_v60 = vld [vmem:[#allocation8 + $0x590] sm:$0xf0] }
 0x27c   :  { %1779 = vmatpush.bf16.msra.mxu2 %v3440_v27  ;;  %1792 = vmatpush.bf16.msra.mxu3 %v3632_v28  ;;  %v4427_v27 = vld [vmem:[#allocation10 + $0x2d0] sm:$0xf]  ;;  %v5010_v28 = vld [vmem:[#allocation10 + $0x2e4] sm:$0xf0] }
 0x27d   :  { %v4428_v35 = vor.u32 %v5010_v28, %v4427_v27  ;;  %v4053_v27 = vld [vmem:[#allocation8 + $0x5f0] sm:$0xf0]  ;;  %v4331_v28 = vld [vmem:[#allocation10 + $0x210] sm:$0xf] }
 0x27e   :  { %1648 = vmatpush.bf16.msrb.mxu0 %v3836_v8  ;;  %1661 = vmatpush.bf16.msrb.mxu1 %v4028_v9  ;;  %v327_v22 = vpop.f32.mrf.mxu2  ;;  %v340_v23 = vpop.f32.mrf.mxu3  ;;  %v4831_v9 = vld [vmem:[#allocation8 + $0x34c] sm:$0xf0] }
 0x27f   :  { %v4873_v22 = vld [vmem:[#allocation8 + $0x49c] sm:$0xf0]  ;;  %v4864_v23 = vld [vmem:[#allocation8 + $0x45c] sm:$0xf] }
 0x280   :  { %1780 = vmatpush.bf16.msra.mxu2 %v3416_v33  ;;  %1793 = vmatpush.bf16.msra.mxu3 %v3608_v34  ;;  %v3512_v33 = vor.u32 %v4775_v21, %v3509_v13  ;;  %v4236_v34 = vor.u32 %v4962_v20, %v4235_v19  ;;  %v4356_v20 = vor.u32 %v4992_v12, %v4355_v11  ;;  %v4825_v21 = vld [vmem:[#allocation8 + $0x31c] sm:$0xf0]  ;;  %v3883_v13 = vld [vmem:[#allocation8 + $0x488] sm:$0xf]  ;;  %v4968_v12 = vld [vmem:[#allocation10 + $0x194] sm:$0xf0] }
 0x281   :  { %v3692_v30 = vor.u32 %v4825_v21, %v3691_v18  ;;  %v4259_v11 = vld [vmem:[#allocation10 + $0x180] sm:$0xf]  ;;  %v4219_v18 = vld [vmem:[#allocation10 + $0x128] sm:$0xf] }
 0x282   :  { %1649 = vmatpush.bf16.msrb.mxu0 %v3812_v24  ;;  %1662 = vmatpush.bf16.msrb.mxu1 %v4004_v25  ;;  %v3861_v24 = vld [vmem:[#allocation8 + $0x470] sm:$0xf0]  ;;  %v4912_v25 = vld [vmem:[#allocation8 + $0x5dc] sm:$0xf]  ;;  %v4260_v21 = vor.u32 %v4968_v12, %v4259_v11  ;;  %v3867_v11 = vld [vmem:[#allocation8 + $0x460] sm:$0xf] }
 0x283   :  { %v4868_v12 = vld [vmem:[#allocation8 + $0x474] sm:$0xf0] }
 0x284   :  { %1781 = vmatpush.bf16.msra.mxu2 %v3392_v45  ;;  %1794 = vmatpush.bf16.msra.mxu3 %v3584_v46  ;;  %v4891_v45 = vld [vmem:[#allocation8 + $0x52c] sm:$0xf0]  ;;  %v4403_v46 = vld [vmem:[#allocation10 + $0x2a0] sm:$0xf] }
 0x285   :  { %v3956_v57 = vor.u32 %v4891_v45, %v3955_v44  ;;  %v4404_v58 = vor.u32 %v5004_v47, %v4403_v46  ;;  %v4307_v44 = vld [vmem:[#allocation10 + $0x1e0] sm:$0xf]  ;;  %v4980_v45 = vld [vmem:[#allocation10 + $0x1f4] sm:$0xf0]  ;;  %v4091_v46 = vld [vmem:[#allocation10 + $0x30] sm:$0xf] }
 0x286   :  { %1650 = vmatpush.bf16.msrb.mxu0 %v3788_v38  ;;  %1663 = vmatpush.bf16.msrb.mxu1 %v3980_v39  ;;  %v4332_v38 = vor.u32 %v4986_v29, %v4331_v28  ;;  %v4858_v39 = vld [vmem:[#allocation8 + $0x42c] sm:$0xf]  ;;  %v4926_v47 = vld [vmem:[#allocation10 + $0x44] sm:$0xf0]  ;;  %v5005_v28 = vld [vmem:[#allocation10 + $0x2bc] sm:$0xf0] }
 0x287   :  { %v4092_v59 = vor.u32 %v4926_v47, %v4091_v46  ;;  %v4171_v46 = vld [vmem:[#allocation10 + $0xc8] sm:$0xf]  ;;  %v4945_v47 = vld [vmem:[#allocation10 + $0xdc] sm:$0xf0] }
 0x288   :  { %1782 = vmatpush.bf16.msra.mxu2 %v3368_v2  ;;  %1795 = vmatpush.bf16.msra.mxu3 %v3560_v3  ;;  %v4998_v2 = vld [vmem:[#allocation10 + $0x284] sm:$0xf0]  ;;  %v4188_v3 = vor.u32 %v4950_v56, %v4187_v55  ;;  %v4308_v55 = vor.u32 %v4980_v45, %v4307_v44  ;;  %v4852_v56 = vld [vmem:[#allocation8 + $0x3fc] sm:$0xf]  ;;  %v1526_v44 = vpop.f32.mrf.mxu2 }
 0x289   :  { %1603 = vmatmul.bf16.vlgmr.msra.gmra.mxu0 %v5534_v61  ;;  %1616 = vmatmul.bf16.vlgmr.msra.gmra.mxu1 %v5536_v62  ;;  %v4380_v8 = vor.u32 %v4998_v2, %v4379_v1  ;;  %v4067_v1 = vld [vmem:[#allocation10] sm:$0xf]  ;;  %v4920_v2 = vld [vmem:[#allocation10 + $0x14] sm:$0xf0] }
 0x28a   :  { %1651 = vmatpush.bf16.msrb.mxu0 %v3764_v54  ;;  %1664 = vmatpush.bf16.msrb.mxu1 %v3956_v57  ;;  %v4032_v54 = vor.u32 %v4906_v41, %v4029_v43  ;;  %v3813_v57 = vld [vmem:[#allocation8 + $0x410] sm:$0xf0]  ;;  %v4387_v41 = vld [vmem:[#allocation10 + $0x278] sm:$0xf]  ;;  %v5547_v43 = vld [vmem:[#allocation11] sm:$0x3f] }
 0x28c   :  { %1783 = vmatpush.bf16.msra.mxu2 %v3344_v15  ;;  %1796 = vmatpush.bf16.msra.mxu3 %v3536_v16  ;;  %v4139_v16 = vld [vmem:[#allocation10 + $0x90] sm:$0xf] }
 0x28d   :  { %v4140_v26 = vor.u32 %v4938_v17, %v4139_v16  ;;  %v5011_v16 = vld [vmem:[#allocation10 + $0x2ec] sm:$0xf0] }
 0x28e   :  { %1652 = vmatpush.bf16.msrb.mxu0 %v3740_v4  ;;  %1665 = vmatpush.bf16.msrb.mxu1 %v3932_v7  ;;  %v4243_v4 = vld [vmem:[#allocation10 + $0x158] sm:$0xf]  ;;  %v4284_v7 = vor.u32 %v4974_v0, %v4283_v63  ;;  %v1539_v63 = vpop.f32.mrf.mxu3  ;;  %v4172_v0 = vor.u32 %v4945_v47, %v4171_v46 }
 0x28f   :  { %v4291_v47 = vld [vmem:[#allocation10 + $0x1b8] sm:$0xf] }
 0x290   :  { %1784 = vmatpush.bf16.msra.mxu2 %v3320_v32  ;;  %1797 = vmatpush.bf16.msra.mxu3 %v3512_v33  ;;  %v4932_v32 = vld [vmem:[#allocation10 + $0x74] sm:$0xf0]  ;;  %v3884_v33 = vor.u32 %v4873_v22, %v3883_v13  ;;  %v4840_v13 = vld [vmem:[#allocation8 + $0x39c] sm:$0xf]  ;;  %v3765_v22 = vld [vmem:[#allocation8 + $0x3b0] sm:$0xf0] }
 0x291   :  { %v4116_v42 = vor.u32 %v4932_v32, %v4115_v31  ;;  %v3768_v29 = vor.u32 %v4840_v13, %v3765_v22  ;;  %v4951_v31 = vld [vmem:[#allocation10 + $0x10c] sm:$0xf0]  ;;  %v4933_v13 = vld [vmem:[#allocation10 + $0x7c] sm:$0xf0] }
 0x293   :  { %1785 = vmatmul.bf16.vlgmr.msra.gmra.mxu2 %v5520_v36  ;;  %1798 = vmatmul.bf16.vlgmr.msra.gmra.mxu3 %v5522_v37  ;;  %v3715_v36 = vld [vmem:[#allocation8 + $0x338] sm:$0xf] }
 0x294   :  { %2419 = vmatpush.bf16.msrb.mxu2 %v4236_v34  ;;  %2432 = vmatpush.bf16.msrb.mxu3 %v4428_v35  ;;  %v3907_v37 = vld [vmem:[#allocation8 + $0x4b8] sm:$0xf]  ;;  %v3716_v15 = vor.u32 %v4831_v9, %v3715_v36  ;;  %v3864_v34 = vor.u32 %v4864_v23, %v3861_v24  ;;  %v4056_v35 = vor.u32 %v4912_v25, %v4053_v27  ;;  %v3789_v36 = vld [vmem:[#allocation8 + $0x3e0] sm:$0xf0]  ;;  %v4894_v9 = vld [vmem:[#allocation8 + $0x54c] sm:$0xf] }
 0x295   :  { %v3908_v19 = vor.u32 %v4879_v10, %v3907_v37  ;;  %v4068_v37 = vor.u32 %v4920_v2, %v4067_v1  ;;  %v3981_v10 = vld [vmem:[#allocation8 + $0x560] sm:$0xf0]  ;;  %v4888_v24 = vld [vmem:[#allocation8 + $0x51c] sm:$0xf]  ;;  %v3957_v25 = vld [vmem:[#allocation8 + $0x530] sm:$0xf0] }
 0x296   :  { %1653 = vmatpush.bf16.msrb.mxu0 %v3716_v15  ;;  %v4435_v15 = vld [vmem:[#allocation10 + $0x2d8] sm:$0xf]  ;;  %v4411_v27 = vld [vmem:[#allocation10 + $0x2a8] sm:$0xf]  ;;  %v3960_v32 = vor.u32 %v4888_v24, %v3957_v25  ;;  %v4993_v2 = vld [vmem:[#allocation10 + $0x25c] sm:$0xf0] }
 0x297   :  { %1666 = vmatpush.bf16.msrb.mxu1 %v3908_v19  ;;  %v4957_v19 = vld [vmem:[#allocation10 + $0x13c] sm:$0xf0]  ;;  %v4436_v23 = vor.u32 %v5011_v16, %v4435_v15  ;;  %v4363_v1 = vld [vmem:[#allocation10 + $0x248] sm:$0xf]  ;;  %v4916_v16 = vld [vmem:[#allocation8 + $0x5f4] sm:$0xf0] }
 0x298   :  { %2420 = vmatpush.bf16.msrb.mxu2 %v4212_v48  ;;  %2433 = vmatpush.bf16.msrb.mxu3 %v4404_v58  ;;  %v3840_v48 = vor.u32 %v4858_v39, %v3837_v40  ;;  %v4900_v58 = vld [vmem:[#allocation8 + $0x57c] sm:$0xf]  ;;  %v3933_v39 = vld [vmem:[#allocation8 + $0x500] sm:$0xf0] }
 0x299   :  { %v4008_v6 = vor.u32 %v4900_v58, %v4005_v60  ;;  %v4876_v58 = vld [vmem:[#allocation8 + $0x4bc] sm:$0xf] }
 0x29a   :  { %1654 = vmatpush.bf16.msrb.mxu0 %v3692_v30  ;;  %v4195_v30 = vld [vmem:[#allocation10 + $0xf8] sm:$0xf] }
 0x29b   :  { %1667 = vmatpush.bf16.msrb.mxu1 %v3884_v33  ;;  %v4834_v33 = vld [vmem:[#allocation8 + $0x36c] sm:$0xf]  ;;  %v4196_v40 = vor.u32 %v4951_v31, %v4195_v30  ;;  %v4910_v31 = vld [vmem:[#allocation8 + $0x5c4] sm:$0xf0] }
 0x29c   :  { %2421 = vmatpush.bf16.msrb.mxu2 %v4188_v3  ;;  %2434 = vmatpush.bf16.msrb.mxu3 %v4380_v8  ;;  %v3816_v3 = vor.u32 %v4852_v56, %v3813_v57  ;;  %v4846_v8 = vld [vmem:[#allocation8 + $0x3cc] sm:$0xf]  ;;  %v3717_v56 = vld [vmem:[#allocation8 + $0x350] sm:$0xf0] }
 0x29d   :  { %1655 = vmatmul.bf16.vlgmr.msrb.gmra.mxu0 %v5534_v61  ;;  %v3792_v17 = vor.u32 %v4846_v8, %v3789_v36  ;;  %v3693_v36 = vld [vmem:[#allocation8 + $0x320] sm:$0xf0] }
 0x29e   :  { %1699 = vmatpush.bf16.msra.mxu0 %v3864_v34  ;;  %1668 = vmatmul.bf16.vlgmr.msrb.gmra.mxu1 %v5536_v62  ;;  %v3741_v34 = vld [vmem:[#allocation8 + $0x380] sm:$0xf0] }
 0x29f   :  { %1712 = vmatpush.bf16.msra.mxu1 %v4056_v35  ;;  %v4412_v35 = vor.u32 %v5005_v28, %v4411_v27  ;;  %v3744_v45 = vor.u32 %v4834_v33, %v3741_v34  ;;  %v4862_v27 = vld [vmem:[#allocation8 + $0x444] sm:$0xf0]  ;;  %v4035_v28 = vld [vmem:[#allocation8 + $0x5b0] sm:$0xf]  ;;  %v4981_v33 = vld [vmem:[#allocation10 + $0x1fc] sm:$0xf0] }
 0x2a0   :  { %2422 = vmatpush.bf16.msrb.mxu2 %v4164_v14  ;;  %2435 = vmatpush.bf16.msrb.mxu3 %v4356_v20  ;;  %v4244_v14 = vor.u32 %v4963_v5, %v4243_v4  ;;  %v3984_v20 = vor.u32 %v4894_v9, %v3981_v10  ;;  %v4147_v4 = vld [vmem:[#allocation10 + $0x98] sm:$0xf]  ;;  %v4939_v5 = vld [vmem:[#allocation10 + $0xac] sm:$0xf0]  ;;  %v4870_v9 = vld [vmem:[#allocation8 + $0x48c] sm:$0xf]  ;;  %v4364_v10 = vor.u32 %v4993_v2, %v4363_v1 }
 0x2a1   :  { %v4148_v15 = vor.u32 %v4939_v5, %v4147_v4  ;;  %v4099_v34 = vld [vmem:[#allocation10 + $0x38] sm:$0xf]  ;;  %v3795_v2 = vld [vmem:[#allocation8 + $0x3d0] sm:$0xf] }
 0x2a2   :  { %1700 = vmatpush.bf16.msra.mxu0 %v3840_v48  ;;  %v1505_v48 = vperm.slane %v5547_v43, 0  ;;  %v3987_v4 = vld [vmem:[#allocation8 + $0x550] sm:$0xf] }
 0x2a3   :  { %1713 = vmatpush.bf16.msra.mxu1 %v4032_v54 }
 0x2a4   :  { %2423 = vmatpush.bf16.msrb.mxu2 %v4140_v26  ;;  %2436 = vmatpush.bf16.msrb.mxu3 %v4332_v38  ;;  %v4220_v26 = vor.u32 %v4957_v19, %v4219_v18  ;;  %v4882_v38 = vld [vmem:[#allocation8 + $0x4ec] sm:$0xf]  ;;  %v1527_v60 = vadd.f32 %v1526_v44, %v1505_v48  ;;  %v4987_v18 = vld [vmem:[#allocation10 + $0x22c] sm:$0xf0]  ;;  %v1528_v19 = vpop.f32.mrf.mxu2  ;;  %v4011_v44 = vld [vmem:[#allocation8 + $0x580] sm:$0xf] }
 0x2a5   :  { %v3936_v54 = vor.u32 %v4882_v38, %v3933_v39  ;;  %v3819_v39 = vld [vmem:[#allocation8 + $0x400] sm:$0xf]  ;;  %v4975_v48 = vld [vmem:[#allocation10 + $0x1cc] sm:$0xf0] }
 0x2a6   :  { %1701 = vmatpush.bf16.msra.mxu0 %v3816_v3  ;;  %v4292_v1 = vor.u32 %v4975_v48, %v4291_v47  ;;  %v3771_v19 = vld [vmem:[#allocation8 + $0x3a0] sm:$0xf]  ;;  %v4832_v48 = vld [vmem:[#allocation8 + $0x354] sm:$0xf0] }
 0x2a7   :  { %1714 = vmatpush.bf16.msra.mxu1 %v4008_v6  ;;  %v4822_v6 = vld [vmem:[#allocation8 + $0x30c] sm:$0xf]  ;;  %v3723_v47 = vld [vmem:[#allocation8 + $0x340] sm:$0xf] }
 0x2a8   :  { %2424 = vmatpush.bf16.msrb.mxu2 %v4116_v42  ;;  %2437 = vmatpush.bf16.msrb.mxu3 %v4308_v55  ;;  %v4999_v42 = vld [vmem:[#allocation10 + $0x28c] sm:$0xf0]  ;;  %v4828_v55 = vld [vmem:[#allocation8 + $0x33c] sm:$0xf] }
 0x2a9   :  { %v4388_v57 = vor.u32 %v4999_v42, %v4387_v41  ;;  %v3720_v3 = vor.u32 %v4828_v55, %v3717_v56  ;;  %v4856_v42 = vld [vmem:[#allocation8 + $0x414] sm:$0xf0]  ;;  %v4075_v56 = vld [vmem:[#allocation10 + $0x8] sm:$0xf] }
 0x2aa   :  { %1702 = vmatpush.bf16.msra.mxu0 %v3792_v17  ;;  %v4339_v17 = vld [vmem:[#allocation10 + $0x218] sm:$0xf] }
 0x2ab   :  { %1715 = vmatpush.bf16.msra.mxu1 %v3984_v20  ;;  %v3696_v20 = vor.u32 %v4822_v6, %v3693_v36  ;;  %v4340_v25 = vor.u32 %v4987_v18, %v4339_v17  ;;  %v4267_v36 = vld [vmem:[#allocation10 + $0x188] sm:$0xf] }
 0x2ac   :  { %2425 = vmatpush.bf16.msrb.mxu2 %v4092_v59  ;;  %2438 = vmatpush.bf16.msrb.mxu3 %v4284_v7  ;;  %v3909_v59 = vld [vmem:[#allocation8 + $0x4d0] sm:$0xf0]  ;;  %v5551_v7 = vadd.f32 %v1539_v63, %v1527_v60  ;;  %v1578_v55 = vpop.f32.mrf.mxu2  ;;  %v4964_v60 = vld [vmem:[#allocation10 + $0x174] sm:$0xf0] }
 0x2ad   :  { %v3912_v8 = vor.u32 %v4876_v58, %v3909_v59  ;;  %v3820_v58 = vor.u32 %v4856_v42, %v3819_v39  ;;  %v4251_v59 = vld [vmem:[#allocation10 + $0x160] sm:$0xf] }
 0x2ae   :  { %1703 = vmatpush.bf16.msra.mxu0 %v3768_v29  ;;  %v1541_v29 = vpop.f32.mrf.mxu3 }
 0x2af   :  { %1716 = vmatpush.bf16.msra.mxu1 %v3960_v32  ;;  %v4315_v32 = vld [vmem:[#allocation10 + $0x1e8] sm:$0xf]  ;;  %v4952_v29 = vld [vmem:[#allocation10 + $0x114] sm:$0xf0] }
 0x2b0   :  { %2426 = vmatpush.bf16.msrb.mxu2 %v4068_v37  ;;  %2439 = vmatpush.bf16.msrb.mxu3 %v4260_v21  ;;  %v3885_v37 = vld [vmem:[#allocation8 + $0x4a0] sm:$0xf0]  ;;  %v4123_v21 = vld [vmem:[#allocation10 + $0x68] sm:$0xf]  ;;  %v4316_v41 = vor.u32 %v4981_v33, %v4315_v32 }
 0x2b1   :  { %v3888_v22 = vor.u32 %v4870_v9, %v3885_v37  ;;  %v4124_v30 = vor.u32 %v4933_v13, %v4123_v21  ;;  %v4969_v9 = vld [vmem:[#allocation10 + $0x19c] sm:$0xf0]  ;;  %v4838_v32 = vld [vmem:[#allocation8 + $0x384] sm:$0xf0] }
 0x2b2   :  { %1704 = vmatpush.bf16.msra.mxu0 %v3744_v45  ;;  %v4904_v45 = vld [vmem:[#allocation8 + $0x594] sm:$0xf0]  ;;  %v4268_v18 = vor.u32 %v4969_v9, %v4267_v36  ;;  %v3963_v13 = vld [vmem:[#allocation8 + $0x520] sm:$0xf]  ;;  %v4874_v36 = vld [vmem:[#allocation8 + $0x4a4] sm:$0xf0] }
 0x2b3   :  { %2427 = vmatmul.bf16.vlgmr.msrb.gmra.mxu2 %v5505_v51  ;;  %2440 = vmatmul.bf16.vlgmr.msrb.gmra.mxu3 %v5509_v52 }
 0x2b4   :  { %2471 = vmatpush.bf16.msra.mxu2 %v4244_v14  ;;  %2484 = vmatpush.bf16.msra.mxu3 %v4436_v23  ;;  %v4059_v14 = vld [vmem:[#allocation8 + $0x5e0] sm:$0xf]  ;;  %v3868_v23 = vor.u32 %v4868_v12, %v3867_v11  ;;  %v5012_v12 = vld [vmem:[#allocation10 + $0x2f4] sm:$0xf0] }
 0x2b5   :  { %1717 = vmatpush.bf16.msra.mxu1 %v3936_v54  ;;  %v4060_v24 = vor.u32 %v4916_v16, %v4059_v14  ;;  %v1506_v54 = vperm.slane %v5547_v43, 1  ;;  %v4443_v11 = vld [vmem:[#allocation10 + $0x2e0] sm:$0xf]  ;;  %v4958_v16 = vld [vmem:[#allocation10 + $0x144] sm:$0xf0] }
 0x2b6   :  { %1705 = vmatpush.bf16.msra.mxu0 %v3720_v3  ;;  %v4850_v3 = vld [vmem:[#allocation8 + $0x3e4] sm:$0xf0]  ;;  %v1591_v5 = vpop.f32.mrf.mxu3  ;;  %v4444_v21 = vor.u32 %v5012_v12, %v4443_v11  ;;  %v4865_v11 = vld [vmem:[#allocation8 + $0x464] sm:$0xf]  ;;  %v3869_v12 = vld [vmem:[#allocation8 + $0x478] sm:$0xf0] }
 0x2b7   :  { %v1579_v63 = vadd.f32 %v1578_v55, %v1506_v54  ;;  %v3796_v14 = vor.u32 %v4850_v3, %v3795_v2  ;;  %v3915_v55 = vld [vmem:[#allocation8 + $0x4c0] sm:$0xf]  ;;  %v4940_v2 = vld [vmem:[#allocation10 + $0xb4] sm:$0xf0]  ;;  %v3699_v3 = vld [vmem:[#allocation8 + $0x310] sm:$0xf] }
 0x2b8   :  { %2472 = vmatpush.bf16.msra.mxu2 %v4220_v26  ;;  %2485 = vmatpush.bf16.msra.mxu3 %v4412_v35  ;;  %v3843_v26 = vld [vmem:[#allocation8 + $0x430] sm:$0xf] }
 0x2b9   :  { %1718 = vmatpush.bf16.msra.mxu1 %v3912_v8  ;;  %v4927_v35 = vld [vmem:[#allocation10 + $0x4c] sm:$0xf0]  ;;  %v3844_v38 = vor.u32 %v4862_v27, %v3843_v26  ;;  %v4898_v8 = vld [vmem:[#allocation8 + $0x564] sm:$0xf0]  ;;  %v5556_v37 = vadd.f32 %v1591_v5, %v1579_v63 }
 0x2ba   :  { %1706 = vmatpush.bf16.msra.mxu0 %v3696_v20  ;;  %v4100_v46 = vor.u32 %v4927_v35, %v4099_v34  ;;  %v3988_v17 = vor.u32 %v4898_v8, %v3987_v4  ;;  %v4844_v20 = vld [vmem:[#allocation8 + $0x3b4] sm:$0xf0]  ;;  %v5006_v26 = vld [vmem:[#allocation10 + $0x2c4] sm:$0xf0]  ;;  %v3939_v35 = vld [vmem:[#allocation8 + $0x4f0] sm:$0xf] }
 0x2bb   :  { %v3772_v27 = vor.u32 %v4844_v20, %v3771_v19  ;;  %v4994_v63 = vld [vmem:[#allocation10 + $0x264] sm:$0xf0]  ;;  %v3891_v8 = vld [vmem:[#allocation8 + $0x490] sm:$0xf]  ;;  %v4988_v19 = vld [vmem:[#allocation10 + $0x234] sm:$0xf0] }
 0x2bc   :  { %2473 = vmatpush.bf16.msra.mxu2 %v4196_v40  ;;  %2486 = vmatpush.bf16.msra.mxu3 %v4388_v57  ;;  %v4036_v40 = vor.u32 %v4910_v31, %v4035_v28  ;;  %v4921_v57 = vld [vmem:[#allocation10 + $0x1c] sm:$0xf0]  ;;  %v3747_v31 = vld [vmem:[#allocation8 + $0x370] sm:$0xf] }
 0x2bd   :  { %1719 = vmatpush.bf16.msra.mxu1 %v3888_v22  ;;  %1707 = vmatmul.bf16.vlgmr.msra.gmra.mxu0 %v5534_v61  ;;  %v4076_v6 = vor.u32 %v4921_v57, %v4075_v56  ;;  %v4892_v22 = vld [vmem:[#allocation8 + $0x534] sm:$0xf0]  ;;  %v4203_v28 = vld [vmem:[#allocation10 + $0x100] sm:$0xf]  ;;  %v3748_v42 = vor.u32 %v4838_v32, %v3747_v31  ;;  %v1507_v57 = vperm.slane %v5547_v43, 2 }
 0x2be   :  { %1751 = vmatpush.bf16.msrb.mxu0 %v3868_v23  ;;  %v1580_v23 = vpop.f32.mrf.mxu2  ;;  %v1593_v33 = vpop.f32.mrf.mxu3  ;;  %v4204_v39 = vor.u32 %v4952_v29, %v4203_v28  ;;  %v4880_v56 = vld [vmem:[#allocation8 + $0x4d4] sm:$0xf0]  ;;  %v4907_v28 = vld [vmem:[#allocation8 + $0x5b4] sm:$0xf]  ;;  %v4037_v31 = vld [vmem:[#allocation8 + $0x5c8] sm:$0xf0] }
 0x2bf   :  { %v3916_v5 = vor.u32 %v4880_v56, %v3915_v55  ;;  %v3872_v23 = vor.u32 %v4865_v11, %v3869_v12  ;;  %v4323_v32 = vld [vmem:[#allocation10 + $0x1f0] sm:$0xf]  ;;  %v4982_v33 = vld [vmem:[#allocation10 + $0x204] sm:$0xf0]  ;;  %v4841_v11 = vld [vmem:[#allocation8 + $0x3a4] sm:$0xf] }
 0x2c0   :  { %2474 = vmatpush.bf16.msra.mxu2 %v4172_v0  ;;  %2487 = vmatpush.bf16.msra.mxu3 %v4364_v10  ;;  %v4012_v0 = vor.u32 %v4904_v45, %v4011_v44  ;;  %v4252_v10 = vor.u32 %v4964_v60, %v4251_v59  ;;  %v4179_v44 = vld [vmem:[#allocation10 + $0xd0] sm:$0xf]  ;;  %v4946_v45 = vld [vmem:[#allocation10 + $0xe4] sm:$0xf0]  ;;  %v3773_v12 = vld [vmem:[#allocation8 + $0x3b8] sm:$0xf0] }
 0x2c1   :  { %1764 = vmatpush.bf16.msrb.mxu1 %v4060_v24  ;;  %v4180_v59 = vor.u32 %v4946_v45, %v4179_v44  ;;  %v4371_v60 = vld [vmem:[#allocation10 + $0x250] sm:$0xf]  ;;  %v3821_v44 = vld [vmem:[#allocation8 + $0x418] sm:$0xf0]  ;;  %v4901_v45 = vld [vmem:[#allocation8 + $0x584] sm:$0xf] }
 0x2c2   :  { %1720 = vmatmul.bf16.vlgmr.msra.gmra.mxu1 %v5536_v62  ;;  %1752 = vmatpush.bf16.msrb.mxu0 %v3844_v38  ;;  %v4886_v38 = vld [vmem:[#allocation8 + $0x504] sm:$0xf0]  ;;  %v4083_v55 = vld [vmem:[#allocation10 + $0x10] sm:$0xf] }
 0x2c3   :  { %v4922_v56 = vld [vmem:[#allocation10 + $0x24] sm:$0xf0] }
 0x2c4   :  { %2475 = vmatpush.bf16.msra.mxu2 %v4148_v15  ;;  %2488 = vmatpush.bf16.msra.mxu3 %v4340_v25  ;;  %v4227_v15 = vld [vmem:[#allocation10 + $0x130] sm:$0xf] }
 0x2c5   :  { %1765 = vmatpush.bf16.msrb.mxu1 %v4036_v40  ;;  %v4228_v24 = vor.u32 %v4958_v16, %v4227_v15  ;;  %v4419_v25 = vld [vmem:[#allocation10 + $0x2b0] sm:$0xf]  ;;  %v4395_v40 = vld [vmem:[#allocation10 + $0x280] sm:$0xf] }
 0x2c6   :  { %1753 = vmatpush.bf16.msrb.mxu0 %v3820_v58  ;;  %v4420_v34 = vor.u32 %v5006_v26, %v4419_v25  ;;  %v1630_v58 = vpop.f32.mrf.mxu2  ;;  %v1643_v9 = vpop.f32.mrf.mxu3  ;;  %v4859_v26 = vld [vmem:[#allocation8 + $0x434] sm:$0xf] }
 0x2c7   :  { %v1631_v4 = vadd.f32 %v1630_v58, %v1507_v57 }
 0x2c8   :  { %2476 = vmatpush.bf16.msra.mxu2 %v4124_v30  ;;  %2489 = vmatpush.bf16.msra.mxu3 %v4316_v41  ;;  %v3964_v30 = vor.u32 %v4892_v22, %v3963_v13  ;;  %v5000_v41 = vld [vmem:[#allocation10 + $0x294] sm:$0xf0]  ;;  %v4934_v13 = vld [vmem:[#allocation10 + $0x84] sm:$0xf0]  ;;  %v3892_v22 = vor.u32 %v4874_v36, %v3891_v8  ;;  %v1508_v8 = vperm.slane %v5547_v43, 3 }
 0x2c9   :  { %1766 = vmatpush.bf16.msrb.mxu1 %v4012_v0  ;;  %v4396_v54 = vor.u32 %v5000_v41, %v4395_v40  ;;  %v3724_v0 = vor.u32 %v4832_v48, %v3723_v47  ;;  %v5561_v15 = vadd.f32 %v1643_v9, %v1631_v4  ;;  %v4040_v40 = vor.u32 %v4907_v28, %v4037_v31  ;;  %v4013_v47 = vld [vmem:[#allocation8 + $0x598] sm:$0xf0]  ;;  %v4299_v48 = vld [vmem:[#allocation10 + $0x1c0] sm:$0xf]  ;;  %v4970_v4 = vld [vmem:[#allocation10 + $0x1a4] sm:$0xf0] }
 0x2ca   :  { %1754 = vmatpush.bf16.msrb.mxu0 %v3796_v14  ;;  %v4913_v14 = vld [vmem:[#allocation8 + $0x5e4] sm:$0xf]  ;;  %v4324_v41 = vor.u32 %v4982_v33, %v4323_v32  ;;  %v4016_v58 = vor.u32 %v4901_v45, %v4013_v47  ;;  %v3917_v31 = vld [vmem:[#allocation8 + $0x4d8] sm:$0xf0] }
 0x2cb   :  { %v4829_v28 = vld [vmem:[#allocation8 + $0x344] sm:$0xf] }
 0x2cc   :  { %2477 = vmatpush.bf16.msra.mxu2 %v4100_v46  ;;  %2490 = vmatpush.bf16.msra.mxu3 %v4292_v1  ;;  %v3940_v46 = vor.u32 %v4886_v38, %v3939_v35  ;;  %v4155_v1 = vld [vmem:[#allocation10 + $0xa0] sm:$0xf]  ;;  %v4928_v35 = vld [vmem:[#allocation10 + $0x54] sm:$0xf0] }
 0x2cd   :  { %1767 = vmatpush.bf16.msrb.mxu1 %v3988_v17  ;;  %v4156_v16 = vor.u32 %v4940_v2, %v4155_v1  ;;  %v4061_v17 = vld [vmem:[#allocation8 + $0x5f8] sm:$0xf0]  ;;  %v4084_v1 = vor.u32 %v4922_v56, %v4083_v55  ;;  %v3989_v2 = vld [vmem:[#allocation8 + $0x568] sm:$0xf0]  ;;  %v4953_v55 = vld [vmem:[#allocation10 + $0x124] sm:$0xf] }
 0x2ce   :  { %1755 = vmatpush.bf16.msrb.mxu0 %v3772_v27  ;;  %v3845_v27 = vld [vmem:[#allocation8 + $0x448] sm:$0xf0]  ;;  %v1632_v29 = vpop.f32.mrf.mxu2  ;;  %v4213_v56 = vld [vmem:[#allocation10 + $0x138] sm:$0xf0] }
 0x2cf   :  { %v3848_v38 = vor.u32 %v4859_v26, %v3845_v27  ;;  %v3725_v29 = vld [vmem:[#allocation8 + $0x358] sm:$0xf0] }
 0x2d0   :  { %2478 = vmatpush.bf16.msra.mxu2 %v4076_v6  ;;  %2491 = vmatpush.bf16.msra.mxu3 %v4268_v18  ;;  %v4826_v6 = vld [vmem:[#allocation8 + $0x324] sm:$0xf0]  ;;  %v4347_v18 = vld [vmem:[#allocation10 + $0x220] sm:$0xf]  ;;  %v3728_v32 = vor.u32 %v4829_v28, %v3725_v29  ;;  %v4929_v29 = vld [vmem:[#allocation10 + $0x64] sm:$0xf] }
 0x2d1   :  { %1768 = vmatpush.bf16.msrb.mxu1 %v3964_v30  ;;  %v3700_v20 = vor.u32 %v4826_v6, %v3699_v3  ;;  %v4348_v25 = vor.u32 %v4988_v19, %v4347_v18  ;;  %v4275_v3 = vld [vmem:[#allocation10 + $0x190] sm:$0xf]  ;;  %v3776_v18 = vor.u32 %v4841_v11, %v3773_v12  ;;  %v4989_v11 = vld [vmem:[#allocation10 + $0x244] sm:$0xf]  ;;  %v4357_v12 = vld [vmem:[#allocation10 + $0x258] sm:$0xf0] }
 0x2d2   :  { %1756 = vmatpush.bf16.msrb.mxu0 %v3748_v42  ;;  %v4853_v42 = vld [vmem:[#allocation8 + $0x404] sm:$0xf] }
 0x2d3   :  { %2479 = vmatmul.bf16.vlgmr.msra.gmra.mxu2 %v5505_v51  ;;  %2492 = vmatmul.bf16.vlgmr.msra.gmra.mxu3 %v5509_v52  ;;  %v3824_v57 = vor.u32 %v4853_v42, %v3821_v44  ;;  %v5007_v42 = vld [vmem:[#allocation10 + $0x2d4] sm:$0xf]  ;;  %v4429_v44 = vld [vmem:[#allocation10 + $0x2e8] sm:$0xf0] }
 0x2d4   :  { %2523 = vmatpush.bf16.msrb.mxu2 %v4252_v10  ;;  %2536 = vmatpush.bf16.msrb.mxu3 %v4444_v21  ;;  %v4372_v10 = vor.u32 %v4994_v63, %v4371_v60  ;;  %v4131_v21 = vld [vmem:[#allocation10 + $0x70] sm:$0xf]  ;;  %v4847_v60 = vld [vmem:[#allocation8 + $0x3d4] sm:$0xf]  ;;  %v3797_v63 = vld [vmem:[#allocation8 + $0x3e8] sm:$0xf0] }
 0x2d5   :  { %1769 = vmatpush.bf16.msrb.mxu1 %v3940_v46  ;;  %v4132_v30 = vor.u32 %v4934_v13, %v4131_v21  ;;  %v3800_v6 = vor.u32 %v4847_v60, %v3797_v63  ;;  %v4835_v21 = vld [vmem:[#allocation8 + $0x374] sm:$0xf]  ;;  %v3749_v13 = vld [vmem:[#allocation8 + $0x388] sm:$0xf0]  ;;  %v4216_v63 = vor.u32 %v4953_v55, %v4213_v56  ;;  %v5008_v56 = vld [vmem:[#allocation10 + $0x2dc] sm:$0xf] }
 0x2d6   :  { %1757 = vmatpush.bf16.msrb.mxu0 %v3724_v0  ;;  %v4895_v0 = vld [vmem:[#allocation8 + $0x554] sm:$0xf] }
 0x2d7   :  { %v3992_v9 = vor.u32 %v4895_v0, %v3989_v2  ;;  %v4947_v2 = vld [vmem:[#allocation10 + $0xf4] sm:$0xf] }
 0x2d8   :  { %2524 = vmatpush.bf16.msrb.mxu2 %v4228_v24  ;;  %2537 = vmatpush.bf16.msrb.mxu3 %v4420_v34  ;;  %v4064_v24 = vor.u32 %v4913_v14, %v4061_v17  ;;  %v4107_v34 = vld [vmem:[#allocation10 + $0x40] sm:$0xf]  ;;  %v4889_v14 = vld [vmem:[#allocation8 + $0x524] sm:$0xf]  ;;  %v4245_v55 = vld [vmem:[#allocation10 + $0x170] sm:$0xf0] }
 0x2d9   :  { %1770 = vmatpush.bf16.msrb.mxu1 %v3916_v5  ;;  %v4108_v46 = vor.u32 %v4928_v35, %v4107_v34  ;;  %v1682_v5 = vpop.f32.mrf.mxu2  ;;  %v4823_v34 = vld [vmem:[#allocation8 + $0x314] sm:$0xf]  ;;  %v3701_v35 = vld [vmem:[#allocation8 + $0x328] sm:$0xf0] }
 0x2da   :  { %1758 = vmatpush.bf16.msrb.mxu0 %v3700_v20  ;;  %v1683_v17 = vadd.f32 %v1682_v5, %v1508_v8  ;;  %v3704_v45 = vor.u32 %v4823_v34, %v3701_v35  ;;  %v4381_v5 = vld [vmem:[#allocation10 + $0x288] sm:$0xf0] }
 0x2dc   :  { %2525 = vmatpush.bf16.msrb.mxu2 %v4204_v39  ;;  %2538 = vmatpush.bf16.msrb.mxu3 %v4396_v54  ;;  %v1645_v39 = vpop.f32.mrf.mxu3  ;;  %v4976_v54 = vld [vmem:[#allocation10 + $0x1d4] sm:$0xf0] }
 0x2dd   :  { %1771 = vmatpush.bf16.msrb.mxu1 %v3892_v22  ;;  %1759 = vmatmul.bf16.vlgmr.msrb.gmra.mxu0 %v5534_v61  ;;  %v4883_v22 = vld [vmem:[#allocation8 + $0x4f4] sm:$0xf]  ;;  %v3893_v39 = vld [vmem:[#allocation8 + $0x4a8] sm:$0xf0] }
 0x2de   :  { %1803 = vmatpush.bf16.msra.mxu0 %v3872_v23  ;;  %v3941_v23 = vld [vmem:[#allocation8 + $0x508] sm:$0xf0] }
 0x2df   :  { %v3944_v27 = vor.u32 %v4883_v22, %v3941_v23  ;;  %v4935_v22 = vld [vmem:[#allocation10 + $0x94] sm:$0xf]  ;;  %v4141_v23 = vld [vmem:[#allocation10 + $0xa8] sm:$0xf0] }
 0x2e0   :  { %2526 = vmatpush.bf16.msrb.mxu2 %v4180_v59  ;;  %2539 = vmatpush.bf16.msrb.mxu3 %v4372_v10  ;;  %v4300_v59 = vor.u32 %v4976_v54, %v4299_v48  ;;  %v4276_v10 = vor.u32 %v4970_v4, %v4275_v3  ;;  %v1509_v48 = vperm.slane %v5547_v43, 4  ;;  %v4432_v54 = vor.u32 %v5007_v42, %v4429_v44  ;;  %v4189_v3 = vld [vmem:[#allocation10 + $0x108] sm:$0xf0]  ;;  %v4995_v4 = vld [vmem:[#allocation10 + $0x274] sm:$0xf] }
 0x2e1   :  { %1816 = vmatpush.bf16.msra.mxu1 %v4064_v24  ;;  %v1684_v24 = vpop.f32.mrf.mxu2  ;;  %v4192_v8 = vor.u32 %v4947_v2, %v4189_v3  ;;  %v1510_v2 = vperm.slane %v5547_v43, 5  ;;  %v4996_v43 = vld [vmem:[#allocation10 + $0x27c] sm:$0xf] }
 0x2e2   :  { %1772 = vmatmul.bf16.vlgmr.msrb.gmra.mxu1 %v5536_v62  ;;  %1804 = vmatpush.bf16.msra.mxu0 %v3848_v38  ;;  %v4871_v38 = vld [vmem:[#allocation8 + $0x494] sm:$0xf] }
 0x2e3   :  { %v4983_v24 = vld [vmem:[#allocation10 + $0x214] sm:$0xf] }
 0x2e4   :  { %2527 = vmatpush.bf16.msrb.mxu2 %v4156_v16  ;;  %2540 = vmatpush.bf16.msrb.mxu3 %v4348_v25  ;;  %v1695_v36 = vpop.f32.mrf.mxu3  ;;  %v3965_v16 = vld [vmem:[#allocation8 + $0x538] sm:$0xf0]  ;;  %v3752_v25 = vor.u32 %v4835_v21, %v3749_v13  ;;  %v4360_v13 = vor.u32 %v4989_v11, %v4357_v12 }
 0x2e5   :  { %1817 = vmatpush.bf16.msra.mxu1 %v4040_v40  ;;  %v5566_v19 = vadd.f32 %v1695_v36, %v1683_v17  ;;  %v3968_v20 = vor.u32 %v4889_v14, %v3965_v16  ;;  %v4959_v40 = vld [vmem:[#allocation10 + $0x154] sm:$0xf]  ;;  %v4384_v36 = vor.u32 %v4995_v4, %v4381_v5  ;;  %v4954_v4 = vld [vmem:[#allocation10 + $0x12c] sm:$0xf]  ;;  %v4221_v5 = vld [vmem:[#allocation10 + $0x140] sm:$0xf0] }
 0x2e6   :  { %1805 = vmatpush.bf16.msra.mxu0 %v3824_v57  ;;  %v5001_v57 = vld [vmem:[#allocation10 + $0x2a4] sm:$0xf]  ;;  %v4224_v12 = vor.u32 %v4954_v4, %v4221_v5  ;;  %v4253_v5 = vld [vmem:[#allocation10 + $0x178] sm:$0xf0] }
 0x2e7   :  { %v4961_v4 = vld [vmem:[#allocation10 + $0x164] sm:$0xf] }
 0x2e8   :  { %2528 = vmatpush.bf16.msrb.mxu2 %v4132_v30  ;;  %2541 = vmatpush.bf16.msrb.mxu3 %v4324_v41  ;;  %v4877_v30 = vld [vmem:[#allocation8 + $0x4c4] sm:$0xf]  ;;  %v4237_v41 = vld [vmem:[#allocation10 + $0x168] sm:$0xf0] }
 0x2e9   :  { %1818 = vmatpush.bf16.msra.mxu1 %v4016_v58  ;;  %v3920_v33 = vor.u32 %v4877_v30, %v3917_v31  ;;  %v4240_v47 = vor.u32 %v4959_v40, %v4237_v41  ;;  %v4405_v58 = vld [vmem:[#allocation10 + $0x2b8] sm:$0xf0]  ;;  %v4977_v31 = vld [vmem:[#allocation10 + $0x1e4] sm:$0xf]  ;;  %v4971_v40 = vld [vmem:[#allocation10 + $0x1b4] sm:$0xf] }
 0x2ea   :  { %1806 = vmatpush.bf16.msra.mxu0 %v3800_v6  ;;  %v4117_v30 = vld [vmem:[#allocation10 + $0x78] sm:$0xf0]  ;;  %v4285_v41 = vld [vmem:[#allocation10 + $0x1c8] sm:$0xf0] }
 0x2eb   :  { %v4120_v35 = vor.u32 %v4929_v29, %v4117_v30  ;;  %v4288_v44 = vor.u32 %v4971_v40, %v4285_v41 }
 0x2ec   :  { %2529 = vmatpush.bf16.msrb.mxu2 %v4108_v46  ;;  %2542 = vmatpush.bf16.msrb.mxu3 %v4300_v59  ;;  %v1697_v26 = vpop.f32.mrf.mxu3  ;;  %v3896_v46 = vor.u32 %v4871_v38, %v3893_v39  ;;  %v4923_v38 = vld [vmem:[#allocation10 + $0x34] sm:$0xf]  ;;  %v4093_v39 = vld [vmem:[#allocation10 + $0x48] sm:$0xf0] }
 0x2ed   :  { %1819 = vmatpush.bf16.msra.mxu1 %v3992_v9  ;;  %v4941_v9 = vld [vmem:[#allocation10 + $0xc4] sm:$0xf]  ;;  %v4096_v42 = vor.u32 %v4923_v38, %v4093_v39 }
 0x2ee   :  { %1807 = vmatpush.bf16.msra.mxu0 %v3776_v18 }
 0x2f0   :  { %2530 = vmatpush.bf16.msrb.mxu2 %v4084_v1  ;;  %2543 = vmatpush.bf16.msrb.mxu3 %v4276_v10  ;;  %v4408_v1 = vor.u32 %v5001_v57, %v4405_v58  ;;  %v4165_v10 = vld [vmem:[#allocation10 + $0xd8] sm:$0xf0]  ;;  %v4437_v57 = vld [vmem:[#allocation10 + $0x2f0] sm:$0xf0] }
 0x2f1   :  { %1820 = vmatpush.bf16.msra.mxu1 %v3968_v20  ;;  %v4168_v20 = vor.u32 %v4941_v9, %v4165_v10  ;;  %v4440_v3 = vor.u32 %v5008_v56, %v4437_v57  ;;  %v4413_v9 = vld [vmem:[#allocation10 + $0x2c0] sm:$0xf0]  ;;  %v4972_v56 = vld [vmem:[#allocation10 + $0x1bc] sm:$0xf]  ;;  %v4293_v57 = vld [vmem:[#allocation10 + $0x1d0] sm:$0xf0] }
 0x2f2   :  { %1808 = vmatpush.bf16.msra.mxu0 %v3752_v25  ;;  %v4333_v25 = vld [vmem:[#allocation10 + $0x228] sm:$0xf0] }
 0x2f3   :  { %2531 = vmatmul.bf16.vlgmr.msrb.gmra.mxu2 %v5505_v51  ;;  %2544 = vmatmul.bf16.vlgmr.msrb.gmra.mxu3 %v5509_v52  ;;  %v4336_v28 = vor.u32 %v4983_v24, %v4333_v25  ;;  %v4942_v24 = vld [vmem:[#allocation10 + $0xcc] sm:$0xf]  ;;  %v4173_v25 = vld [vmem:[#allocation10 + $0xe0] sm:$0xf0] }
 0x2f5   :  { %1821 = vmatpush.bf16.msra.mxu1 %v3944_v27  ;;  %v4144_v27 = vor.u32 %v4935_v22, %v4141_v23 }
 0x2f6   :  { %1809 = vmatpush.bf16.msra.mxu0 %v3728_v32  ;;  %v1734_v59 = vpop.f32.mrf.mxu2  ;;  %v1747_v60 = vpop.f32.mrf.mxu3  ;;  %v4309_v32 = vld [vmem:[#allocation10 + $0x1f8] sm:$0xf0] }
 0x2f7   :  { %v1735_v0 = vadd.f32 %v1734_v59, %v1509_v48  ;;  %v1552_v17 = vpop.f32.mrf.mxu0  ;;  %v1565_v18 = vpop.f32.mrf.mxu1  ;;  %v4261_v48 = vld [vmem:[#allocation10 + $0x198] sm:$0xf0] }
 0x2f8   :  { %v1553_v21 = vadd.f32 %v1552_v17, %v5551_v7  ;;  %v4312_v7 = vor.u32 %v4977_v31, %v4309_v32  ;;  %v4197_v17 = vld [vmem:[#allocation10 + $0x110] sm:$0xf0]  ;;  %v4176_v31 = vor.u32 %v4942_v24, %v4173_v25  ;;  %v4205_v25 = vld [vmem:[#allocation10 + $0x118] sm:$0xf0] }
 0x2f9   :  { %1822 = vmatpush.bf16.msra.mxu1 %v3920_v33  ;;  %v5572_v6 = vadd.f32 %v1747_v60, %v1735_v0 }
 0x2fa   :  { %1810 = vmatpush.bf16.msra.mxu0 %v3704_v45  ;;  %v5576_v26 = vadd.f32 %v1565_v18, %v1553_v21  ;;  %v4917_v45 = vld [vmem:[#allocation10 + $0x4] sm:$0xf]  ;;  %v4389_v18 = vld [vmem:[#allocation10 + $0x290] sm:$0xf0] }
 0x2fb   :  { %v4392_v23 = vor.u32 %v4996_v43, %v4389_v18  ;;  %v5003_v43 = vld [vmem:[#allocation10 + $0x2b4] sm:$0xf]  ;;  %v4421_v18 = vld [vmem:[#allocation10 + $0x2c8] sm:$0xf0] }
 0x2fc   :  { %v4424_v24 = vor.u32 %v5003_v43, %v4421_v18  ;;  %v4325_v43 = vld [vmem:[#allocation10 + $0x208] sm:$0xf0] }
 0x2fd   :  { %1823 = vmatpush.bf16.msra.mxu1 %v3896_v46  ;;  %1811 = vmatmul.bf16.vlgmr.msra.gmra.mxu0 %v5534_v61  ;;  %v4069_v46 = vld [vmem:[#allocation10 + $0x18] sm:$0xf0] }
 0x2fe   :  { %2445 = vmatpush.bf16.msrb.mxu0 %v4240_v47  ;;  %v1736_v14 = vpop.f32.mrf.mxu2  ;;  %v1749_v16 = vpop.f32.mrf.mxu3  ;;  %v4965_v47 = vld [vmem:[#allocation10 + $0x184] sm:$0xf]  ;;  %v4072_v59 = vor.u32 %v4917_v45, %v4069_v46  ;;  %v4978_v45 = vld [vmem:[#allocation10 + $0x1ec] sm:$0xf] }
 0x2ff   :  { %v1554_v33 = vpop.f32.mrf.mxu0  ;;  %v1567_v34 = vpop.f32.mrf.mxu1  ;;  %v4264_v0 = vor.u32 %v4965_v47, %v4261_v48  ;;  %v4948_v16 = vld [vmem:[#allocation10 + $0xfc] sm:$0xf]  ;;  %v4317_v46 = vld [vmem:[#allocation10 + $0x200] sm:$0xf0] }
 0x300   :  { %1824 = vmatmul.bf16.vlgmr.msra.gmra.mxu1 %v5536_v62  ;;  %v4200_v22 = vor.u32 %v4948_v16, %v4197_v17  ;;  %v4936_v33 = vld [vmem:[#allocation10 + $0x9c] sm:$0xf]  ;;  %v4149_v34 = vld [vmem:[#allocation10 + $0xb0] sm:$0xf0]  ;;  %v4320_v48 = vor.u32 %v4978_v45, %v4317_v46  ;;  %v4229_v17 = vld [vmem:[#allocation10 + $0x148] sm:$0xf0] }
 0x301   :  { %2458 = vmatpush.bf16.msrb.mxu1 %v4432_v54  ;;  %v4960_v54 = vld [vmem:[#allocation10 + $0x15c] sm:$0xf]  ;;  %v4152_v40 = vor.u32 %v4936_v33, %v4149_v34  ;;  %v4955_v16 = vld [vmem:[#allocation10 + $0x134] sm:$0xf]  ;;  %v4373_v45 = vld [vmem:[#allocation10 + $0x268] sm:$0xf0] }
 0x302   :  { %2446 = vmatpush.bf16.msrb.mxu0 %v4216_v63 }
 0x305   :  { %2459 = vmatpush.bf16.msrb.mxu1 %v4408_v1  ;;  %v4248_v1 = vor.u32 %v4960_v54, %v4245_v55  ;;  %v4924_v54 = vld [vmem:[#allocation10 + $0x3c] sm:$0xf]  ;;  %v4101_v55 = vld [vmem:[#allocation10 + $0x50] sm:$0xf0] }
 0x306   :  { %2447 = vmatpush.bf16.msrb.mxu0 %v4192_v8 }
 0x307   :  { %v1604_v58 = vpop.f32.mrf.mxu0  ;;  %v1617_v63 = vpop.f32.mrf.mxu1 }
 0x308   :  { %v1605_v60 = vadd.f32 %v1604_v58, %v5556_v37 }
 0x309   :  { %2460 = vmatpush.bf16.msrb.mxu1 %v4384_v36  ;;  %v5002_v36 = vld [vmem:[#allocation10 + $0x2ac] sm:$0xf] }
 0x30a   :  { %2448 = vmatpush.bf16.msrb.mxu0 %v4168_v20  ;;  %v5580_v8 = vadd.f32 %v1617_v63, %v1605_v60  ;;  %v4416_v37 = vor.u32 %v5002_v36, %v4413_v9  ;;  %v4104_v60 = vor.u32 %v4924_v54, %v4101_v55  ;;  %v4296_v63 = vor.u32 %v4972_v56, %v4293_v57  ;;  %v5009_v36 = vld [vmem:[#allocation10 + $0x2e4] sm:$0xf]  ;;  %v4445_v9 = vld [vmem:[#allocation10 + $0x2f8] sm:$0xf0] }
 0x30b   :  { %v4937_v54 = vld [vmem:[#allocation10 + $0xa4] sm:$0xf]  ;;  %v4157_v57 = vld [vmem:[#allocation10 + $0xb8] sm:$0xf0] }
 0x30d   :  { %2461 = vmatpush.bf16.msrb.mxu1 %v4360_v13 }
 0x30e   :  { %2449 = vmatpush.bf16.msrb.mxu0 %v4144_v27  ;;  %v4990_v27 = vld [vmem:[#allocation10 + $0x24c] sm:$0xf] }
 0x30f   :  { %v1606_v21 = vpop.f32.mrf.mxu0  ;;  %v1619_v13 = vpop.f32.mrf.mxu1 }
 0x311   :  { %2462 = vmatpush.bf16.msrb.mxu1 %v4336_v28  ;;  %v4365_v28 = vld [vmem:[#allocation10 + $0x260] sm:$0xf0] }
 0x312   :  { %2450 = vmatpush.bf16.msrb.mxu0 %v4120_v35  ;;  %v4368_v32 = vor.u32 %v4990_v27, %v4365_v28  ;;  %v4984_v35 = vld [vmem:[#allocation10 + $0x21c] sm:$0xf]  ;;  %v5028_v28 = vld [vmem:[#allocation14 + $0x74] sm:$0xf0] }
 0x313   :  { %v4511_v27 = vld [vmem:[#allocation14 + $0x70] sm:$0xf] }
 0x315   :  { %2463 = vmatpush.bf16.msrb.mxu1 %v4312_v7  ;;  %v4341_v7 = vld [vmem:[#allocation10 + $0x230] sm:$0xf0] }
 0x316   :  { %2451 = vmatpush.bf16.msrb.mxu0 %v4096_v42  ;;  %v1786_v10 = vpop.f32.mrf.mxu2  ;;  %v1799_v11 = vpop.f32.mrf.mxu3  ;;  %v4344_v41 = vor.u32 %v4984_v35, %v4341_v7  ;;  %v4930_v42 = vld [vmem:[#allocation10 + $0x6c] sm:$0xf]  ;;  %v4943_v35 = vld [vmem:[#allocation10 + $0xd4] sm:$0xf] }
 0x317   :  { %v1787_v14 = vadd.f32 %v1786_v10, %v1510_v2  ;;  %v4966_v2 = vld [vmem:[#allocation10 + $0x18c] sm:$0xf] }
 0x319   :  { %2464 = vmatpush.bf16.msrb.mxu1 %v4288_v44  ;;  %v5583_v20 = vadd.f32 %v1799_v11, %v1787_v14  ;;  %v4125_v44 = vld [vmem:[#allocation10 + $0x80] sm:$0xf0] }
 0x31a   :  { %2452 = vmatpush.bf16.msrb.mxu0 %v4072_v59  ;;  %v5586_v38 = vpop.f32.mrf.mxu0  ;;  %v4128_v47 = vor.u32 %v4930_v42, %v4125_v44  ;;  %v5590_v14 = vld [vmem:[#allocation13] sm:$0x3f]  ;;  %v5026_v42 = vld [vmem:[#allocation14 + $0x64] sm:$0xf0] }
 0x31b   :  { %v5588_v39 = vpop.f32.mrf.mxu1  ;;  %v2407_v21 = vperm.slane %v5590_v14, 0  ;;  %v4991_v44 = vld [vmem:[#allocation10 + $0x254] sm:$0xf] }
 0x31c   :  { %v4376_v56 = vor.u32 %v4991_v44, %v4373_v45  ;;  %v5060_v44 = vld [vmem:[#allocation14 + $0x174] sm:$0xf0] }
 0x31d   :  { %2465 = vmatpush.bf16.msrb.mxu1 %v4264_v0  ;;  %2453 = vmatmul.bf16.vlgmr.msrb.gmra.mxu0 %v5505_v51  ;;  %v4918_v0 = vld [vmem:[#allocation10 + $0xc] sm:$0xf] }
 0x31e   :  { %2497 = vmatpush.bf16.msra.mxu0 %v4248_v1  ;;  %v1788_v29 = vpop.f32.mrf.mxu2  ;;  %v1801_v30 = vpop.f32.mrf.mxu3  ;;  %v4077_v1 = vld [vmem:[#allocation10 + $0x20] sm:$0xf0] }
 0x31f   :  { %v4080_v10 = vor.u32 %v4918_v0, %v4077_v1  ;;  %v4997_v30 = vld [vmem:[#allocation10 + $0x284] sm:$0xf] }
 0x320   :  { %2466 = vmatmul.bf16.vlgmr.msrb.gmra.mxu1 %v5509_v52 }
 0x321   :  { %2510 = vmatpush.bf16.msra.mxu1 %v4440_v3  ;;  %v4269_v3 = vld [vmem:[#allocation10 + $0x1a0] sm:$0xf0] }
 0x322   :  { %2498 = vmatpush.bf16.msra.mxu0 %v4224_v12  ;;  %v1658_v58 = vpop.f32.mrf.mxu0  ;;  %v4272_v11 = vor.u32 %v4966_v2, %v4269_v3  ;;  %v4256_v12 = vor.u32 %v4961_v4, %v4253_v5 }
 0x323   :  { %v1671_v59 = vpop.f32.mrf.mxu1  ;;  %v4495_v58 = vld [vmem:[#allocation14 + $0x50] sm:$0xf] }
 0x324   :  { %v5024_v59 = vld [vmem:[#allocation14 + $0x54] sm:$0xf0] }
 0x325   :  { %2511 = vmatpush.bf16.msra.mxu1 %v4416_v37  ;;  %v4448_v37 = vor.u32 %v5009_v36, %v4445_v9  ;;  %v4496_v1 = vor.u32 %v5024_v59, %v4495_v58  ;;  %v4160_v36 = vor.u32 %v4937_v54, %v4157_v57  ;;  %v4931_v9 = vld [vmem:[#allocation10 + $0x74] sm:$0xf]  ;;  %v2409_v54 = vperm.slane %v5590_v14, 2  ;;  %v4631_v59 = vld [vmem:[#allocation14 + $0x160] sm:$0xf] }
 0x326   :  { %2499 = vmatpush.bf16.msra.mxu0 %v4200_v22  ;;  %v4232_v22 = vor.u32 %v4955_v16, %v4229_v17  ;;  %v4979_v17 = vld [vmem:[#allocation10 + $0x1f4] sm:$0xf] }
 0x329   :  { %2512 = vmatpush.bf16.msra.mxu1 %v4392_v23  ;;  %v4949_v23 = vld [vmem:[#allocation10 + $0x104] sm:$0xf] }
 0x32a   :  { %2500 = vmatpush.bf16.msra.mxu0 %v4176_v31  ;;  %v4397_v31 = vld [vmem:[#allocation10 + $0x298] sm:$0xf0]  ;;  %v4208_v34 = vor.u32 %v4949_v23, %v4205_v25  ;;  %v4973_v25 = vld [vmem:[#allocation10 + $0x1c4] sm:$0xf] }
 0x32b   :  { %v4400_v7 = vor.u32 %v4997_v30, %v4397_v31  ;;  %v4479_v23 = vld [vmem:[#allocation14 + $0x30] sm:$0xf] }
 0x32d   :  { %2513 = vmatpush.bf16.msra.mxu1 %v4368_v32  ;;  %v4512_v32 = vor.u32 %v5028_v28, %v4511_v27  ;;  %v4301_v27 = vld [vmem:[#allocation10 + $0x1d8] sm:$0xf0] }
 0x32e   :  { %2501 = vmatpush.bf16.msra.mxu0 %v4152_v40  ;;  %v4181_v40 = vld [vmem:[#allocation10 + $0xe8] sm:$0xf0] }
 0x32f   :  { %3071 = vmatpush.bf16.msra.mxu2 %v4512_v32  ;;  %v4919_v32 = vld [vmem:[#allocation10 + $0x14] sm:$0xf] }
 0x331   :  { %2514 = vmatpush.bf16.msra.mxu1 %v4344_v41  ;;  %v4503_v41 = vld [vmem:[#allocation14 + $0x60] sm:$0xf] }
 0x332   :  { %2502 = vmatpush.bf16.msra.mxu0 %v4128_v47  ;;  %v4504_v46 = vor.u32 %v5026_v42, %v4503_v41  ;;  %v4277_v41 = vld [vmem:[#allocation10 + $0x1a8] sm:$0xf0]  ;;  %v4639_v42 = vld [vmem:[#allocation14 + $0x170] sm:$0xf] }
 0x334   :  { %3072 = vmatpush.bf16.msra.mxu2 %v4504_v46  ;;  %v4703_v46 = vld [vmem:[#allocation14 + $0x1f0] sm:$0xf] }
 0x335   :  { %2515 = vmatpush.bf16.msra.mxu1 %v4320_v48  ;;  %v4184_v48 = vor.u32 %v4943_v35, %v4181_v40  ;;  %v4967_v35 = vld [vmem:[#allocation10 + $0x194] sm:$0xf] }
 0x336   :  { %2503 = vmatpush.bf16.msra.mxu0 %v4104_v60  ;;  %v2428_v13 = vpop.f32.mrf.mxu2  ;;  %v2441_v29 = vpop.f32.mrf.mxu3  ;;  %v4985_v60 = vld [vmem:[#allocation10 + $0x224] sm:$0xf]  ;;  %v5018_v40 = vld [vmem:[#allocation14 + $0x24] sm:$0xf0] }
 0x337   :  { %v2429_v33 = vadd.f32 %v2428_v13, %v2407_v21  ;;  %v4925_v13 = vld [vmem:[#allocation10 + $0x44] sm:$0xf] }
 0x338   :  { %3073 = vmatpush.bf16.msra.mxu2 %v4496_v1  ;;  %v4463_v1 = vld [vmem:[#allocation14 + $0x10] sm:$0xf] }
 0x339   :  { %2516 = vmatpush.bf16.msra.mxu1 %v4296_v63  ;;  %v2442_v47 = vadd.f32 %v2441_v29, %v2429_v33  ;;  %v4349_v63 = vld [vmem:[#allocation10 + $0x238] sm:$0xf0]  ;;  %v4085_v33 = vld [vmem:[#allocation10 + $0x28] sm:$0xf0] }
 0x33a   :  { %2504 = vmatpush.bf16.msra.mxu0 %v4080_v10  ;;  %v1708_v2 = vpop.f32.mrf.mxu0  ;;  %v4352_v10 = vor.u32 %v4985_v60, %v4349_v63  ;;  %v5058_v60 = vld [vmem:[#allocation14 + $0x164] sm:$0xf0]  ;;  %v4695_v63 = vld [vmem:[#allocation14 + $0x1e0] sm:$0xf] }
 0x33b   :  { %v2575_v3 = vadd.f32 %v2442_v47, %v5576_v26  ;;  %v1709_v4 = vadd.f32 %v1708_v2, %v5566_v19  ;;  %v4328_v19 = vor.u32 %v4979_v17, %v4325_v43  ;;  %v5076_v47 = vld [vmem:[#allocation14 + $0x1f4] sm:$0xf0]  ;;  %v4687_v17 = vld [vmem:[#allocation14 + $0x1d0] sm:$0xf] }
 0x33c   :  { %v4704_v58 = vor.u32 %v5076_v47, %v4703_v46  ;;  %v5016_v2 = vld [vmem:[#allocation14 + $0x14] sm:$0xf0]  ;;  %v5023_v47 = vld [vmem:[#allocation14 + $0x54] sm:$0xf] }
 0x33d   :  { %2517 = vmatpush.bf16.msra.mxu1 %v4272_v11  ;;  %2505 = vmatmul.bf16.vlgmr.msra.gmra.mxu0 %v5505_v51  ;;  %v4133_v11 = vld [vmem:[#allocation10 + $0x88] sm:$0xf0]  ;;  %v4449_v21 = vmul.f32 -1.442695, %v2575_v3  ;;  %v1657_v3 = vadd.f32 %v5586_v38, %v5561_v15  ;;  %v5014_v38 = vld [vmem:[#allocation14 + $0x4] sm:$0xf0] }
 0x33e   :  { %2549 = vmatpush.bf16.msrb.mxu0 %v4256_v12  ;;  %v2430_v55 = vpop.f32.mrf.mxu2  ;;  %v2443_v0 = vpop.f32.mrf.mxu3  ;;  %v4487_v12 = vld [vmem:[#allocation14 + $0x40] sm:$0xf]  ;;  %v4136_v26 = vor.u32 %v4931_v9, %v4133_v11  ;;  %v4632_v9 = vor.u32 %v5058_v60, %v4631_v59  ;;  %v5050_v59 = vld [vmem:[#allocation14 + $0x124] sm:$0xf0] }
 0x33f   :  { %v1721_v5 = vpop.f32.mrf.mxu1  ;;  %5096 = vpow2.f32 %v4449_v21  ;;  %v4280_v55 = vor.u32 %v4967_v35, %v4277_v41  ;;  %v5074_v0 = vld [vmem:[#allocation14 + $0x1e4] sm:$0xf0]  ;;  %v4455_v15 = vld [vmem:[#allocation14] sm:$0xf]  ;;  %v1670_v21 = vadd.f32 %v5588_v39, %v1657_v3  ;;  %v5025_v39 = vld [vmem:[#allocation14 + $0x64] sm:$0xf] }
 0x340   :  { %2518 = vmatmul.bf16.vlgmr.msra.gmra.mxu1 %v5509_v52  ;;  %v5597_v16 = vadd.f32 %v1721_v5, %v1709_v4  ;;  %v4464_v4 = vor.u32 %v5016_v2, %v4463_v1  ;;  %v4696_v11 = vor.u32 %v5074_v0, %v4695_v63  ;;  %v4663_v60 = vld [vmem:[#allocation14 + $0x1a0] sm:$0xf]  ;;  %v5066_v0 = vld [vmem:[#allocation14 + $0x1a4] sm:$0xf0]  ;;  %v5021_v1 = vld [vmem:[#allocation14 + $0x44] sm:$0xf] }
 0x341   :  { %2562 = vmatpush.bf16.msrb.mxu1 %v4448_v37  ;;  %v5022_v37 = vld [vmem:[#allocation14 + $0x44] sm:$0xf0]  ;;  %v4489_v2 = vld [vmem:[#allocation14 + $0x48] sm:$0xf0] }
 0x342   :  { %2550 = vmatpush.bf16.msrb.mxu0 %v4232_v22  ;;  %v4488_v18 = vor.u32 %v5022_v37, %v4487_v12  ;;  %v4109_v22 = vld [vmem:[#allocation10 + $0x58] sm:$0xf0]  ;;  %v1710_v29 = vpop.f32.mrf.mxu0  ;;  %v5056_v37 = vld [vmem:[#allocation14 + $0x154] sm:$0xf0] }
 0x343   :  { %v4112_v31 = vor.u32 %v4925_v13, %v4109_v22  ;;  %v4623_v12 = vld [vmem:[#allocation14 + $0x150] sm:$0xf]  ;;  %v4456_v13 = vor.u32 %v5014_v38, %v4455_v15  ;;  %v4513_v22 = vld [vmem:[#allocation14 + $0x78] sm:$0xf0]  ;;  %v4679_v29 = vld [vmem:[#allocation14 + $0x1c0] sm:$0xf] }
 0x344   :  { %3074 = vmatpush.bf16.msra.mxu2 %v4488_v18  ;;  %v5072_v18 = vld [vmem:[#allocation14 + $0x1d4] sm:$0xf0]  ;;  %v5019_v15 = vld [vmem:[#allocation14 + $0x34] sm:$0xf]  ;;  %v4481_v38 = vld [vmem:[#allocation14 + $0x38] sm:$0xf0] }
 0x345   :  { %2563 = vmatpush.bf16.msrb.mxu1 %v4424_v24  ;;  %v5020_v24 = vld [vmem:[#allocation14 + $0x34] sm:$0xf0]  ;;  %v5097_v57 = vpop.eup %5096 }
 0x346   :  { %2551 = vmatpush.bf16.msrb.mxu0 %v4208_v34  ;;  %v4480_v28 = vor.u32 %v5020_v24, %v4479_v23  ;;  %v4304_v34 = vor.u32 %v4973_v25, %v4301_v27  ;;  %v5602_v5 = vadd.f32 1.0, %v5097_v57  ;;  %v4624_v23 = vor.u32 %v5056_v37, %v4623_v12  ;;  %v5048_v12 = vld [vmem:[#allocation14 + $0x114] sm:$0xf0] }
 0x347   :  { %v1723_v30 = vpop.f32.mrf.mxu1  ;;  %v4688_v27 = vor.u32 %v5072_v18, %v4687_v17  ;;  %v4655_v17 = vld [vmem:[#allocation14 + $0x190] sm:$0xf] }
 0x348   :  { %3075 = vmatpush.bf16.msra.mxu2 %v4480_v28  ;;  %5098 = vrcp.f32 %v5602_v5  ;;  %v5054_v28 = vld [vmem:[#allocation14 + $0x144] sm:$0xf0]  ;;  %vm2590_vm7 = vweird.f32 %v5602_v5 }
 0x349   :  { %2564 = vmatpush.bf16.msrb.mxu1 %v4400_v7  ;;  %v4471_v7 = vld [vmem:[#allocation14 + $0x20] sm:$0xf]  ;;  %v5070_v30 = vld [vmem:[#allocation14 + $0x1c4] sm:$0xf0] }
 0x34a   :  { %2552 = vmatpush.bf16.msrb.mxu0 %v4184_v48  ;;  %v4472_v45 = vor.u32 %v5018_v40, %v4471_v7  ;;  %v4088_v48 = vor.u32 %v4919_v32, %v4085_v33  ;;  %v4680_v35 = vor.u32 %v5070_v30, %v4679_v29  ;;  %v4607_v7 = vld [vmem:[#allocation14 + $0x130] sm:$0xf]  ;;  %v5052_v40 = vld [vmem:[#allocation14 + $0x134] sm:$0xf0]  ;;  %v5017_v29 = vld [vmem:[#allocation14 + $0x24] sm:$0xf] }
 0x34b   :  { %v4473_v30 = vld [vmem:[#allocation14 + $0x28] sm:$0xf0] }
 0x34c   :  { %3076 = vmatpush.bf16.msra.mxu2 %v4472_v45 }
 0x34d   :  { %2565 = vmatpush.bf16.msrb.mxu1 %v4376_v56  ;;  %v4640_v56 = vor.u32 %v5060_v44, %v4639_v42  ;;  %v4671_v42 = vld [vmem:[#allocation14 + $0x1b0] sm:$0xf]  ;;  %v5068_v44 = vld [vmem:[#allocation14 + $0x1b4] sm:$0xf0] }
 0x34e   :  { %2553 = vmatpush.bf16.msrb.mxu0 %v4160_v36  ;;  %v5608_v41 = vpop.eup %5098  ;;  %v4672_v57 = vor.u32 %v5068_v44, %v4671_v42  ;;  %v5057_v44 = vld [vmem:[#allocation14 + $0x164] sm:$0xf] }
 0x34f   :  { %v2586_v63 = vmul.f32 %v5608_v41, %v5602_v5  ;;  %vm2591_vm6 = vweird.f32 %v5608_v41 }
 0x350   :  { %3077 = vmatpush.bf16.msra.mxu2 %v4464_v4  ;;  %v4492_v4 = vor.u32 %v5021_v1, %v4489_v2  ;;  %vm5629_vm8 = vmor %vm2590_vm7, %vm2591_vm6  ;;  %vm5680_vm7 = vcmp.lt.s32.totalorder %v285_v53, 256 }
 0x351   :  { %2566 = vmatpush.bf16.msrb.mxu1 %v4352_v10  ;;  %v2587_v37 = vsub.f32 1.0, %v2586_v63 }
 0x352   :  { %2554 = vmatpush.bf16.msrb.mxu0 %v4136_v26 }
 0x354   :  { %3078 = vmatpush.bf16.msra.mxu2 %v4456_v13  ;;  %v4583_v13 = vld [vmem:[#allocation14 + $0x100] sm:$0xf] }
 0x355   :  { %2567 = vmatpush.bf16.msrb.mxu1 %v4328_v19  ;;  %v5027_v19 = vld [vmem:[#allocation14 + $0x74] sm:$0xf] }
 0x356   :  { %2555 = vmatpush.bf16.msrb.mxu0 %v4112_v31  ;;  %v2480_v36 = vpop.f32.mrf.mxu2  ;;  %v2493_v43 = vpop.f32.mrf.mxu3  ;;  %v4516_v24 = vor.u32 %v5027_v19, %v4513_v22  ;;  %v4505_v31 = vld [vmem:[#allocation14 + $0x68] sm:$0xf0]  ;;  %v5046_v19 = vld [vmem:[#allocation14 + $0x104] sm:$0xf0]  ;;  %v4484_v22 = vor.u32 %v5019_v15, %v4481_v38  ;;  %v5071_v38 = vld [vmem:[#allocation14 + $0x1d4] sm:$0xf] }
 0x357   :  { %v2481_v10 = vadd.f32 %v2480_v36, %v2409_v54  ;;  %v4508_v32 = vor.u32 %v5025_v39, %v4505_v31  ;;  %v5075_v39 = vld [vmem:[#allocation14 + $0x1f4] sm:$0xf]  ;;  %v4705_v31 = vld [vmem:[#allocation14 + $0x1f8] sm:$0xf0] }
 0x358   :  { %3123 = vmatpush.bf16.msrb.mxu2 %v4516_v24  ;;  %v4647_v24 = vld [vmem:[#allocation14 + $0x180] sm:$0xf] }
 0x359   :  { %2568 = vmatpush.bf16.msrb.mxu1 %v4304_v34  ;;  %v2494_v26 = vadd.f32 %v2493_v43, %v2481_v10  ;;  %v4664_v10 = vor.u32 %v5066_v0, %v4663_v60  ;;  %v5064_v43 = vld [vmem:[#allocation14 + $0x194] sm:$0xf0]  ;;  %v2594_v0 = vand.u32 2147483647, %v5602_v5 }
 0x35a   :  { %2556 = vmatpush.bf16.msrb.mxu0 %v4088_v48  ;;  %v5610_v46 = vpop.f32.mrf.mxu0  ;;  %v4497_v48 = vld [vmem:[#allocation14 + $0x58] sm:$0xf0] }
 0x35b   :  { %v2615_v25 = vadd.f32 %v2494_v26, %v1670_v21  ;;  %vm2595_vm9 = vcmp.eq.f32.partialorder %v2594_v0, 8.507059e+37 }
 0x35c   :  { %3124 = vmatpush.bf16.msrb.mxu2 %v4508_v32 }
 0x35d   :  { %2569 = vmatpush.bf16.msrb.mxu1 %v4280_v55  ;;  %2557 = vmatmul.bf16.vlgmr.msrb.gmra.mxu0 %v5505_v51  ;;  %v4615_v51 = vld [vmem:[#allocation14 + $0x140] sm:$0xf]  ;;  %v4608_v55 = vor.u32 %v5052_v40, %v4607_v7 }
 0x35e   :  { %3097 = vmatpush.bf16.msra.mxu0 %v4640_v56  ;;  %v4616_v33 = vor.u32 %v5054_v28, %v4615_v51  ;;  %v2482_v34 = vpop.f32.mrf.mxu2  ;;  %v2495_v45 = vpop.f32.mrf.mxu3  ;;  %v4500_v56 = vor.u32 %v5023_v47, %v4497_v48  ;;  %v2588_v51 = vmul.f32 %v5608_v41, %v2587_v37  ;;  %v4641_v28 = vld [vmem:[#allocation14 + $0x178] sm:$0xf0]  ;;  %v5073_v47 = vld [vmem:[#allocation14 + $0x1e4] sm:$0xf]  ;;  %v4708_v48 = vor.u32 %v5075_v39, %v4705_v31 }
 0x35f   :  { %v5612_v54 = vpop.f32.mrf.mxu1  ;;  %v4584_v34 = vor.u32 %v5046_v19, %v4583_v13  ;;  %v4633_v45 = vld [vmem:[#allocation14 + $0x168] sm:$0xf0] }
 0x360   :  { %2570 = vmatmul.bf16.vlgmr.msrb.gmra.mxu1 %v5509_v52  ;;  %v4451_v52 = vmul.f32 -1.442695, %v2615_v25  ;;  %3125 = vmatpush.bf16.msrb.mxu2 %v4500_v56  ;;  %v5062_v25 = vld [vmem:[#allocation14 + $0x184] sm:$0xf0]  ;;  %v2589_v42 = vadd.f32 %v5608_v41, %v2588_v51  ;;  %v5015_v56 = vld [vmem:[#allocation14 + $0x14] sm:$0xf]  ;;  %v4636_v1 = vor.u32 %v5057_v44, %v4633_v45 }
 0x361   :  { %3110 = vmatpush.bf16.msra.mxu1 %v4704_v58  ;;  %v4599_v58 = vld [vmem:[#allocation14 + $0x120] sm:$0xf]  ;;  %v4681_v51 = vld [vmem:[#allocation14 + $0x1c8] sm:$0xf0] }
 0x362   :  { %3098 = vmatpush.bf16.msra.mxu0 %v4632_v9  ;;  %5100 = vpow2.f32 %v4451_v52  ;;  %v4600_v9 = vor.u32 %v5050_v59, %v4599_v58  ;;  %v1762_v18 = vpop.f32.mrf.mxu0  ;;  %v4476_v52 = vor.u32 %v5017_v29, %v4473_v30  ;;  %v2596_v59 = vand.u32 2147483648, %v5602_v5  ;;  %v4625_v5 = vld [vmem:[#allocation14 + $0x158] sm:$0xf0]  ;;  %v5040_v30 = vld [vmem:[#allocation14 + $0xd4] sm:$0xf0] }
 0x364   :  { %3126 = vmatpush.bf16.msrb.mxu2 %v4492_v4  ;;  %v2593_v4 = vsel %vm5629_vm8, %v5608_v41, %v2589_v42  ;;  %v2597_v15 = vor.u32 1.1754944e-38, %v2596_v59  ;;  %v4665_v59 = vld [vmem:[#allocation14 + $0x1a8] sm:$0xf0] }
 0x365   :  { %3111 = vmatpush.bf16.msra.mxu1 %v4696_v11  ;;  %v4591_v11 = vld [vmem:[#allocation14 + $0x110] sm:$0xf] }
 0x366   :  { %3099 = vmatpush.bf16.msra.mxu0 %v4624_v23  ;;  %v4592_v26 = vor.u32 %v5048_v12, %v4591_v11  ;;  %v4656_v23 = vor.u32 %v5064_v43, %v4655_v17  ;;  %v4457_v11 = vld [vmem:[#allocation14 + $0x8] sm:$0xf0]  ;;  %v1761_v12 = vadd.f32 %v5610_v46, %v5572_v6  ;;  %v5055_v17 = vld [vmem:[#allocation14 + $0x154] sm:$0xf]  ;;  %v2598_v41 = vsel %vm2595_vm9, %v2597_v15, %v2593_v4  ;;  %v4593_v4 = vld [vmem:[#allocation14 + $0x118] sm:$0xf0] }
 0x367   :  { %v1775_v21 = vpop.f32.mrf.mxu1  ;;  %v4628_v13 = vor.u32 %v5055_v17, %v4625_v5  ;;  %v4585_v15 = vld [vmem:[#allocation14 + $0x108] sm:$0xf0] }
 0x368   :  { %v5101_v3 = vpop.eup %5100  ;;  %3127 = vmatpush.bf16.msrb.mxu2 %v4484_v22  ;;  %v4689_v21 = vld [vmem:[#allocation14 + $0x1d8] sm:$0xf0]  ;;  %v1774_v46 = vadd.f32 %v5612_v54, %v1761_v12 }
 0x369   :  { %3112 = vmatpush.bf16.msra.mxu1 %v4688_v27  ;;  %v5616_v36 = vadd.f32 1.0, %v5101_v3  ;;  %v5059_v27 = vld [vmem:[#allocation14 + $0x174] sm:$0xf]  ;;  %v4692_v22 = vor.u32 %v5071_v38, %v4689_v21  ;;  %v4649_v38 = vld [vmem:[#allocation14 + $0x188] sm:$0xf0] }
 0x36a   :  { %3100 = vmatpush.bf16.msra.mxu0 %v4616_v33  ;;  %v2411_v33 = vperm.slane %v5590_v14, 4  ;;  %v4644_v40 = vor.u32 %v5059_v27, %v4641_v28  ;;  %v5069_v27 = vld [vmem:[#allocation14 + $0x1c4] sm:$0xf] }
 0x36b   :  { %5102 = vrcp.f32 %v5616_v36  ;;  %vm2630_vm11 = vweird.f32 %v5616_v36  ;;  %v2634_v28 = vand.u32 2147483647, %v5616_v36 }
 0x36c   :  { %3128 = vmatpush.bf16.msrb.mxu2 %v4476_v52  ;;  %v4684_v52 = vor.u32 %v5069_v27, %v4681_v51  ;;  %v5042_v27 = vld [vmem:[#allocation14 + $0xe4] sm:$0xf0] }
 0x36d   :  { %3113 = vmatpush.bf16.msra.mxu1 %v4680_v35  ;;  %v4648_v35 = vor.u32 %v5062_v25, %v4647_v24  ;;  %v4617_v24 = vld [vmem:[#allocation14 + $0x148] sm:$0xf0]  ;;  %v2636_v25 = vand.u32 2147483648, %v5616_v36  ;;  %vm2635_vm13 = vcmp.eq.f32.partialorder %v2634_v28, 8.507059e+37 }
 0x36e   :  { %3101 = vmatpush.bf16.msra.mxu0 %v4608_v55  ;;  %v4697_v55 = vld [vmem:[#allocation14 + $0x1e8] sm:$0xf0] }
 0x371   :  { %3114 = vmatpush.bf16.msra.mxu1 %v4672_v57  ;;  %v5620_v32 = vpop.eup %5102  ;;  %v4465_v57 = vld [vmem:[#allocation14 + $0x18] sm:$0xf0] }
 0x372   :  { %3102 = vmatpush.bf16.msra.mxu0 %v4600_v9  ;;  %v2626_v7 = vmul.f32 %v5620_v32, %v5616_v36  ;;  %v4468_v60 = vor.u32 %v5015_v56, %v4465_v57  ;;  %v4700_v9 = vor.u32 %v5073_v47, %v4697_v55  ;;  %vm2631_vm10 = vweird.f32 %v5620_v32  ;;  %v4673_v36 = vld [vmem:[#allocation14 + $0x1b8] sm:$0xf0]  ;;  %v5049_v55 = vld [vmem:[#allocation14 + $0x124] sm:$0xf]  ;;  %v4601_v56 = vld [vmem:[#allocation14 + $0x128] sm:$0xf0] }
 0x373   :  { %vm5648_vm12 = vmor %vm2630_vm11, %vm2631_vm10  ;;  %v4604_v0 = vor.u32 %v5049_v55, %v4601_v56 }
 0x374   :  { %v2627_v58 = vsub.f32 1.0, %v2626_v7  ;;  %3129 = vmatpush.bf16.msrb.mxu2 %v4468_v60  ;;  %v5067_v7 = vld [vmem:[#allocation14 + $0x1b4] sm:$0xf] }
 0x375   :  { %3115 = vmatpush.bf16.msra.mxu1 %v4664_v10  ;;  %v5013_v10 = vld [vmem:[#allocation14 + $0x4] sm:$0xf] }
 0x376   :  { %3103 = vmatpush.bf16.msra.mxu0 %v4592_v26  ;;  %v2628_v2 = vmul.f32 %v5620_v32, %v2627_v58  ;;  %v2532_v3 = vpop.f32.mrf.mxu2  ;;  %v4460_v43 = vor.u32 %v5013_v10, %v4457_v11  ;;  %v2545_v18 = vpop.f32.mrf.mxu3  ;;  %v5065_v58 = vld [vmem:[#allocation14 + $0x1a4] sm:$0xf]  ;;  %v5063_v10 = vld [vmem:[#allocation14 + $0x194] sm:$0xf]  ;;  %v4657_v11 = vld [vmem:[#allocation14 + $0x198] sm:$0xf0] }
 0x377   :  { %v2533_v37 = vadd.f32 %v2532_v3, %v2411_v33  ;;  %v5051_v33 = vld [vmem:[#allocation14 + $0x134] sm:$0xf] }
 0x378   :  { %v2629_v6 = vadd.f32 %v5620_v32, %v2628_v2  ;;  %3130 = vmatpush.bf16.msrb.mxu2 %v4460_v43  ;;  %v5047_v3 = vld [vmem:[#allocation14 + $0x114] sm:$0xf]  ;;  %v4660_v43 = vor.u32 %v5063_v10, %v4657_v11  ;;  %v4569_v10 = vld [vmem:[#allocation14 + $0xe8] sm:$0xf0] }
 0x379   :  { %3116 = vmatpush.bf16.msra.mxu1 %v4656_v23  ;;  %v2546_v26 = vadd.f32 %v2545_v18, %v2533_v37  ;;  %v5053_v23 = vld [vmem:[#allocation14 + $0x144] sm:$0xf]  ;;  %v4596_v5 = vor.u32 %v5047_v3, %v4593_v4 }
 0x37a   :  { %3104 = vmatpush.bf16.msra.mxu0 %v4584_v34  ;;  %v4620_v54 = vor.u32 %v5053_v23, %v4617_v24  ;;  %v2633_v39 = vsel %vm5648_vm12, %v5620_v32, %v2629_v6  ;;  %v4609_v34 = vld [vmem:[#allocation14 + $0x138] sm:$0xf0]  ;;  %v1812_v42 = vpop.f32.mrf.mxu0  ;;  %v4676_v32 = vor.u32 %v5067_v7, %v4673_v36  ;;  %v5045_v18 = vld [vmem:[#allocation14 + $0x104] sm:$0xf]  ;;  %v4535_v36 = vld [vmem:[#allocation14 + $0xa0] sm:$0xf] }
 0x37b   :  { %v2655_v19 = vmul.f32 %v2598_v41, %v2546_v26  ;;  %v1813_v45 = vadd.f32 %v1812_v42, %v5583_v20  ;;  %v4668_v20 = vor.u32 %v5065_v58, %v4665_v59  ;;  %v4588_v21 = vor.u32 %v5045_v18, %v4585_v15  ;;  %v5041_v4 = vld [vmem:[#allocation14 + $0xe4] sm:$0xf] }
 0x37d   :  { %3117 = vmatpush.bf16.msra.mxu1 %v4648_v35  ;;  %3105 = vmatmul.bf16.vlgmr.msra.gmra.mxu0 %v5534_v61  ;;  %v2657_v29 = vadd.f32 %v2655_v19, %v1774_v46  ;;  %v2637_v35 = vor.u32 1.1754944e-38, %v2636_v25  ;;  %v1825_v47 = vpop.f32.mrf.mxu1  ;;  %v4575_v46 = vld [vmem:[#allocation14 + $0xf0] sm:$0xf]  ;;  %v5044_v19 = vld [vmem:[#allocation14 + $0xf4] sm:$0xf0] }
 0x37e   :  { %3149 = vmatpush.bf16.msrb.mxu0 %v4644_v40  ;;  %v2534_v31 = vpop.f32.mrf.mxu2  ;;  %v2547_v40 = vpop.f32.mrf.mxu3  ;;  %v5656_v57 = vadd.f32 %v1825_v47, %v1813_v45  ;;  %v4576_v23 = vor.u32 %v5044_v19, %v4575_v46  ;;  %v4567_v25 = vld [vmem:[#allocation14 + $0xe0] sm:$0xf]  ;;  %v5032_v47 = vld [vmem:[#allocation14 + $0x94] sm:$0xf0]  ;;  %v4545_v46 = vld [vmem:[#allocation14 + $0xb8] sm:$0xf0] }
 0x37f   :  { %5104 = vtanh.f32 %v2657_v29  ;;  %v2638_v44 = vsel %vm2635_vm13, %v2637_v35, %v2633_v39  ;;  %v4568_v29 = vor.u32 %v5042_v27, %v4567_v25  ;;  %v4551_v39 = vld [vmem:[#allocation14 + $0xc0] sm:$0xf]  ;;  %v5038_v31 = vld [vmem:[#allocation14 + $0xc4] sm:$0xf0]  ;;  %v5036_v35 = vld [vmem:[#allocation14 + $0xb4] sm:$0xf0] }
 0x380   :  { %3118 = vmatmul.bf16.vlgmr.msra.gmra.mxu1 %v5536_v62  ;;  %v2661_v60 = vsub.f32 1.0, %v2638_v44  ;;  %v2665_v2 = vmul.f32 %v2638_v44, %v5499_v49  ;;  %v5061_v49 = vld [vmem:[#allocation14 + $0x184] sm:$0xf]  ;;  %3084 = vmatpush.bf16.msra.mxu3 %v4576_v23  ;;  %v5034_v40 = vld [vmem:[#allocation14 + $0xa4] sm:$0xf0]  ;;  %v2410_v44 = vperm.slane %v5590_v14, 3 }
 0x381   :  { %3162 = vmatpush.bf16.msrb.mxu1 %v4708_v48  ;;  %v4612_v48 = vor.u32 %v5051_v33, %v4609_v34  ;;  %v4652_v26 = vor.u32 %v5061_v49, %v4649_v38  ;;  %v4552_v33 = vor.u32 %v5038_v31, %v4551_v39  ;;  %v4543_v34 = vld [vmem:[#allocation14 + $0xb0] sm:$0xf]  ;;  %v4536_v42 = vor.u32 %v5034_v40, %v4535_v36  ;;  %v5037_v49 = vld [vmem:[#allocation14 + $0xc4] sm:$0xf]  ;;  %v4553_v38 = vld [vmem:[#allocation14 + $0xc8] sm:$0xf0] }
 0x382   :  { %3150 = vmatpush.bf16.msrb.mxu0 %v4636_v1  ;;  %v1814_v12 = vpop.f32.mrf.mxu0  ;;  %v4544_v7 = vor.u32 %v5036_v35, %v4543_v34  ;;  %v4537_v23 = vld [vmem:[#allocation14 + $0xa8] sm:$0xf0] }
 0x383   :  { %v4572_v12 = vor.u32 %v5041_v4, %v4569_v10 }
 0x384   :  { %3085 = vmatpush.bf16.msra.mxu3 %v4568_v29 }
 0x385   :  { %3163 = vmatpush.bf16.msrb.mxu1 %v4700_v9  ;;  %v5105_v63 = vpop.eup %5104  ;;  %v1827_v37 = vpop.f32.mrf.mxu1 }
 0x386   :  { %3151 = vmatpush.bf16.msrb.mxu0 %v4628_v13  ;;  %v2663_v1 = vmul.f32 %v5105_v63, %v2661_v60  ;;  %v2408_v13 = vperm.slane %v5590_v14, 1  ;;  %v4519_v60 = vld [vmem:[#allocation14 + $0x80] sm:$0xf]  ;;  %v5030_v63 = vld [vmem:[#allocation14 + $0x84] sm:$0xf0] }
 0x388   :  { %v5659_v9 = vadd.f32 %v2665_v2, %v2663_v1  ;;  %v5043_v1 = vld [vmem:[#allocation14 + $0xf4] sm:$0xf]  ;;  %v4577_v2 = vld [vmem:[#allocation14 + $0xf8] sm:$0xf0] }
 0x389   :  { %3164 = vmatpush.bf16.msrb.mxu1 %v4692_v22  ;;  %v4580_v3 = vor.u32 %v5043_v1, %v4577_v2 }
 0x38a   :  { %3152 = vmatpush.bf16.msrb.mxu0 %v4620_v54  ;;  %v2679_v17 = vpack.c.bf16 %v5659_v9, %v5659_v9 }
 0x38c   :  { %3079 = vmatmul.bf16.vlgmr.msra.gmra.mxu2 %v2679_v17 }
 0x38d   :  { %3165 = vmatpush.bf16.msrb.mxu1 %v4684_v52 }
 0x38e   :  { %3153 = vmatpush.bf16.msrb.mxu0 %v4612_v48 }
 0x391   :  { %3166 = vmatpush.bf16.msrb.mxu1 %v4676_v32 }
 0x392   :  { %3154 = vmatpush.bf16.msrb.mxu0 %v4604_v0  ;;  %v4520_v0 = vor.u32 %v5030_v63, %v4519_v60 }
 0x395   :  { %3167 = vmatpush.bf16.msrb.mxu1 %v4668_v20 }
 0x396   :  { %3155 = vmatpush.bf16.msrb.mxu0 %v4596_v5  ;;  %v4561_v5 = vld [vmem:[#allocation14 + $0xd8] sm:$0xf0] }
 0x399   :  { %3168 = vmatpush.bf16.msrb.mxu1 %v4660_v43 }
 0x39a   :  { %3156 = vmatpush.bf16.msrb.mxu0 %v4588_v21  ;;  %v2454_v41 = vpop.f32.mrf.mxu0 }
 0x39b   :  { %v2455_v22 = vadd.f32 %v2454_v41, %v2408_v13 }
 0x39c   :  { %3131 = vmatmul.bf16.vlgmr.msrb.gmra.mxu2 %v2679_v17  ;;  %v5039_v17 = vld [vmem:[#allocation14 + $0xd4] sm:$0xf] }
 0x39d   :  { %3169 = vmatpush.bf16.msrb.mxu1 %v4652_v26  ;;  %3157 = vmatmul.bf16.vlgmr.msrb.gmra.mxu0 %v5534_v61  ;;  %v2467_v6 = vpop.f32.mrf.mxu1  ;;  %v4559_v61 = vld [vmem:[#allocation14 + $0xd0] sm:$0xf]  ;;  %v4564_v15 = vor.u32 %v5039_v17, %v4561_v5  ;;  %v4556_v26 = vor.u32 %v5037_v49, %v4553_v38 }
 0x39e   :  { %v2468_v51 = vadd.f32 %v2467_v6, %v2455_v22  ;;  %v4560_v54 = vor.u32 %v5040_v30, %v4559_v61  ;;  %v5035_v6 = vld [vmem:[#allocation14 + $0xb4] sm:$0xf]  ;;  %v5033_v22 = vld [vmem:[#allocation14 + $0xa4] sm:$0xf] }
 0x39f   :  { %v4548_v19 = vor.u32 %v5035_v6, %v4545_v46  ;;  %v4540_v25 = vor.u32 %v5033_v22, %v4537_v23 }
 0x3a0   :  { %3170 = vmatmul.bf16.vlgmr.msrb.gmra.mxu1 %v5536_v62  ;;  %v2576_v62 = vadd.f32 %v2468_v51, %v5580_v8  ;;  %3086 = vmatpush.bf16.msra.mxu3 %v4560_v54  ;;  %v4527_v8 = vld [vmem:[#allocation14 + $0x90] sm:$0xf]  ;;  %v4529_v54 = vld [vmem:[#allocation14 + $0x98] sm:$0xf0] }
 0x3a1   :  { %v4528_v32 = vor.u32 %v5032_v47, %v4527_v8 }
 0x3a2   :  { %v2456_v24 = vpop.f32.mrf.mxu0  ;;  %v4450_v52 = vmul.f32 -1.442695, %v2576_v62  ;;  %v5031_v62 = vld [vmem:[#allocation14 + $0x94] sm:$0xf] }
 0x3a3   :  { %v4532_v31 = vor.u32 %v5031_v62, %v4529_v54 }
 0x3a4   :  { %3087 = vmatpush.bf16.msra.mxu3 %v4552_v33  ;;  %5106 = vpow2.f32 %v4450_v52  ;;  %v5029_v52 = vld [vmem:[#allocation14 + $0x84] sm:$0xf]  ;;  %v4521_v33 = vld [vmem:[#allocation14 + $0x88] sm:$0xf0] }
 0x3a5   :  { %v2469_v28 = vpop.f32.mrf.mxu1 }
 0x3a6   :  { %v2412_v28 = vperm.slane %v5590_v14, 5 }
 0x3a8   :  { %3088 = vmatpush.bf16.msra.mxu3 %v4544_v7 }
 0x3aa   :  { %v5107_v45 = vpop.eup %5106 }
 0x3ab   :  { %v5668_v55 = vadd.f32 1.0, %v5107_v45 }
 0x3ac   :  { %3089 = vmatpush.bf16.msra.mxu3 %v4536_v42  ;;  %v4524_v42 = vor.u32 %v5029_v52, %v4521_v33 }
 0x3ad   :  { %5108 = vrcp.f32 %v5668_v55  ;;  %v2611_v30 = vand.u32 2147483648, %v5668_v55  ;;  %vm2605_vm15 = vweird.f32 %v5668_v55  ;;  %v2609_v39 = vand.u32 2147483647, %v5668_v55 }
 0x3af   :  { %v2612_v40 = vor.u32 1.1754944e-38, %v2611_v30  ;;  %vm2610_vm2 = vcmp.eq.f32.partialorder %v2609_v39, 8.507059e+37 }
 0x3b0   :  { %3090 = vmatpush.bf16.msra.mxu3 %v4528_v32 }
 0x3b3   :  { %v5109_v18 = vpop.eup %5108 }
 0x3b4   :  { %3091 = vmatpush.bf16.msra.mxu3 %v4520_v0  ;;  %v2601_v21 = vmul.f32 %v5109_v18, %v5668_v55  ;;  %vm2606_vm14 = vweird.f32 %v5109_v18 }
 0x3b5   :  { %vm2607_vm0 = vmor %vm2605_vm15, %vm2606_vm14 }
 0x3b6   :  { %v2602_v13 = vsub.f32 1.0, %v2601_v21 }
 0x3b8   :  { %3136 = vmatpush.bf16.msrb.mxu3 %v4580_v3  ;;  %v2603_v24 = vmul.f32 %v5109_v18, %v2602_v13 }
 0x3ba   :  { %v2506_v48 = vpop.f32.mrf.mxu0  ;;  %v2604_v29 = vadd.f32 %v5109_v18, %v2603_v24 }
 0x3bb   :  { %v2507_v56 = vadd.f32 %v2506_v48, %v2410_v44 }
 0x3bc   :  { %3137 = vmatpush.bf16.msrb.mxu3 %v4572_v12  ;;  %v2608_v36 = vsel %vm2607_vm0, %v5109_v18, %v2604_v29 }
 0x3bd   :  { %v2519_v58 = vpop.f32.mrf.mxu1  ;;  %v2613_v45 = vsel %vm2610_vm2, %v2612_v40, %v2608_v36 }
 0x3be   :  { %v2520_v59 = vadd.f32 %v2519_v58, %v2507_v56 }
 0x3c0   :  { %v2616_v20 = vadd.f32 %v2520_v59, %v5597_v16  ;;  %3138 = vmatpush.bf16.msrb.mxu3 %v4564_v15 }
 0x3c2   :  { %v4452_v11 = vmul.f32 -1.442695, %v2616_v20  ;;  %v2508_v37 = vpop.f32.mrf.mxu0 }
 0x3c4   :  { %5110 = vpow2.f32 %v4452_v11  ;;  %3139 = vmatpush.bf16.msrb.mxu3 %v4556_v26 }
 0x3c5   :  { %v2521_v43 = vpop.f32.mrf.mxu1 }
 0x3c8   :  { %3140 = vmatpush.bf16.msrb.mxu3 %v4548_v19 }
 0x3ca   :  { %v5111_v16 = vpop.eup %5110 }
 0x3cb   :  { %v2624_v41 = vadd.f32 1.0, %v5111_v16  ;;  %v2745_v16 = vld [vmem:[%s5711_s8] sm:$0x3] }
 0x3cc   :  { %3141 = vmatpush.bf16.msrb.mxu3 %v4540_v25  ;;  %v3068_v13 = vperm.slane %v2745_v16, 1 }
 0x3cd   :  { %5112 = vrcp.f32 %v2624_v41  ;;  %v2651_v48 = vand.u32 2147483648, %v2624_v41  ;;  %vm2645_vm4 = vweird.f32 %v2624_v41  ;;  %v2649_v32 = vand.u32 2147483647, %v2624_v41 }
 0x3cf   :  { %v2652_v60 = vor.u32 1.1754944e-38, %v2651_v48  ;;  %vm2650_vm6 = vcmp.eq.f32.partialorder %v2649_v32, 8.507059e+37 }
 0x3d0   :  { %3142 = vmatpush.bf16.msrb.mxu3 %v4532_v31 }
 0x3d3   :  { %v5113_v27 = vpop.eup %5112 }
 0x3d4   :  { %v2641_v51 = vmul.f32 %v5113_v27, %v2624_v41  ;;  %vm2646_vm3 = vweird.f32 %v5113_v27  ;;  %3143 = vmatpush.bf16.msrb.mxu3 %v4524_v42  ;;  %v3067_v41 = vperm.slane %v2745_v16, 0 }
 0x3d5   :  { %vm2647_vm5 = vmor %vm2645_vm4, %vm2646_vm3 }
 0x3d6   :  { %v2642_v61 = vsub.f32 1.0, %v2641_v51 }
 0x3d8   :  { %v2643_v34 = vmul.f32 %v5113_v27, %v2642_v61 }
 0x3da   :  { %v2558_v35 = vpop.f32.mrf.mxu0  ;;  %v2644_v8 = vadd.f32 %v5113_v27, %v2643_v34 }
 0x3db   :  { %v2559_v7 = vadd.f32 %v2558_v35, %v2412_v28 }
 0x3dc   :  { %v2648_v58 = vsel %vm2647_vm5, %v5113_v27, %v2644_v8 }
 0x3dd   :  { %v2571_v14 = vpop.f32.mrf.mxu1  ;;  %v2653_v63 = vsel %vm2650_vm6, %v2652_v60, %v2648_v58 }
 0x3de   :  { %v2572_v44 = vadd.f32 %v2571_v14, %v2559_v7  ;;  %v2662_v0 = vsub.f32 1.0, %v2653_v63  ;;  %v2666_v20 = vmul.f32 %v2653_v63, %v5501_v50 }
 0x3e0   :  { %v2656_v47 = vmul.f32 %v2613_v45, %v2572_v44 }
 0x3e2   :  { %v2658_v55 = vadd.f32 %v2656_v47, %v5656_v57  ;;  %v2560_v56 = vpop.f32.mrf.mxu0 }
 0x3e4   :  { %5114 = vtanh.f32 %v2658_v55 }
 0x3e5   :  { %v2573_v59 = vpop.f32.mrf.mxu1 }
 0x3ea   :  { %v5115_v1 = vpop.eup %5114 }
 0x3eb   :  { %v2664_v2 = vmul.f32 %v5115_v1, %v2662_v0 }
 0x3ed   :  { %v2668_v3 = vadd.f32 %v2666_v20, %v2664_v2 }
 0x3ef   :  { %v2680_v4 = vpack.c.bf16 %v2668_v3, %v2668_v3  ;;  %v2671_v10 = vrot.slane %v2668_v3, 7 }
 0x3f1   :  { %3092 = vmatmul.bf16.vlgmr.msra.gmra.mxu3 %v2680_v4  ;;  %v2672_v57 = vsel %vm289_vm1, %v5659_v9, %v2671_v10 }
 0x3f2   :  { %2678 = vst.msk [vmem:[#allocation17] sm:$0x3] %vm5680_vm7, %v2672_v57 }
 0x3f3   :  { %3202 = dma.vmem_to_hbm [thread:$0]  %s3198_s17, 32, %s3200_s27, [#allocation18]  }
 0x3f4   :  { %3213 = dma.vmem_to_hbm [thread:$0]  %s3209_s21, 16, %s3211_s20, [#allocation18]  }
 0x3fa   :  { %v3106_v12 = vpop.f32.mrf.mxu0 }
 0x3fd   :  { %v3119_v37 = vpop.f32.mrf.mxu1 }
 0x401   :  { %3144 = vmatmul.bf16.vlgmr.msrb.gmra.mxu3 %v2680_v4 }
 0x402   :  { %v3108_v17 = vpop.f32.mrf.mxu0 }
 0x405   :  { %v3121_v5 = vpop.f32.mrf.mxu1 }
 0x40f   :  { %v3080_v50 = vpop.f32.mrf.mxu2 }
 0x410   :  { %v3081_v6 = vadd.f32 %v3080_v50, %v3067_v41 }
 0x417   :  { %v3082_v43 = vpop.f32.mrf.mxu2 }
 0x41a   :  { %v3158_v53 = vpop.f32.mrf.mxu0 }
 0x41d   :  { %v3171_v9 = vpop.f32.mrf.mxu1 }
 0x41f   :  { %v3132_v49 = vpop.f32.mrf.mxu2 }
 0x420   :  { %v3133_v46 = vadd.f32 %v3132_v49, %v3068_v13 }
 0x422   :  { %v3160_v18 = vpop.f32.mrf.mxu0 }
 0x425   :  { %v3173_v15 = vpop.f32.mrf.mxu1 }
 0x427   :  { %v3134_v38 = vpop.f32.mrf.mxu2 }
 0x474   :  { %v3093_v21 = vpop.f32.mrf.mxu3 }
 0x475   :  { %v3094_v19 = vadd.f32 %v3093_v21, %v3081_v6 }
 0x477   :  { %v3107_v24 = vadd.f32 %v3106_v12, %v3094_v19 }
 0x479   :  { %v3120_v51 = vadd.f32 %v3119_v37, %v3107_v24 }
 0x47c   :  { %v3095_v26 = vpop.f32.mrf.mxu3 }
 0x484   :  { %v3145_v22 = vpop.f32.mrf.mxu3 }
 0x485   :  { %v3146_v23 = vadd.f32 %v3145_v22, %v3133_v46 }
 0x487   :  { %v3159_v25 = vadd.f32 %v3158_v53, %v3146_v23 }
 0x489   :  { %v3172_v27 = vadd.f32 %v3171_v9, %v3159_v25 }
 0x48b   :  { %v3177_v28 = vrot.slane %v3172_v27, 7 }
 0x48c   :  { %v3147_v29 = vpop.f32.mrf.mxu3 }
 0x48d   :  { %v3178_v61 = vsel %vm289_vm1, %v3120_v51, %v3177_v28 }
 0x48e   :  { %3180 = vst.msk [vmem:[#allocation16] sm:$0x3] %vm5680_vm7, %v3178_v61 }
 0x48f   :  { %3191 = dma.vmem_to_hbm [thread:$0]  %s3187_s23, 32, %s3189_s0, [#allocation4]  }
 0x490   :  { %5390 = dma.done.wait [#allocation4], 32  }
 0x491   :  { %5391 = vsyncadd [#allocation4], 4294967264 }
 0x492   :  { %5392 = dma.done.wait [#allocation18], 48  }
 0x493   :  { %5393 = vsyncadd [#allocation18], 4294967248 }
 0x494   :  { %3226 = vsyncpa [#allocation3], 1 }
 0x495   :  { %3227 = vsyncpa [#allocation6], 1 }
 0x496   :  { %3228 = vsyncpa [#allocation9], 1 }
 0x497   :  { %3229 = vsyncpa [#allocation12], 1 }
 0x498   :  { %3230 = vsyncpa [#allocation15], 1 }
 0x499   :  { %3231 = vsyncpa [#allocation4], 1 }
 0x49a   :  { %3232 = vsyncpa [#allocation18], 1 }

</bundles_post_ra>
